<compile_context>
chip_gen: v7x
topology: tpu7x:2x2x1
jax: 0.10.0
libtpu: 0.0.40
codegen_flags: <defaults>
</compile_context>

<pallas_src>
import functools

import jax
import jax.numpy as jnp
from jax.experimental import pallas as pl
from jax.experimental.pallas import tpu as pltpu

F32 = jnp.float32
BF16 = jnp.bfloat16
KPAD = 8  # num_classes padded to one sublane group for aligned weight slices


# ----------------------------------------------------------------------------
# helpers
# ----------------------------------------------------------------------------
def _gelu(x):
    # TODO(synk): PyTorch nn.GELU defaults to exact erf; tanh approximation here.
    return jax.nn.gelu(x)


def _dot(a, b):
    """a @ b with bf16 operands and f32 MXU accumulation."""
    return jnp.dot(a.astype(BF16), b.astype(BF16), preferred_element_type=F32)


def _dot_t(a, b):
    """a @ b.T (contract last dims) with bf16 operands, f32 accumulation."""
    return jax.lax.dot_general(a.astype(BF16), b.astype(BF16),
                               (((1,), (1,)), ((), ())),
                               preferred_element_type=F32)


def _l2norm(x):
    return x * jax.lax.rsqrt(
        jnp.maximum(jnp.sum(x * x, axis=-1, keepdims=True), 1e-24))


def _layernorm(x, g, b, eps=1e-5):
    mu = jnp.mean(x, axis=-1, keepdims=True)
    var = jnp.mean((x - mu) ** 2, axis=-1, keepdims=True)
    return (x - mu) * jax.lax.rsqrt(var + eps) * g + b


def _const_spec(shape):
    zeros = (0,) * len(shape)
    return pl.BlockSpec(shape, lambda *_: zeros)


def _tc_row_blocks():
    """2 row blocks on chips with 2 TensorCores (v7x / v4 / v5p), else 1."""
    try:
        kind = jax.devices()[0].device_kind.lower()
    except Exception:
        return 1
    return 2 if any(t in kind for t in ("v7", "7x", "v4", "v5p")) else 1


_MOSAIC_PARAMS = pltpu.CompilerParams(
    dimension_semantics=("parallel",),
    vmem_limit_bytes=32 * 1024 * 1024)


# ----------------------------------------------------------------------------
# K_enc: image encoder (patch embed + fused pyramid/visual projections)
# ----------------------------------------------------------------------------
def _encoder_kernel(patch_ref, wp_ref, bp_ref, wc_ref, bc_ref, pyr_ref, vis_ref,
                    *, n_pyr):
    # TODO(synk): full CLIPVisionTransformer replaced by a synthetic patch-embed
    # plus one fused (4 pyramid levels ++ visual projection) linear layer.
    t = _gelu(_dot(patch_ref[...], wp_ref[...]) + bp_ref[...])   # tokens stay in VMEM
    comb = _dot(t, wc_ref[...]) + bc_ref[...]                    # one MXU pass
    pyr_ref[...] = _gelu(comb[:, :n_pyr])
    vis_ref[...] = comb[:, n_pyr:]


def image_encoder_both(p, x1, x2, cfg, n_blocks):
    B, H, W, P, IC = cfg["B"], cfg["H"], cfg["W"], cfg["PATCH"], cfg["IN_CH"]
    VW, C, HW = cfg["VW"], cfg["C"], cfg["HW"]
    NPYR = 4 * VW

    def to_patches(x):
        pt = x.reshape(B, IC, H, P, W, P).transpose(0, 2, 4, 1, 3, 5)
        return pt.reshape(B, HW, IC * P * P)

    # pair-major row order [pair][image][token]: the pair kernel then reads one
    # contiguous (2*HW, .) block per grid step with a single BlockSpec.
    patches = jnp.concatenate([to_patches(x1), to_patches(x2)], axis=1)
    patches = patches.reshape(B * 2 * HW, IC * P * P).astype(BF16)
    M, KP = patches.shape
    if M % n_blocks:
        n_blocks = 1
    TM = M // n_blocks
    pyr, vis = pl.pallas_call(
        functools.partial(_encoder_kernel, n_pyr=NPYR),
        grid=(n_blocks,),
        in_specs=[
            pl.BlockSpec((TM, KP), lambda i: (i, 0)),
            _const_spec((KP, VW)),
            _const_spec((1, VW)),
            _const_spec((VW, NPYR + C)),
            _const_spec((1, NPYR + C)),
        ],
        out_specs=[
            pl.BlockSpec((TM, NPYR), lambda i: (i, 0)),
            pl.BlockSpec((TM, C), lambda i: (i, 0)),
        ],
        out_shape=[
            jax.ShapeDtypeStruct((M, NPYR), F32),
            jax.ShapeDtypeStruct((M, C), F32),
        ],
        compiler_params=_MOSAIC_PARAMS,
    )(patches, p["patch_w"], p["patch_b"], p["comb_w"], p["comb_b"])
    return pyr.reshape(B, 2 * HW, NPYR), vis.reshape(B, 2 * HW, C)


# ----------------------------------------------------------------------------
# K_pair: everything downstream of the encoder, fused per image pair
# ----------------------------------------------------------------------------
def _pair_kernel(xe_ref, lng_ref, lnb_ref, tproj_ref,
                 wq_ref, wkv_ref, wo_ref, gamma_ref,
                 pyr_ref, vis_ref,
                 e1w_ref, e1b_ref, e2w_ref, e2b_ref,
                 i1w_ref, i1b_ref, i2w_ref, i2b_ref, nig_ref, nib_ref,
                 qkvw_ref, ow_ref, hw_ref, hb_ref, srow_ref,
                 pred_ref, paux_ref,
                 *, C, VW, HW, K, E):
    # --- text-encoder tail (ln_final + text_projection), folded prologue ------
    t_emb = _dot(_layernorm(xe_ref[...], lng_ref[...], lnb_ref[...]),
                 tproj_ref[...])                                   # (KPAD, C)

    pyr = pyr_ref[0]                                               # (2HW, 4VW) f32
    vis = vis_ref[0]                                               # (2HW, C)   f32

    # --- context decoder + gamma residual + L2-normalised score maps ----------
    # TODO(synk): real multi-layer ContextDecoder is an external frozen network;
    # a single-head cross-attention with fused KV projection stands in.
    q = _dot(t_emb, wq_ref[...])                                   # (KPAD, C)
    kv = _dot(vis, wkv_ref[...])                                   # (2HW, 2C) one pass, both imgs
    k_all, v_all = kv[:, :C], kv[:, C:]
    v_n = _l2norm(vis)                                             # (2HW, C)
    cd_scale = 1.0 / (C ** 0.5)

    def side_score(sl):
        k_s, v_s = k_all[sl], v_all[sl]
        # global-context token = mean visual embedding; the KV projection is
        # linear (no bias), so its key/value are just the per-side means.
        k_g = jnp.mean(k_s, axis=0, keepdims=True)                 # (1, C)
        v_g = jnp.mean(v_s, axis=0, keepdims=True)
        lg_v = _dot_t(q, k_s) * cd_scale                           # (KPAD, HW)
        lg_g = jnp.sum(q * k_g, axis=-1, keepdims=True) * cd_scale # (KPAD, 1)
        m = jnp.maximum(jnp.max(lg_v, axis=-1, keepdims=True), lg_g)
        e_v = jnp.exp(lg_v - m)
        e_g = jnp.exp(lg_g - m)
        ctx = (_dot(e_v, v_s) + e_g * v_g) / (jnp.sum(e_v, -1, keepdims=True) + e_g)
        t_new = t_emb + gamma_ref[...] * _dot(ctx, wo_ref[...])    # (KPAD, C)
        return _dot_t(v_n[sl], _l2norm(t_new))                     # (HW, KPAD)

    score = jnp.concatenate([side_score(slice(0, HW)),
                             side_score(slice(HW, 2 * HW))], axis=0)  # (2HW, KPAD)

    # --- embed_img_t: Mlp(VW + K, 4VW, VW) on cat([level -2, score_map]) ------
    xm2 = pyr[:, 2 * VW:3 * VW]                                    # (2HW, VW)
    h = _gelu(_dot(xm2, e1w_ref[:VW, :]) + _dot(score, e1w_ref[VW:, :])
              + e1b_ref[...])
    newx = _dot(h, e2w_ref[...]) + e2b_ref[...]                    # (2HW, VW)

    # --- embed_img MLP + norm_img LayerNorm on cat(pyramid, level -2 replaced) -
    feats = jnp.concatenate([pyr[:, :2 * VW], newx, pyr[:, 3 * VW:]], axis=-1)
    h2 = _gelu(_dot(feats, i1w_ref[...]) + i1b_ref[...])
    fe = _layernorm(_dot(h2, i2w_ref[...]) + i2b_ref[...],
                    nig_ref[...], nib_ref[...])                    # (2HW, E)

    # --- images_interacts: bidirectional cross-attention + residual fusion ----
    # TODO(synk): CrossAttention_Block (CCMAT exchange + TBAM fusion) simplified
    # to symmetric single-head cross-attention.
    ia_scale = 1.0 / (E ** 0.5)
    qkv = _dot(fe, qkvw_ref[...])                                  # (2HW, 3E) one pass, both imgs
    ql, kl, vl = qkv[:HW, :E], qkv[:HW, E:2 * E], qkv[:HW, 2 * E:]
    qr, kr, vr = qkv[HW:, :E], qkv[HW:, E:2 * E], qkv[HW:, 2 * E:]
    a_l2r = _dot(jax.nn.softmax(_dot_t(ql, kr) * ia_scale, axis=-1), vr)
    a_r2l = _dot(jax.nn.softmax(_dot_t(qr, kl) * ia_scale, axis=-1), vl)
    proj = _dot(jnp.concatenate([a_l2r, a_r2l], axis=0), ow_ref[...])  # one wo pass
    fusion = fe[:HW] + proj[:HW] + fe[HW:] + proj[HW:]             # (HW, E)

    # --- change head, emitted transposed (K, HW): lane-dense store, NCHW order -
    # TODO(synk): configured BuildHead change head unavailable; linear head.
    pred_ref[0] = _dot_t(hw_ref[...], fusion) + hb_ref[...]        # (K, HW)

    # --- pred_aux = pairwise_distance(s1, s2, p=2) over the spatial W axis -----
    d = score[:HW] - score[HW:] + 1e-6                             # (HW, KPAD)
    paux_sq = jnp.dot(srow_ref[...], d * d,
                      preferred_element_type=F32)                  # (H, KPAD), f32 matmul
    paux_ref[0] = jnp.sqrt(paux_sq[:, :K])                         # (H, K)


def fused_pair_forward(p, x_eot_pad, pyr, vis, cfg):
    B, K, C, VW, E = cfg["B"], cfg["K"], cfg["C"], cfg["VW"], cfg["E"]
    HW, Hs, Ws, Wd = cfg["HW"], cfg["H"], cfg["W"], cfg["WIDTH"]
    NPYR = 4 * VW
    # per-row (h) summing matrix for pairwise_distance over the spatial W axis
    srow = jnp.repeat(jnp.eye(Hs, dtype=F32), Ws, axis=1)          # (H, HW)

    def pair_spec(shape):
        return pl.BlockSpec(shape, lambda g: (g, 0, 0))

    return pl.pallas_call(
        functools.partial(_pair_kernel, C=C, VW=VW, HW=HW, K=K, E=E),
        grid=(B,),
        in_specs=[
            _const_spec((KPAD, Wd)),          # x_eot (row-padded)
            _const_spec((1, Wd)),             # ln_g
            _const_spec((1, Wd)),             # ln_b
            _const_spec((Wd, C)),             # text_projection
            _const_spec((C, C)),              # cd_wq
            _const_spec((C, 2 * C)),          # cd_wkv (fused K,V)
            _const_spec((C, C)),              # cd_wo
            _const_spec((1, C)),              # gamma
            pair_spec((1, 2 * HW, NPYR)),     # pyramid features (both images)
            pair_spec((1, 2 * HW, C)),        # visual embeddings (both images)
            _const_spec((VW + KPAD, NPYR)),   # eit_w1 (score rows padded to 8)
            _const_spec((1, NPYR)),           # eit_b1
            _const_spec((NPYR, VW)),          # eit_w2
            _const_spec((1, VW)),             # eit_b2
            _const_spec((NPYR, NPYR)),        # ei_w1
            _const_spec((1, NPYR)),           # ei_b1
            _const_spec((NPYR, E)),           # ei_w2
            _const_spec((1, E)),              # ei_b2
            _const_spec((1, E)),              # ni_g
            _const_spec((1, E)),              # ni_b
            _const_spec((E, 3 * E)),          # ia_wqkv (fused Q,K,V)
            _const_spec((E, E)),              # ia_wo
            _const_spec((K, E)),              # head_w (stored transposed)
            _const_spec((K, 1)),              # head_b
            _const_spec((Hs, HW)),            # srow
        ],
        out_specs=[
            pair_spec((1, K, HW)),            # pred, transposed / lane-dense
            pair_spec((1, Hs, K)),            # pred_aux (per-row distances)
        ],
        out_shape=[
            jax.ShapeDtypeStruct((B, K, HW), F32),
            jax.ShapeDtypeStruct((B, Hs, K), F32),
        ],
        compiler_params=_MOSAIC_PARAMS,
    )(x_eot_pad, p["ln_g"], p["ln_b"], p["text_proj"],
      p["cd_wq"], p["cd_wkv"], p["cd_wo"], p["gamma"],
      pyr, vis,
      p["eit_w1"], p["eit_b1"], p["eit_w2"], p["eit_b2"],
      p["ei_w1"], p["ei_b1"], p["ei_w2"], p["ei_b2"], p["ni_g"], p["ni_b"],
      p["ia_wqkv"], p["ia_wo"], p["head_w"], p["head_b"], srow)


# ----------------------------------------------------------------------------
# Parameters (deterministic synthetic init — no checkpoint loading)
# ----------------------------------------------------------------------------
def make_config():
    # TODO(synk): toy stand-in dims; at real CLIP sizes lane dims / contraction
    # depths should be >=128 (see review) and TM re-derived for v7x VMEM.
    return dict(B=2, IMG=32, IN_CH=3, PATCH=4, H=8, W=8, HW=64,
                VW=32, C=32, K=4, CTX_LEN=8, N_CTX=4, WIDTH=32, E=32)


def init_params(key, cfg):
    ks = iter(jax.random.split(key, 32))

    def nrm(shape, std=0.02, dtype=F32):
        return (std * jax.random.normal(next(ks), shape)).astype(dtype)

    K, CTX, NCTX, Wd = cfg["K"], cfg["CTX_LEN"], cfg["N_CTX"], cfg["WIDTH"]
    C, VW, E = cfg["C"], cfg["VW"], cfg["E"]
    P, IC = cfg["PATCH"], cfg["IN_CH"]
    NPYR = 4 * VW

    p = {}
    # PromptLearner (class_token_position == 'end')
    p["ctx"] = nrm((NCTX, Wd))
    p["token_prefix"] = nrm((K, 1, Wd))
    p["token_suffix"] = nrm((K, CTX - 1 - NCTX, Wd))
    eot_pos = jnp.array([1 + NCTX + 1 + (i % 2) for i in range(K)], jnp.int32)
    tok = jnp.full((K, CTX), 10, jnp.int32)
    tok = tok.at[:, 0].set(49406)
    tok = tok.at[jnp.arange(K), eot_pos].set(49407)
    p["tokenized_prompts"] = tok

    # TextEncoder tail (ln_final + text_projection)
    p["pos_embed"] = nrm((CTX, Wd))
    p["ln_g"] = jnp.ones((1, Wd), F32)
    p["ln_b"] = jnp.zeros((1, Wd), F32)
    p["text_proj"] = nrm((Wd, C), dtype=BF16)

    # synthetic image encoder: patch embed + fused (4 pyramid levels ++ proj)
    p["patch_w"] = nrm((IC * P * P, VW), dtype=BF16)
    p["patch_b"] = jnp.zeros((1, VW), F32)
    p["comb_w"] = nrm((VW, NPYR + C), dtype=BF16)
    p["comb_b"] = jnp.zeros((1, NPYR + C), F32)

    # context decoder (fused KV projection) + gamma
    p["gamma"] = (1e-4 * jnp.ones((1, C))).astype(F32)
    p["cd_wq"] = nrm((C, C), dtype=BF16)
    p["cd_wkv"] = nrm((C, 2 * C), dtype=BF16)
    p["cd_wo"] = nrm((C, C), dtype=BF16)

    # embed_img_t : Mlp(VW + K, 4VW, VW); score rows padded K -> KPAD with zeros
    w1 = 0.02 * jax.random.normal(next(ks), (VW + KPAD, NPYR))
    w1 = w1.at[VW + K:].set(0.0)
    p["eit_w1"] = w1.astype(BF16)
    p["eit_b1"] = jnp.zeros((1, NPYR), F32)
    p["eit_w2"] = nrm((NPYR, VW), dtype=BF16)
    p["eit_b2"] = jnp.zeros((1, VW), F32)

    # embed_img : Mlp(4VW, 4VW, E) ; norm_img : LayerNorm(E)
    p["ei_w1"] = nrm((NPYR, NPYR), dtype=BF16)
    p["ei_b1"] = jnp.zeros((1, NPYR), F32)
    p["ei_w2"] = nrm((NPYR, E), dtype=BF16)
    p["ei_b2"] = jnp.zeros((1, E), F32)
    p["ni_g"] = jnp.ones((1, E), F32)
    p["ni_b"] = jnp.zeros((1, E), F32)

    # images_interacts cross-attention (fused QKV) + change head (stored K x E)
    p["ia_wqkv"] = nrm((E, 3 * E), dtype=BF16)
    p["ia_wo"] = nrm((E, E), dtype=BF16)
    p["head_w"] = nrm((K, E), dtype=BF16)
    p["head_b"] = jnp.zeros((K, 1), F32)
    return p


# ----------------------------------------------------------------------------
# Forward pass (tiny prompt glue in plain JAX, hot paths in the 2 kernels)
# ----------------------------------------------------------------------------
def pf_change_clip_forward(p, x1, x2, cfg, n_blocks):
    B, K, Hs, Ws = cfg["B"], cfg["K"], cfg["H"], cfg["W"]
    NCTX, Wd = cfg["N_CTX"], cfg["WIDTH"]

    # PromptLearner ('end') + positional embedding + EOT gather (tiny plain JAX;
    # the ln_final / text_projection tail is folded into the pair kernel).
    # TODO(synk): frozen CLIP text transformer stack not available; identity.
    ctx = jnp.broadcast_to(p["ctx"][None], (K, NCTX, Wd))
    prompts = jnp.concatenate([p["token_prefix"], ctx, p["token_suffix"]], axis=1)
    x = prompts + p["pos_embed"][None]
    eot = jnp.argmax(p["tokenized_prompts"], axis=-1)
    x_eot = x[jnp.arange(K), eot]                                   # (K, WIDTH)
    x_eot_pad = jnp.pad(x_eot, ((0, KPAD - K), (0, 0)))             # sublane-aligned

    pyr, vis = image_encoder_both(p, x1, x2, cfg, n_blocks)         # (B,2HW,4VW),(B,2HW,C)
    pred, paux = fused_pair_forward(p, x_eot_pad, pyr, vis, cfg)

    pred = pred.reshape(B, K, Hs, Ws)                               # already NCHW-ordered
    pred_aux = jnp.transpose(paux, (0, 2, 1)).reshape(B, K, Hs, 1)
    return pred, pred_aux


# ----------------------------------------------------------------------------
if __name__ == "__main__":
    cfg = make_config()
    key = jax.random.PRNGKey(0)
    kp, k1, k2 = jax.random.split(key, 3)
    params = init_params(kp, cfg)

    x1 = jax.random.normal(k1, (cfg["B"], cfg["IN_CH"], cfg["IMG"], cfg["IMG"]), F32)
    x2 = jax.random.normal(k2, (cfg["B"], cfg["IN_CH"], cfg["IMG"], cfg["IMG"]), F32)

    fwd = jax.jit(functools.partial(pf_change_clip_forward, cfg=cfg,
                                    n_blocks=_tc_row_blocks()))
    pred, pred_aux = fwd(params, x1, x2)
    jax.block_until_ready((pred, pred_aux))

    assert pred.shape == (cfg["B"], cfg["K"], cfg["H"], cfg["W"])
    assert pred_aux.shape == (cfg["B"], cfg["K"], cfg["H"], 1)
    assert bool(jnp.all(jnp.isfinite(pred))) and bool(jnp.all(jnp.isfinite(pred_aux)))
    print("KERNEL_OK")
</pallas_src>

<mosaic_0001>
module attributes {stable_mosaic.version = 11 : i64} {
  func.func @_encoder_kernel(%arg0: i32, %arg1: memref<256x48xbf16, #tpu.memory_space<vmem>>, %arg2: memref<48x32xbf16, #tpu.memory_space<vmem>>, %arg3: memref<1x32xf32, #tpu.memory_space<vmem>>, %arg4: memref<32x160xbf16, #tpu.memory_space<vmem>>, %arg5: memref<1x160xf32, #tpu.memory_space<vmem>>, %arg6: memref<256x128xf32, #tpu.memory_space<vmem>>, %arg7: memref<256x32xf32, #tpu.memory_space<vmem>>) attributes {dimension_semantics = [#tpu.dimension_semantics<parallel>], iteration_bounds = array<i64: 1>, scalar_prefetch = 0 : i64, scratch_operands = 0 : i64, tpu.core_type = #tpu.core_type<tc>, window_params = [{transform_indices = @transform_0, window_bounds = array<i64: 256, 48>}, {pipeline_mode = #tpu.pipeline_mode<synchronous>, transform_indices = @transform_1, window_bounds = array<i64: 48, 32>}, {pipeline_mode = #tpu.pipeline_mode<synchronous>, transform_indices = @transform_2, window_bounds = array<i64: 1, 32>}, {pipeline_mode = #tpu.pipeline_mode<synchronous>, transform_indices = @transform_3, window_bounds = array<i64: 32, 160>}, {pipeline_mode = #tpu.pipeline_mode<synchronous>, transform_indices = @transform_4, window_bounds = array<i64: 1, 160>}, {transform_indices = @transform_5, window_bounds = array<i64: 256, 128>}, {transform_indices = @transform_6, window_bounds = array<i64: 256, 32>}]} {
    %c0 = arith.constant 0 : index
    %c0_0 = arith.constant 0 : index
    %0 = vector.load %arg1[%c0, %c0_0] : memref<256x48xbf16, #tpu.memory_space<vmem>>, vector<256x48xbf16>
    %c0_1 = arith.constant 0 : index
    %c0_2 = arith.constant 0 : index
    %1 = vector.load %arg2[%c0_1, %c0_2] : memref<48x32xbf16, #tpu.memory_space<vmem>>, vector<48x32xbf16>
    %cst = arith.constant dense<0.000000e+00> : vector<256x32xf32>
    %2 = tpu.matmul %0, %1, %cst {dimension_numbers = #tpu.dot_dimension_numbers<[1], [0], [0], [1], [0, 0, 1, 1], [], []>} : vector<256x48xbf16>, vector<48x32xbf16>, vector<256x32xf32> -> vector<256x32xf32>
    %c0_3 = arith.constant 0 : index
    %c0_4 = arith.constant 0 : index
    %3 = vector.load %arg3[%c0_3, %c0_4] : memref<1x32xf32, #tpu.memory_space<vmem>>, vector<1x32xf32>
    %4 = vector.broadcast %3 : vector<1x32xf32> to vector<256x32xf32>
    %5 = arith.addf %2, %4 : vector<256x32xf32>
    %6 = arith.mulf %5, %5 : vector<256x32xf32>
    %7 = arith.mulf %5, %6 : vector<256x32xf32>
    %cst_5 = arith.constant 4.471500e-02 : f32
    %8 = vector.broadcast %cst_5 : f32 to vector<256x32xf32>
    %9 = arith.mulf %8, %7 : vector<256x32xf32>
    %10 = arith.addf %5, %9 : vector<256x32xf32>
    %cst_6 = arith.constant 0.797884583 : f32
    %11 = vector.broadcast %cst_6 : f32 to vector<256x32xf32>
    %12 = arith.mulf %11, %10 : vector<256x32xf32>
    %13 = math.tanh %12 : vector<256x32xf32>
    %cst_7 = arith.constant 1.000000e+00 : f32
    %14 = vector.broadcast %cst_7 : f32 to vector<256x32xf32>
    %15 = arith.addf %14, %13 : vector<256x32xf32>
    %cst_8 = arith.constant 5.000000e-01 : f32
    %16 = vector.broadcast %cst_8 : f32 to vector<256x32xf32>
    %17 = arith.mulf %16, %15 : vector<256x32xf32>
    %18 = arith.mulf %5, %17 : vector<256x32xf32>
    %c0_9 = arith.constant 0 : index
    %c0_10 = arith.constant 0 : index
    %19 = vector.load %arg4[%c0_9, %c0_10] : memref<32x160xbf16, #tpu.memory_space<vmem>>, vector<32x160xbf16>
    %20 = arith.truncf %18 : vector<256x32xf32> to vector<256x32xbf16>
    %cst_11 = arith.constant dense<0.000000e+00> : vector<256x160xf32>
    %21 = tpu.matmul %20, %19, %cst_11 {dimension_numbers = #tpu.dot_dimension_numbers<[1], [0], [0], [1], [0, 0, 1, 1], [], []>} : vector<256x32xbf16>, vector<32x160xbf16>, vector<256x160xf32> -> vector<256x160xf32>
    %c0_12 = arith.constant 0 : index
    %c0_13 = arith.constant 0 : index
    %22 = vector.load %arg5[%c0_12, %c0_13] : memref<1x160xf32, #tpu.memory_space<vmem>>, vector<1x160xf32>
    %23 = vector.broadcast %22 : vector<1x160xf32> to vector<256x160xf32>
    %24 = arith.addf %21, %23 : vector<256x160xf32>
    %25 = vector.extract_strided_slice %24 {offsets = [0, 0], sizes = [256, 128], strides = [1, 1]} : vector<256x160xf32> to vector<256x128xf32>
    %26 = arith.mulf %25, %25 : vector<256x128xf32>
    %27 = arith.mulf %25, %26 : vector<256x128xf32>
    %cst_14 = arith.constant 4.471500e-02 : f32
    %28 = vector.broadcast %cst_14 : f32 to vector<256x128xf32>
    %29 = arith.mulf %28, %27 : vector<256x128xf32>
    %30 = arith.addf %25, %29 : vector<256x128xf32>
    %cst_15 = arith.constant 0.797884583 : f32
    %31 = vector.broadcast %cst_15 : f32 to vector<256x128xf32>
    %32 = arith.mulf %31, %30 : vector<256x128xf32>
    %33 = math.tanh %32 : vector<256x128xf32>
    %cst_16 = arith.constant 1.000000e+00 : f32
    %34 = vector.broadcast %cst_16 : f32 to vector<256x128xf32>
    %35 = arith.addf %34, %33 : vector<256x128xf32>
    %cst_17 = arith.constant 5.000000e-01 : f32
    %36 = vector.broadcast %cst_17 : f32 to vector<256x128xf32>
    %37 = arith.mulf %36, %35 : vector<256x128xf32>
    %38 = arith.mulf %25, %37 : vector<256x128xf32>
    %c0_18 = arith.constant 0 : index
    %c0_19 = arith.constant 0 : index
    %39 = vector.load %arg6[%c0_18, %c0_19] : memref<256x128xf32, #tpu.memory_space<vmem>>, vector<256x128xf32>
    tpu.vector_store %arg6[%c0_18, %c0_19], %38 {strides = array<i32>} : memref<256x128xf32, #tpu.memory_space<vmem>>, vector<256x128xf32>,
    %40 = vector.extract_strided_slice %24 {offsets = [0, 128], sizes = [256, 32], strides = [1, 1]} : vector<256x160xf32> to vector<256x32xf32>
    %c0_20 = arith.constant 0 : index
    %c0_21 = arith.constant 0 : index
    %41 = vector.load %arg7[%c0_20, %c0_21] : memref<256x32xf32, #tpu.memory_space<vmem>>, vector<256x32xf32>
    tpu.vector_store %arg7[%c0_20, %c0_21], %40 {strides = array<i32>} : memref<256x32xf32, #tpu.memory_space<vmem>>, vector<256x32xf32>,
    return
  }
  func.func @transform_0(%arg0: i32) -> (i32, i32) {
    %c0_i32 = arith.constant 0 : i32
    %c0_i32_0 = arith.constant 0 : i32
    return %arg0, %c0_i32 : i32, i32
  }
  func.func @transform_1(%arg0: i32) -> (i32, i32) {
    %c0_i32 = arith.constant 0 : i32
    %c0_i32_0 = arith.constant 0 : i32
    %c0_i32_1 = arith.constant 0 : i32
    return %c0_i32, %c0_i32_0 : i32, i32
  }
  func.func @transform_2(%arg0: i32) -> (i32, i32) {
    %c0_i32 = arith.constant 0 : i32
    %c0_i32_0 = arith.constant 0 : i32
    %c0_i32_1 = arith.constant 0 : i32
    return %c0_i32, %c0_i32_0 : i32, i32
  }
  func.func @transform_3(%arg0: i32) -> (i32, i32) {
    %c0_i32 = arith.constant 0 : i32
    %c0_i32_0 = arith.constant 0 : i32
    %c0_i32_1 = arith.constant 0 : i32
    return %c0_i32, %c0_i32_0 : i32, i32
  }
  func.func @transform_4(%arg0: i32) -> (i32, i32) {
    %c0_i32 = arith.constant 0 : i32
    %c0_i32_0 = arith.constant 0 : i32
    %c0_i32_1 = arith.constant 0 : i32
    return %c0_i32, %c0_i32_0 : i32, i32
  }
  func.func @transform_5(%arg0: i32) -> (i32, i32) {
    %c0_i32 = arith.constant 0 : i32
    %c0_i32_0 = arith.constant 0 : i32
    return %arg0, %c0_i32 : i32, i32
  }
  func.func @transform_6(%arg0: i32) -> (i32, i32) {
    %c0_i32 = arith.constant 0 : i32
    %c0_i32_0 = arith.constant 0 : i32
    return %arg0, %c0_i32 : i32, i32
  }
}

module attributes {stable_mosaic.version = 11 : i64} {
  func.func @_pair_kernel(%arg0: i32, %arg1: memref<8x32xf32, #tpu.memory_space<vmem>>, %arg2: memref<1x32xf32, #tpu.memory_space<vmem>>, %arg3: memref<1x32xf32, #tpu.memory_space<vmem>>, %arg4: memref<32x32xbf16, #tpu.memory_space<vmem>>, %arg5: memref<32x32xbf16, #tpu.memory_space<vmem>>, %arg6: memref<32x64xbf16, #tpu.memory_space<vmem>>, %arg7: memref<32x32xbf16, #tpu.memory_space<vmem>>, %arg8: memref<1x32xf32, #tpu.memory_space<vmem>>, %arg9: memref<1x128x128xf32, #tpu.memory_space<vmem>>, %arg10: memref<1x128x32xf32, #tpu.memory_space<vmem>>, %arg11: memref<40x128xbf16, #tpu.memory_space<vmem>>, %arg12: memref<1x128xf32, #tpu.memory_space<vmem>>, %arg13: memref<128x32xbf16, #tpu.memory_space<vmem>>, %arg14: memref<1x32xf32, #tpu.memory_space<vmem>>, %arg15: memref<128x128xbf16, #tpu.memory_space<vmem>>, %arg16: memref<1x128xf32, #tpu.memory_space<vmem>>, %arg17: memref<128x32xbf16, #tpu.memory_space<vmem>>, %arg18: memref<1x32xf32, #tpu.memory_space<vmem>>, %arg19: memref<1x32xf32, #tpu.memory_space<vmem>>, %arg20: memref<1x32xf32, #tpu.memory_space<vmem>>, %arg21: memref<32x96xbf16, #tpu.memory_space<vmem>>, %arg22: memref<32x32xbf16, #tpu.memory_space<vmem>>, %arg23: memref<4x32xbf16, #tpu.memory_space<vmem>>, %arg24: memref<4x1xf32, #tpu.memory_space<vmem>>, %arg25: memref<8x64xf32, #tpu.memory_space<vmem>>, %arg26: memref<1x4x64xf32, #tpu.memory_space<vmem>>, %arg27: memref<1x8x4xf32, #tpu.memory_space<vmem>>) attributes {dimension_semantics = [#tpu.dimension_semantics<parallel>], iteration_bounds = array<i64: 2>, scalar_prefetch = 0 : i64, scratch_operands = 0 : i64, tpu.core_type = #tpu.core_type<tc>, window_params = [{pipeline_mode = #tpu.pipeline_mode<synchronous>, transform_indices = @transform_0, window_bounds = array<i64: 8, 32>}, {pipeline_mode = #tpu.pipeline_mode<synchronous>, transform_indices = @transform_1, window_bounds = array<i64: 1, 32>}, {pipeline_mode = #tpu.pipeline_mode<synchronous>, transform_indices = @transform_2, window_bounds = array<i64: 1, 32>}, {pipeline_mode = #tpu.pipeline_mode<synchronous>, transform_indices = @transform_3, window_bounds = array<i64: 32, 32>}, {pipeline_mode = #tpu.pipeline_mode<synchronous>, transform_indices = @transform_4, window_bounds = array<i64: 32, 32>}, {pipeline_mode = #tpu.pipeline_mode<synchronous>, transform_indices = @transform_5, window_bounds = array<i64: 32, 64>}, {pipeline_mode = #tpu.pipeline_mode<synchronous>, transform_indices = @transform_6, window_bounds = array<i64: 32, 32>}, {pipeline_mode = #tpu.pipeline_mode<synchronous>, transform_indices = @transform_7, window_bounds = array<i64: 1, 32>}, {transform_indices = @transform_8, window_bounds = array<i64: 1, 128, 128>}, {transform_indices = @transform_9, window_bounds = array<i64: 1, 128, 32>}, {pipeline_mode = #tpu.pipeline_mode<synchronous>, transform_indices = @transform_10, window_bounds = array<i64: 40, 128>}, {pipeline_mode = #tpu.pipeline_mode<synchronous>, transform_indices = @transform_11, window_bounds = array<i64: 1, 128>}, {pipeline_mode = #tpu.pipeline_mode<synchronous>, transform_indices = @transform_12, window_bounds = array<i64: 128, 32>}, {pipeline_mode = #tpu.pipeline_mode<synchronous>, transform_indices = @transform_13, window_bounds = array<i64: 1, 32>}, {pipeline_mode = #tpu.pipeline_mode<synchronous>, transform_indices = @transform_14, window_bounds = array<i64: 128, 128>}, {pipeline_mode = #tpu.pipeline_mode<synchronous>, transform_indices = @transform_15, window_bounds = array<i64: 1, 128>}, {pipeline_mode = #tpu.pipeline_mode<synchronous>, transform_indices = @transform_16, window_bounds = array<i64: 128, 32>}, {pipeline_mode = #tpu.pipeline_mode<synchronous>, transform_indices = @transform_17, window_bounds = array<i64: 1, 32>}, {pipeline_mode = #tpu.pipeline_mode<synchronous>, transform_indices = @transform_18, window_bounds = array<i64: 1, 32>}, {pipeline_mode = #tpu.pipeline_mode<synchronous>, transform_indices = @transform_19, window_bounds = array<i64: 1, 32>}, {pipeline_mode = #tpu.pipeline_mode<synchronous>, transform_indices = @transform_20, window_bounds = array<i64: 32, 96>}, {pipeline_mode = #tpu.pipeline_mode<synchronous>, transform_indices = @transform_21, window_bounds = array<i64: 32, 32>}, {pipeline_mode = #tpu.pipeline_mode<synchronous>, transform_indices = @transform_22, window_bounds = array<i64: 4, 32>}, {pipeline_mode = #tpu.pipeline_mode<synchronous>, transform_indices = @transform_23, window_bounds = array<i64: 4, 1>}, {pipeline_mode = #tpu.pipeline_mode<synchronous>, transform_indices = @transform_24, window_bounds = array<i64: 8, 64>}, {transform_indices = @transform_25, window_bounds = array<i64: 1, 4, 64>}, {transform_indices = @transform_26, window_bounds = array<i64: 1, 8, 4>}]} {
    %c0 = arith.constant 0 : index
    %c0_0 = arith.constant 0 : index
    %0 = vector.load %arg1[%c0, %c0_0] : memref<8x32xf32, #tpu.memory_space<vmem>>, vector<8x32xf32>
    %c0_1 = arith.constant 0 : index
    %c0_2 = arith.constant 0 : index
    %1 = vector.load %arg2[%c0_1, %c0_2] : memref<1x32xf32, #tpu.memory_space<vmem>>, vector<1x32xf32>
    %c0_3 = arith.constant 0 : index
    %c0_4 = arith.constant 0 : index
    %2 = vector.load %arg3[%c0_3, %c0_4] : memref<1x32xf32, #tpu.memory_space<vmem>>, vector<1x32xf32>
    %cst = arith.constant dense<0.000000e+00> : vector<8xf32>
    %3 = vector.multi_reduction <add>, %0, %cst [1] : vector<8x32xf32> to vector<8xf32>
    %4 = vector.shape_cast %3 : vector<8xf32> to vector<8x1xf32>
    %cst_5 = arith.constant 3.200000e+01 : f32
    %5 = vector.broadcast %cst_5 : f32 to vector<8x1xf32>
    %6 = arith.divf %4, %5 : vector<8x1xf32>
    %7 = vector.broadcast %6 : vector<8x1xf32> to vector<8x32xf32>
    %8 = arith.subf %0, %7 : vector<8x32xf32>
    %9 = arith.mulf %8, %8 : vector<8x32xf32>
    %cst_6 = arith.constant dense<0.000000e+00> : vector<8xf32>
    %10 = vector.multi_reduction <add>, %9, %cst_6 [1] : vector<8x32xf32> to vector<8xf32>
    %11 = vector.shape_cast %10 : vector<8xf32> to vector<8x1xf32>
    %cst_7 = arith.constant 3.200000e+01 : f32
    %12 = vector.broadcast %cst_7 : f32 to vector<8x1xf32>
    %13 = arith.divf %11, %12 : vector<8x1xf32>
    %14 = vector.broadcast %6 : vector<8x1xf32> to vector<8x32xf32>
    %15 = arith.subf %0, %14 : vector<8x32xf32>
    %cst_8 = arith.constant 9.99999974E-6 : f32
    %16 = vector.broadcast %cst_8 : f32 to vector<8x1xf32>
    %17 = arith.addf %13, %16 : vector<8x1xf32>
    %18 = math.rsqrt %17 : vector<8x1xf32>
    %19 = vector.broadcast %18 : vector<8x1xf32> to vector<8x32xf32>
    %20 = arith.mulf %15, %19 : vector<8x32xf32>
    %21 = vector.broadcast %1 : vector<1x32xf32> to vector<8x32xf32>
    %22 = arith.mulf %20, %21 : vector<8x32xf32>
    %23 = vector.broadcast %2 : vector<1x32xf32> to vector<8x32xf32>
    %24 = arith.addf %22, %23 : vector<8x32xf32>
    %c0_9 = arith.constant 0 : index
    %c0_10 = arith.constant 0 : index
    %25 = vector.load %arg4[%c0_9, %c0_10] : memref<32x32xbf16, #tpu.memory_space<vmem>>, vector<32x32xbf16>
    %26 = arith.truncf %24 : vector<8x32xf32> to vector<8x32xbf16>
    %cst_11 = arith.constant dense<0.000000e+00> : vector<8x32xf32>
    %27 = tpu.matmul %26, %25, %cst_11 {dimension_numbers = #tpu.dot_dimension_numbers<[1], [0], [0], [1], [0, 0, 1, 1], [], []>} : vector<8x32xbf16>, vector<32x32xbf16>, vector<8x32xf32> -> vector<8x32xf32>
    %c0_12 = arith.constant 0 : index
    %c0_13 = arith.constant 0 : index
    %c0_14 = arith.constant 0 : index
    %28 = vector.load %arg9[%c0_12, %c0_13, %c0_14] : memref<1x128x128xf32, #tpu.memory_space<vmem>>, vector<1x128x128xf32>
    %29 = vector.shape_cast %28 : vector<1x128x128xf32> to vector<128x128xf32>
    %c0_15 = arith.constant 0 : index
    %c0_16 = arith.constant 0 : index
    %c0_17 = arith.constant 0 : index
    %30 = vector.load %arg10[%c0_15, %c0_16, %c0_17] : memref<1x128x32xf32, #tpu.memory_space<vmem>>, vector<1x128x32xf32>
    %31 = vector.shape_cast %30 : vector<1x128x32xf32> to vector<128x32xf32>
    %c0_18 = arith.constant 0 : index
    %c0_19 = arith.constant 0 : index
    %32 = vector.load %arg5[%c0_18, %c0_19] : memref<32x32xbf16, #tpu.memory_space<vmem>>, vector<32x32xbf16>
    %33 = arith.truncf %27 : vector<8x32xf32> to vector<8x32xbf16>
    %cst_20 = arith.constant dense<0.000000e+00> : vector<8x32xf32>
    %34 = tpu.matmul %33, %32, %cst_20 {dimension_numbers = #tpu.dot_dimension_numbers<[1], [0], [0], [1], [0, 0, 1, 1], [], []>} : vector<8x32xbf16>, vector<32x32xbf16>, vector<8x32xf32> -> vector<8x32xf32>
    %c0_21 = arith.constant 0 : index
    %c0_22 = arith.constant 0 : index
    %35 = vector.load %arg6[%c0_21, %c0_22] : memref<32x64xbf16, #tpu.memory_space<vmem>>, vector<32x64xbf16>
    %36 = arith.truncf %31 : vector<128x32xf32> to vector<128x32xbf16>
    %cst_23 = arith.constant dense<0.000000e+00> : vector<128x64xf32>
    %37 = tpu.matmul %36, %35, %cst_23 {dimension_numbers = #tpu.dot_dimension_numbers<[1], [0], [0], [1], [0, 0, 1, 1], [], []>} : vector<128x32xbf16>, vector<32x64xbf16>, vector<128x64xf32> -> vector<128x64xf32>
    %38 = vector.extract_strided_slice %37 {offsets = [0, 0], sizes = [128, 32], strides = [1, 1]} : vector<128x64xf32> to vector<128x32xf32>
    %39 = vector.extract_strided_slice %37 {offsets = [0, 32], sizes = [128, 32], strides = [1, 1]} : vector<128x64xf32> to vector<128x32xf32>
    %40 = arith.mulf %31, %31 : vector<128x32xf32>
    %cst_24 = arith.constant dense<0.000000e+00> : vector<128xf32>
    %41 = vector.multi_reduction <add>, %40, %cst_24 [1] : vector<128x32xf32> to vector<128xf32>
    %42 = vector.shape_cast %41 : vector<128xf32> to vector<128x1xf32>
    %cst_25 = arith.constant 1.000000e-24 : f32
    %43 = vector.broadcast %cst_25 : f32 to vector<128x1xf32>
    %44 = arith.maximumf %42, %43 : vector<128x1xf32>
    %45 = math.rsqrt %44 : vector<128x1xf32>
    %46 = vector.broadcast %45 : vector<128x1xf32> to vector<128x32xf32>
    %47 = arith.mulf %31, %46 : vector<128x32xf32>
    %48 = vector.extract_strided_slice %38 {offsets = [0, 0], sizes = [64, 32], strides = [1, 1]} : vector<128x32xf32> to vector<64x32xf32>
    %49 = vector.extract_strided_slice %39 {offsets = [0, 0], sizes = [64, 32], strides = [1, 1]} : vector<128x32xf32> to vector<64x32xf32>
    %cst_26 = arith.constant dense<0.000000e+00> : vector<32xf32>
    %50 = vector.multi_reduction <add>, %48, %cst_26 [0] : vector<64x32xf32> to vector<32xf32>
    %51 = vector.shape_cast %50 : vector<32xf32> to vector<1x32xf32>
    %cst_27 = arith.constant 6.400000e+01 : f32
    %52 = vector.broadcast %cst_27 : f32 to vector<1x32xf32>
    %53 = arith.divf %51, %52 : vector<1x32xf32>
    %cst_28 = arith.constant dense<0.000000e+00> : vector<32xf32>
    %54 = vector.multi_reduction <add>, %49, %cst_28 [0] : vector<64x32xf32> to vector<32xf32>
    %55 = vector.shape_cast %54 : vector<32xf32> to vector<1x32xf32>
    %cst_29 = arith.constant 6.400000e+01 : f32
    %56 = vector.broadcast %cst_29 : f32 to vector<1x32xf32>
    %57 = arith.divf %55, %56 : vector<1x32xf32>
    %58 = arith.truncf %34 : vector<8x32xf32> to vector<8x32xbf16>
    %59 = arith.truncf %48 : vector<64x32xf32> to vector<64x32xbf16>
    %cst_30 = arith.constant dense<0.000000e+00> : vector<8x64xf32>
    %60 = tpu.matmul %58, %59, %cst_30 {dimension_numbers = #tpu.dot_dimension_numbers<[1], [1], [0], [0], [0, 0, 1, 0], [], []>} : vector<8x32xbf16>, vector<64x32xbf16>, vector<8x64xf32> -> vector<8x64xf32>
    %cst_31 = arith.constant 0.176776692 : f32
    %61 = vector.broadcast %cst_31 : f32 to vector<8x64xf32>
    %62 = arith.mulf %60, %61 : vector<8x64xf32>
    %63 = vector.broadcast %53 : vector<1x32xf32> to vector<8x32xf32>
    %64 = arith.mulf %34, %63 : vector<8x32xf32>
    %cst_32 = arith.constant dense<0.000000e+00> : vector<8xf32>
    %65 = vector.multi_reduction <add>, %64, %cst_32 [1] : vector<8x32xf32> to vector<8xf32>
    %66 = vector.shape_cast %65 : vector<8xf32> to vector<8x1xf32>
    %cst_33 = arith.constant 0.176776692 : f32
    %67 = vector.broadcast %cst_33 : f32 to vector<8x1xf32>
    %68 = arith.mulf %66, %67 : vector<8x1xf32>
    %cst_34 = arith.constant dense<0xFF800000> : vector<8xf32>
    %69 = vector.multi_reduction <maximumf>, %62, %cst_34 [1] : vector<8x64xf32> to vector<8xf32>
    %70 = vector.shape_cast %69 : vector<8xf32> to vector<8x1xf32>
    %71 = arith.maximumf %70, %68 : vector<8x1xf32>
    %72 = vector.broadcast %71 : vector<8x1xf32> to vector<8x64xf32>
    %73 = arith.subf %62, %72 : vector<8x64xf32>
    %74 = math.exp %73 : vector<8x64xf32>
    %75 = arith.subf %68, %71 : vector<8x1xf32>
    %76 = math.exp %75 : vector<8x1xf32>
    %77 = arith.truncf %74 : vector<8x64xf32> to vector<8x64xbf16>
    %78 = arith.truncf %49 : vector<64x32xf32> to vector<64x32xbf16>
    %cst_35 = arith.constant dense<0.000000e+00> : vector<8x32xf32>
    %79 = tpu.matmul %77, %78, %cst_35 {dimension_numbers = #tpu.dot_dimension_numbers<[1], [0], [0], [1], [0, 0, 1, 1], [], []>} : vector<8x64xbf16>, vector<64x32xbf16>, vector<8x32xf32> -> vector<8x32xf32>
    %80 = vector.broadcast %76 : vector<8x1xf32> to vector<8x32xf32>
    %81 = vector.broadcast %57 : vector<1x32xf32> to vector<8x32xf32>
    %82 = arith.mulf %80, %81 : vector<8x32xf32>
    %83 = arith.addf %79, %82 : vector<8x32xf32>
    %cst_36 = arith.constant dense<0.000000e+00> : vector<8xf32>
    %84 = vector.multi_reduction <add>, %74, %cst_36 [1] : vector<8x64xf32> to vector<8xf32>
    %85 = vector.shape_cast %84 : vector<8xf32> to vector<8x1xf32>
    %86 = arith.addf %85, %76 : vector<8x1xf32>
    %87 = vector.broadcast %86 : vector<8x1xf32> to vector<8x32xf32>
    %88 = arith.divf %83, %87 : vector<8x32xf32>
    %c0_37 = arith.constant 0 : index
    %c0_38 = arith.constant 0 : index
    %89 = vector.load %arg8[%c0_37, %c0_38] : memref<1x32xf32, #tpu.memory_space<vmem>>, vector<1x32xf32>
    %c0_39 = arith.constant 0 : index
    %c0_40 = arith.constant 0 : index
    %90 = vector.load %arg7[%c0_39, %c0_40] : memref<32x32xbf16, #tpu.memory_space<vmem>>, vector<32x32xbf16>
    %91 = arith.truncf %88 : vector<8x32xf32> to vector<8x32xbf16>
    %cst_41 = arith.constant dense<0.000000e+00> : vector<8x32xf32>
    %92 = tpu.matmul %91, %90, %cst_41 {dimension_numbers = #tpu.dot_dimension_numbers<[1], [0], [0], [1], [0, 0, 1, 1], [], []>} : vector<8x32xbf16>, vector<32x32xbf16>, vector<8x32xf32> -> vector<8x32xf32>
    %93 = vector.broadcast %89 : vector<1x32xf32> to vector<8x32xf32>
    %94 = arith.mulf %93, %92 : vector<8x32xf32>
    %95 = arith.addf %27, %94 : vector<8x32xf32>
    %96 = vector.extract_strided_slice %47 {offsets = [0, 0], sizes = [64, 32], strides = [1, 1]} : vector<128x32xf32> to vector<64x32xf32>
    %97 = arith.mulf %95, %95 : vector<8x32xf32>
    %cst_42 = arith.constant dense<0.000000e+00> : vector<8xf32>
    %98 = vector.multi_reduction <add>, %97, %cst_42 [1] : vector<8x32xf32> to vector<8xf32>
    %99 = vector.shape_cast %98 : vector<8xf32> to vector<8x1xf32>
    %cst_43 = arith.constant 1.000000e-24 : f32
    %100 = vector.broadcast %cst_43 : f32 to vector<8x1xf32>
    %101 = arith.maximumf %99, %100 : vector<8x1xf32>
    %102 = math.rsqrt %101 : vector<8x1xf32>
    %103 = vector.broadcast %102 : vector<8x1xf32> to vector<8x32xf32>
    %104 = arith.mulf %95, %103 : vector<8x32xf32>
    %105 = arith.truncf %96 : vector<64x32xf32> to vector<64x32xbf16>
    %106 = arith.truncf %104 : vector<8x32xf32> to vector<8x32xbf16>
    %cst_44 = arith.constant dense<0.000000e+00> : vector<64x8xf32>
    %107 = tpu.matmul %105, %106, %cst_44 {dimension_numbers = #tpu.dot_dimension_numbers<[1], [1], [0], [0], [0, 0, 1, 0], [], []>} : vector<64x32xbf16>, vector<8x32xbf16>, vector<64x8xf32> -> vector<64x8xf32>
    %108 = vector.extract_strided_slice %38 {offsets = [64, 0], sizes = [64, 32], strides = [1, 1]} : vector<128x32xf32> to vector<64x32xf32>
    %109 = vector.extract_strided_slice %39 {offsets = [64, 0], sizes = [64, 32], strides = [1, 1]} : vector<128x32xf32> to vector<64x32xf32>
    %cst_45 = arith.constant dense<0.000000e+00> : vector<32xf32>
    %110 = vector.multi_reduction <add>, %108, %cst_45 [0] : vector<64x32xf32> to vector<32xf32>
    %111 = vector.shape_cast %110 : vector<32xf32> to vector<1x32xf32>
    %cst_46 = arith.constant 6.400000e+01 : f32
    %112 = vector.broadcast %cst_46 : f32 to vector<1x32xf32>
    %113 = arith.divf %111, %112 : vector<1x32xf32>
    %cst_47 = arith.constant dense<0.000000e+00> : vector<32xf32>
    %114 = vector.multi_reduction <add>, %109, %cst_47 [0] : vector<64x32xf32> to vector<32xf32>
    %115 = vector.shape_cast %114 : vector<32xf32> to vector<1x32xf32>
    %cst_48 = arith.constant 6.400000e+01 : f32
    %116 = vector.broadcast %cst_48 : f32 to vector<1x32xf32>
    %117 = arith.divf %115, %116 : vector<1x32xf32>
    %118 = arith.truncf %34 : vector<8x32xf32> to vector<8x32xbf16>
    %119 = arith.truncf %108 : vector<64x32xf32> to vector<64x32xbf16>
    %cst_49 = arith.constant dense<0.000000e+00> : vector<8x64xf32>
    %120 = tpu.matmul %118, %119, %cst_49 {dimension_numbers = #tpu.dot_dimension_numbers<[1], [1], [0], [0], [0, 0, 1, 0], [], []>} : vector<8x32xbf16>, vector<64x32xbf16>, vector<8x64xf32> -> vector<8x64xf32>
    %cst_50 = arith.constant 0.176776692 : f32
    %121 = vector.broadcast %cst_50 : f32 to vector<8x64xf32>
    %122 = arith.mulf %120, %121 : vector<8x64xf32>
    %123 = vector.broadcast %113 : vector<1x32xf32> to vector<8x32xf32>
    %124 = arith.mulf %34, %123 : vector<8x32xf32>
    %cst_51 = arith.constant dense<0.000000e+00> : vector<8xf32>
    %125 = vector.multi_reduction <add>, %124, %cst_51 [1] : vector<8x32xf32> to vector<8xf32>
    %126 = vector.shape_cast %125 : vector<8xf32> to vector<8x1xf32>
    %cst_52 = arith.constant 0.176776692 : f32
    %127 = vector.broadcast %cst_52 : f32 to vector<8x1xf32>
    %128 = arith.mulf %126, %127 : vector<8x1xf32>
    %cst_53 = arith.constant dense<0xFF800000> : vector<8xf32>
    %129 = vector.multi_reduction <maximumf>, %122, %cst_53 [1] : vector<8x64xf32> to vector<8xf32>
    %130 = vector.shape_cast %129 : vector<8xf32> to vector<8x1xf32>
    %131 = arith.maximumf %130, %128 : vector<8x1xf32>
    %132 = vector.broadcast %131 : vector<8x1xf32> to vector<8x64xf32>
    %133 = arith.subf %122, %132 : vector<8x64xf32>
    %134 = math.exp %133 : vector<8x64xf32>
    %135 = arith.subf %128, %131 : vector<8x1xf32>
    %136 = math.exp %135 : vector<8x1xf32>
    %137 = arith.truncf %134 : vector<8x64xf32> to vector<8x64xbf16>
    %138 = arith.truncf %109 : vector<64x32xf32> to vector<64x32xbf16>
    %cst_54 = arith.constant dense<0.000000e+00> : vector<8x32xf32>
    %139 = tpu.matmul %137, %138, %cst_54 {dimension_numbers = #tpu.dot_dimension_numbers<[1], [0], [0], [1], [0, 0, 1, 1], [], []>} : vector<8x64xbf16>, vector<64x32xbf16>, vector<8x32xf32> -> vector<8x32xf32>
    %140 = vector.broadcast %136 : vector<8x1xf32> to vector<8x32xf32>
    %141 = vector.broadcast %117 : vector<1x32xf32> to vector<8x32xf32>
    %142 = arith.mulf %140, %141 : vector<8x32xf32>
    %143 = arith.addf %139, %142 : vector<8x32xf32>
    %cst_55 = arith.constant dense<0.000000e+00> : vector<8xf32>
    %144 = vector.multi_reduction <add>, %134, %cst_55 [1] : vector<8x64xf32> to vector<8xf32>
    %145 = vector.shape_cast %144 : vector<8xf32> to vector<8x1xf32>
    %146 = arith.addf %145, %136 : vector<8x1xf32>
    %147 = vector.broadcast %146 : vector<8x1xf32> to vector<8x32xf32>
    %148 = arith.divf %143, %147 : vector<8x32xf32>
    %c0_56 = arith.constant 0 : index
    %c0_57 = arith.constant 0 : index
    %149 = vector.load %arg8[%c0_56, %c0_57] : memref<1x32xf32, #tpu.memory_space<vmem>>, vector<1x32xf32>
    %c0_58 = arith.constant 0 : index
    %c0_59 = arith.constant 0 : index
    %150 = vector.load %arg7[%c0_58, %c0_59] : memref<32x32xbf16, #tpu.memory_space<vmem>>, vector<32x32xbf16>
    %151 = arith.truncf %148 : vector<8x32xf32> to vector<8x32xbf16>
    %cst_60 = arith.constant dense<0.000000e+00> : vector<8x32xf32>
    %152 = tpu.matmul %151, %150, %cst_60 {dimension_numbers = #tpu.dot_dimension_numbers<[1], [0], [0], [1], [0, 0, 1, 1], [], []>} : vector<8x32xbf16>, vector<32x32xbf16>, vector<8x32xf32> -> vector<8x32xf32>
    %153 = vector.broadcast %149 : vector<1x32xf32> to vector<8x32xf32>
    %154 = arith.mulf %153, %152 : vector<8x32xf32>
    %155 = arith.addf %27, %154 : vector<8x32xf32>
    %156 = vector.extract_strided_slice %47 {offsets = [64, 0], sizes = [64, 32], strides = [1, 1]} : vector<128x32xf32> to vector<64x32xf32>
    %157 = arith.mulf %155, %155 : vector<8x32xf32>
    %cst_61 = arith.constant dense<0.000000e+00> : vector<8xf32>
    %158 = vector.multi_reduction <add>, %157, %cst_61 [1] : vector<8x32xf32> to vector<8xf32>
    %159 = vector.shape_cast %158 : vector<8xf32> to vector<8x1xf32>
    %cst_62 = arith.constant 1.000000e-24 : f32
    %160 = vector.broadcast %cst_62 : f32 to vector<8x1xf32>
    %161 = arith.maximumf %159, %160 : vector<8x1xf32>
    %162 = math.rsqrt %161 : vector<8x1xf32>
    %163 = vector.broadcast %162 : vector<8x1xf32> to vector<8x32xf32>
    %164 = arith.mulf %155, %163 : vector<8x32xf32>
    %165 = arith.truncf %156 : vector<64x32xf32> to vector<64x32xbf16>
    %166 = arith.truncf %164 : vector<8x32xf32> to vector<8x32xbf16>
    %cst_63 = arith.constant dense<0.000000e+00> : vector<64x8xf32>
    %167 = tpu.matmul %165, %166, %cst_63 {dimension_numbers = #tpu.dot_dimension_numbers<[1], [1], [0], [0], [0, 0, 1, 0], [], []>} : vector<64x32xbf16>, vector<8x32xbf16>, vector<64x8xf32> -> vector<64x8xf32>
    %168 = tpu.concatenate %107, %167 in 0 : vector<64x8xf32>, vector<64x8xf32> -> vector<128x8xf32>
    %169 = vector.extract_strided_slice %29 {offsets = [0, 64], sizes = [128, 32], strides = [1, 1]} : vector<128x128xf32> to vector<128x32xf32>
    %c0_64 = arith.constant 0 : index
    %c0_65 = arith.constant 0 : index
    %170 = vector.load %arg11[%c0_64, %c0_65] : memref<40x128xbf16, #tpu.memory_space<vmem>>, vector<32x128xbf16>
    %171 = arith.truncf %169 : vector<128x32xf32> to vector<128x32xbf16>
    %cst_66 = arith.constant dense<0.000000e+00> : vector<128x128xf32>
    %172 = tpu.matmul %171, %170, %cst_66 {dimension_numbers = #tpu.dot_dimension_numbers<[1], [0], [0], [1], [0, 0, 1, 1], [], []>} : vector<128x32xbf16>, vector<32x128xbf16>, vector<128x128xf32> -> vector<128x128xf32>
    %c32 = arith.constant 32 : index
    %c0_67 = arith.constant 0 : index
    %173 = vector.load %arg11[%c32, %c0_67] : memref<40x128xbf16, #tpu.memory_space<vmem>>, vector<8x128xbf16>
    %174 = arith.truncf %168 : vector<128x8xf32> to vector<128x8xbf16>
    %cst_68 = arith.constant dense<0.000000e+00> : vector<128x128xf32>
    %175 = tpu.matmul %174, %173, %cst_68 {dimension_numbers = #tpu.dot_dimension_numbers<[1], [0], [0], [1], [0, 0, 1, 1], [], []>} : vector<128x8xbf16>, vector<8x128xbf16>, vector<128x128xf32> -> vector<128x128xf32>
    %176 = arith.addf %172, %175 : vector<128x128xf32>
    %c0_69 = arith.constant 0 : index
    %c0_70 = arith.constant 0 : index
    %177 = vector.load %arg12[%c0_69, %c0_70] : memref<1x128xf32, #tpu.memory_space<vmem>>, vector<1x128xf32>
    %178 = vector.broadcast %177 : vector<1x128xf32> to vector<128x128xf32>
    %179 = arith.addf %176, %178 : vector<128x128xf32>
    %180 = arith.mulf %179, %179 : vector<128x128xf32>
    %181 = arith.mulf %179, %180 : vector<128x128xf32>
    %cst_71 = arith.constant 4.471500e-02 : f32
    %182 = vector.broadcast %cst_71 : f32 to vector<128x128xf32>
    %183 = arith.mulf %182, %181 : vector<128x128xf32>
    %184 = arith.addf %179, %183 : vector<128x128xf32>
    %cst_72 = arith.constant 0.797884583 : f32
    %185 = vector.broadcast %cst_72 : f32 to vector<128x128xf32>
    %186 = arith.mulf %185, %184 : vector<128x128xf32>
    %187 = math.tanh %186 : vector<128x128xf32>
    %cst_73 = arith.constant 1.000000e+00 : f32
    %188 = vector.broadcast %cst_73 : f32 to vector<128x128xf32>
    %189 = arith.addf %188, %187 : vector<128x128xf32>
    %cst_74 = arith.constant 5.000000e-01 : f32
    %190 = vector.broadcast %cst_74 : f32 to vector<128x128xf32>
    %191 = arith.mulf %190, %189 : vector<128x128xf32>
    %192 = arith.mulf %179, %191 : vector<128x128xf32>
    %c0_75 = arith.constant 0 : index
    %c0_76 = arith.constant 0 : index
    %193 = vector.load %arg13[%c0_75, %c0_76] : memref<128x32xbf16, #tpu.memory_space<vmem>>, vector<128x32xbf16>
    %194 = arith.truncf %192 : vector<128x128xf32> to vector<128x128xbf16>
    %cst_77 = arith.constant dense<0.000000e+00> : vector<128x32xf32>
    %195 = tpu.matmul %194, %193, %cst_77 {dimension_numbers = #tpu.dot_dimension_numbers<[1], [0], [0], [1], [0, 0, 1, 1], [], []>} : vector<128x128xbf16>, vector<128x32xbf16>, vector<128x32xf32> -> vector<128x32xf32>
    %c0_78 = arith.constant 0 : index
    %c0_79 = arith.constant 0 : index
    %196 = vector.load %arg14[%c0_78, %c0_79] : memref<1x32xf32, #tpu.memory_space<vmem>>, vector<1x32xf32>
    %197 = vector.broadcast %196 : vector<1x32xf32> to vector<128x32xf32>
    %198 = arith.addf %195, %197 : vector<128x32xf32>
    %199 = vector.extract_strided_slice %29 {offsets = [0, 0], sizes = [128, 64], strides = [1, 1]} : vector<128x128xf32> to vector<128x64xf32>
    %200 = vector.extract_strided_slice %29 {offsets = [0, 96], sizes = [128, 32], strides = [1, 1]} : vector<128x128xf32> to vector<128x32xf32>
    %201 = tpu.concatenate %199, %198, %200 in 1 : vector<128x64xf32>, vector<128x32xf32>, vector<128x32xf32> -> vector<128x128xf32>
    %c0_80 = arith.constant 0 : index
    %c0_81 = arith.constant 0 : index
    %202 = vector.load %arg15[%c0_80, %c0_81] : memref<128x128xbf16, #tpu.memory_space<vmem>>, vector<128x128xbf16>
    %203 = arith.truncf %201 : vector<128x128xf32> to vector<128x128xbf16>
    %cst_82 = arith.constant dense<0.000000e+00> : vector<128x128xf32>
    %204 = tpu.matmul %203, %202, %cst_82 {dimension_numbers = #tpu.dot_dimension_numbers<[1], [0], [0], [1], [0, 0, 1, 1], [], []>} : vector<128x128xbf16>, vector<128x128xbf16>, vector<128x128xf32> -> vector<128x128xf32>
    %c0_83 = arith.constant 0 : index
    %c0_84 = arith.constant 0 : index
    %205 = vector.load %arg16[%c0_83, %c0_84] : memref<1x128xf32, #tpu.memory_space<vmem>>, vector<1x128xf32>
    %206 = vector.broadcast %205 : vector<1x128xf32> to vector<128x128xf32>
    %207 = arith.addf %204, %206 : vector<128x128xf32>
    %208 = arith.mulf %207, %207 : vector<128x128xf32>
    %209 = arith.mulf %207, %208 : vector<128x128xf32>
    %cst_85 = arith.constant 4.471500e-02 : f32
    %210 = vector.broadcast %cst_85 : f32 to vector<128x128xf32>
    %211 = arith.mulf %210, %209 : vector<128x128xf32>
    %212 = arith.addf %207, %211 : vector<128x128xf32>
    %cst_86 = arith.constant 0.797884583 : f32
    %213 = vector.broadcast %cst_86 : f32 to vector<128x128xf32>
    %214 = arith.mulf %213, %212 : vector<128x128xf32>
    %215 = math.tanh %214 : vector<128x128xf32>
    %cst_87 = arith.constant 1.000000e+00 : f32
    %216 = vector.broadcast %cst_87 : f32 to vector<128x128xf32>
    %217 = arith.addf %216, %215 : vector<128x128xf32>
    %cst_88 = arith.constant 5.000000e-01 : f32
    %218 = vector.broadcast %cst_88 : f32 to vector<128x128xf32>
    %219 = arith.mulf %218, %217 : vector<128x128xf32>
    %220 = arith.mulf %207, %219 : vector<128x128xf32>
    %c0_89 = arith.constant 0 : index
    %c0_90 = arith.constant 0 : index
    %221 = vector.load %arg17[%c0_89, %c0_90] : memref<128x32xbf16, #tpu.memory_space<vmem>>, vector<128x32xbf16>
    %222 = arith.truncf %220 : vector<128x128xf32> to vector<128x128xbf16>
    %cst_91 = arith.constant dense<0.000000e+00> : vector<128x32xf32>
    %223 = tpu.matmul %222, %221, %cst_91 {dimension_numbers = #tpu.dot_dimension_numbers<[1], [0], [0], [1], [0, 0, 1, 1], [], []>} : vector<128x128xbf16>, vector<128x32xbf16>, vector<128x32xf32> -> vector<128x32xf32>
    %c0_92 = arith.constant 0 : index
    %c0_93 = arith.constant 0 : index
    %224 = vector.load %arg18[%c0_92, %c0_93] : memref<1x32xf32, #tpu.memory_space<vmem>>, vector<1x32xf32>
    %225 = vector.broadcast %224 : vector<1x32xf32> to vector<128x32xf32>
    %226 = arith.addf %223, %225 : vector<128x32xf32>
    %c0_94 = arith.constant 0 : index
    %c0_95 = arith.constant 0 : index
    %227 = vector.load %arg19[%c0_94, %c0_95] : memref<1x32xf32, #tpu.memory_space<vmem>>, vector<1x32xf32>
    %c0_96 = arith.constant 0 : index
    %c0_97 = arith.constant 0 : index
    %228 = vector.load %arg20[%c0_96, %c0_97] : memref<1x32xf32, #tpu.memory_space<vmem>>, vector<1x32xf32>
    %cst_98 = arith.constant dense<0.000000e+00> : vector<128xf32>
    %229 = vector.multi_reduction <add>, %226, %cst_98 [1] : vector<128x32xf32> to vector<128xf32>
    %230 = vector.shape_cast %229 : vector<128xf32> to vector<128x1xf32>
    %cst_99 = arith.constant 3.200000e+01 : f32
    %231 = vector.broadcast %cst_99 : f32 to vector<128x1xf32>
    %232 = arith.divf %230, %231 : vector<128x1xf32>
    %233 = vector.broadcast %232 : vector<128x1xf32> to vector<128x32xf32>
    %234 = arith.subf %226, %233 : vector<128x32xf32>
    %235 = arith.mulf %234, %234 : vector<128x32xf32>
    %cst_100 = arith.constant dense<0.000000e+00> : vector<128xf32>
    %236 = vector.multi_reduction <add>, %235, %cst_100 [1] : vector<128x32xf32> to vector<128xf32>
    %237 = vector.shape_cast %236 : vector<128xf32> to vector<128x1xf32>
    %cst_101 = arith.constant 3.200000e+01 : f32
    %238 = vector.broadcast %cst_101 : f32 to vector<128x1xf32>
    %239 = arith.divf %237, %238 : vector<128x1xf32>
    %240 = vector.broadcast %232 : vector<128x1xf32> to vector<128x32xf32>
    %241 = arith.subf %226, %240 : vector<128x32xf32>
    %cst_102 = arith.constant 9.99999974E-6 : f32
    %242 = vector.broadcast %cst_102 : f32 to vector<128x1xf32>
    %243 = arith.addf %239, %242 : vector<128x1xf32>
    %244 = math.rsqrt %243 : vector<128x1xf32>
    %245 = vector.broadcast %244 : vector<128x1xf32> to vector<128x32xf32>
    %246 = arith.mulf %241, %245 : vector<128x32xf32>
    %247 = vector.broadcast %227 : vector<1x32xf32> to vector<128x32xf32>
    %248 = arith.mulf %246, %247 : vector<128x32xf32>
    %249 = vector.broadcast %228 : vector<1x32xf32> to vector<128x32xf32>
    %250 = arith.addf %248, %249 : vector<128x32xf32>
    %c0_103 = arith.constant 0 : index
    %c0_104 = arith.constant 0 : index
    %251 = vector.load %arg21[%c0_103, %c0_104] : memref<32x96xbf16, #tpu.memory_space<vmem>>, vector<32x96xbf16>
    %252 = arith.truncf %250 : vector<128x32xf32> to vector<128x32xbf16>
    %cst_105 = arith.constant dense<0.000000e+00> : vector<128x96xf32>
    %253 = tpu.matmul %252, %251, %cst_105 {dimension_numbers = #tpu.dot_dimension_numbers<[1], [0], [0], [1], [0, 0, 1, 1], [], []>} : vector<128x32xbf16>, vector<32x96xbf16>, vector<128x96xf32> -> vector<128x96xf32>
    %254 = vector.extract_strided_slice %253 {offsets = [0, 0], sizes = [64, 32], strides = [1, 1]} : vector<128x96xf32> to vector<64x32xf32>
    %255 = vector.extract_strided_slice %253 {offsets = [0, 32], sizes = [64, 32], strides = [1, 1]} : vector<128x96xf32> to vector<64x32xf32>
    %256 = vector.extract_strided_slice %253 {offsets = [0, 64], sizes = [64, 32], strides = [1, 1]} : vector<128x96xf32> to vector<64x32xf32>
    %257 = vector.extract_strided_slice %253 {offsets = [64, 0], sizes = [64, 32], strides = [1, 1]} : vector<128x96xf32> to vector<64x32xf32>
    %258 = vector.extract_strided_slice %253 {offsets = [64, 32], sizes = [64, 32], strides = [1, 1]} : vector<128x96xf32> to vector<64x32xf32>
    %259 = vector.extract_strided_slice %253 {offsets = [64, 64], sizes = [64, 32], strides = [1, 1]} : vector<128x96xf32> to vector<64x32xf32>
    %260 = arith.truncf %254 : vector<64x32xf32> to vector<64x32xbf16>
    %261 = arith.truncf %258 : vector<64x32xf32> to vector<64x32xbf16>
    %cst_106 = arith.constant dense<0.000000e+00> : vector<64x64xf32>
    %262 = tpu.matmul %260, %261, %cst_106 {dimension_numbers = #tpu.dot_dimension_numbers<[1], [1], [0], [0], [0, 0, 1, 0], [], []>} : vector<64x32xbf16>, vector<64x32xbf16>, vector<64x64xf32> -> vector<64x64xf32>
    %cst_107 = arith.constant 0.176776692 : f32
    %263 = vector.broadcast %cst_107 : f32 to vector<64x64xf32>
    %264 = arith.mulf %262, %263 : vector<64x64xf32>
    %cst_108 = arith.constant dense<0xFF800000> : vector<64xf32>
    %265 = vector.multi_reduction <maximumf>, %264, %cst_108 [1] : vector<64x64xf32> to vector<64xf32>
    %cst_109 = arith.constant 0xFF800000 : f32
    %266 = vector.broadcast %cst_109 : f32 to vector<64xf32>
    %267 = arith.maximumf %266, %265 : vector<64xf32>
    %268 = vector.shape_cast %267 : vector<64xf32> to vector<64x1xf32>
    %269 = vector.broadcast %268 : vector<64x1xf32> to vector<64x64xf32>
    %270 = arith.subf %264, %269 : vector<64x64xf32>
    %271 = math.exp %270 : vector<64x64xf32>
    %cst_110 = arith.constant dense<0.000000e+00> : vector<64xf32>
    %272 = vector.multi_reduction <add>, %271, %cst_110 [1] : vector<64x64xf32> to vector<64xf32>
    %273 = vector.shape_cast %272 : vector<64xf32> to vector<64x1xf32>
    %274 = vector.broadcast %273 : vector<64x1xf32> to vector<64x64xf32>
    %275 = arith.divf %271, %274 : vector<64x64xf32>
    %276 = arith.truncf %275 : vector<64x64xf32> to vector<64x64xbf16>
    %277 = arith.truncf %259 : vector<64x32xf32> to vector<64x32xbf16>
    %cst_111 = arith.constant dense<0.000000e+00> : vector<64x32xf32>
    %278 = tpu.matmul %276, %277, %cst_111 {dimension_numbers = #tpu.dot_dimension_numbers<[1], [0], [0], [1], [0, 0, 1, 1], [], []>} : vector<64x64xbf16>, vector<64x32xbf16>, vector<64x32xf32> -> vector<64x32xf32>
    %279 = arith.truncf %257 : vector<64x32xf32> to vector<64x32xbf16>
    %280 = arith.truncf %255 : vector<64x32xf32> to vector<64x32xbf16>
    %cst_112 = arith.constant dense<0.000000e+00> : vector<64x64xf32>
    %281 = tpu.matmul %279, %280, %cst_112 {dimension_numbers = #tpu.dot_dimension_numbers<[1], [1], [0], [0], [0, 0, 1, 0], [], []>} : vector<64x32xbf16>, vector<64x32xbf16>, vector<64x64xf32> -> vector<64x64xf32>
    %cst_113 = arith.constant 0.176776692 : f32
    %282 = vector.broadcast %cst_113 : f32 to vector<64x64xf32>
    %283 = arith.mulf %281, %282 : vector<64x64xf32>
    %cst_114 = arith.constant dense<0xFF800000> : vector<64xf32>
    %284 = vector.multi_reduction <maximumf>, %283, %cst_114 [1] : vector<64x64xf32> to vector<64xf32>
    %cst_115 = arith.constant 0xFF800000 : f32
    %285 = vector.broadcast %cst_115 : f32 to vector<64xf32>
    %286 = arith.maximumf %285, %284 : vector<64xf32>
    %287 = vector.shape_cast %286 : vector<64xf32> to vector<64x1xf32>
    %288 = vector.broadcast %287 : vector<64x1xf32> to vector<64x64xf32>
    %289 = arith.subf %283, %288 : vector<64x64xf32>
    %290 = math.exp %289 : vector<64x64xf32>
    %cst_116 = arith.constant dense<0.000000e+00> : vector<64xf32>
    %291 = vector.multi_reduction <add>, %290, %cst_116 [1] : vector<64x64xf32> to vector<64xf32>
    %292 = vector.shape_cast %291 : vector<64xf32> to vector<64x1xf32>
    %293 = vector.broadcast %292 : vector<64x1xf32> to vector<64x64xf32>
    %294 = arith.divf %290, %293 : vector<64x64xf32>
    %295 = arith.truncf %294 : vector<64x64xf32> to vector<64x64xbf16>
    %296 = arith.truncf %256 : vector<64x32xf32> to vector<64x32xbf16>
    %cst_117 = arith.constant dense<0.000000e+00> : vector<64x32xf32>
    %297 = tpu.matmul %295, %296, %cst_117 {dimension_numbers = #tpu.dot_dimension_numbers<[1], [0], [0], [1], [0, 0, 1, 1], [], []>} : vector<64x64xbf16>, vector<64x32xbf16>, vector<64x32xf32> -> vector<64x32xf32>
    %298 = tpu.concatenate %278, %297 in 0 : vector<64x32xf32>, vector<64x32xf32> -> vector<128x32xf32>
    %c0_118 = arith.constant 0 : index
    %c0_119 = arith.constant 0 : index
    %299 = vector.load %arg22[%c0_118, %c0_119] : memref<32x32xbf16, #tpu.memory_space<vmem>>, vector<32x32xbf16>
    %300 = arith.truncf %298 : vector<128x32xf32> to vector<128x32xbf16>
    %cst_120 = arith.constant dense<0.000000e+00> : vector<128x32xf32>
    %301 = tpu.matmul %300, %299, %cst_120 {dimension_numbers = #tpu.dot_dimension_numbers<[1], [0], [0], [1], [0, 0, 1, 1], [], []>} : vector<128x32xbf16>, vector<32x32xbf16>, vector<128x32xf32> -> vector<128x32xf32>
    %302 = vector.extract_strided_slice %250 {offsets = [0, 0], sizes = [64, 32], strides = [1, 1]} : vector<128x32xf32> to vector<64x32xf32>
    %303 = vector.extract_strided_slice %301 {offsets = [0, 0], sizes = [64, 32], strides = [1, 1]} : vector<128x32xf32> to vector<64x32xf32>
    %304 = arith.addf %302, %303 : vector<64x32xf32>
    %305 = vector.extract_strided_slice %250 {offsets = [64, 0], sizes = [64, 32], strides = [1, 1]} : vector<128x32xf32> to vector<64x32xf32>
    %306 = arith.addf %304, %305 : vector<64x32xf32>
    %307 = vector.extract_strided_slice %301 {offsets = [64, 0], sizes = [64, 32], strides = [1, 1]} : vector<128x32xf32> to vector<64x32xf32>
    %308 = arith.addf %306, %307 : vector<64x32xf32>
    %c0_121 = arith.constant 0 : index
    %c0_122 = arith.constant 0 : index
    %309 = vector.load %arg23[%c0_121, %c0_122] : memref<4x32xbf16, #tpu.memory_space<vmem>>, vector<4x32xbf16>
    %310 = arith.truncf %308 : vector<64x32xf32> to vector<64x32xbf16>
    %cst_123 = arith.constant dense<0.000000e+00> : vector<4x64xf32>
    %311 = tpu.matmul %309, %310, %cst_123 {dimension_numbers = #tpu.dot_dimension_numbers<[1], [1], [0], [0], [0, 0, 1, 0], [], []>} : vector<4x32xbf16>, vector<64x32xbf16>, vector<4x64xf32> -> vector<4x64xf32>
    %c0_124 = arith.constant 0 : index
    %c0_125 = arith.constant 0 : index
    %312 = vector.load %arg24[%c0_124, %c0_125] : memref<4x1xf32, #tpu.memory_space<vmem>>, vector<4x1xf32>
    %313 = vector.broadcast %312 : vector<4x1xf32> to vector<4x64xf32>
    %314 = arith.addf %311, %313 : vector<4x64xf32>
    %c0_126 = arith.constant 0 : index
    %c0_127 = arith.constant 0 : index
    %c0_128 = arith.constant 0 : index
    %315 = vector.load %arg26[%c0_126, %c0_127, %c0_128] : memref<1x4x64xf32, #tpu.memory_space<vmem>>, vector<1x4x64xf32>
    %316 = vector.shape_cast %315 : vector<1x4x64xf32> to vector<4x64xf32>
    %317 = vector.shape_cast %314 : vector<4x64xf32> to vector<1x4x64xf32>
    tpu.vector_store %arg26[%c0_126, %c0_127, %c0_128], %317 {strides = array<i32>} : memref<1x4x64xf32, #tpu.memory_space<vmem>>, vector<1x4x64xf32>,
    %318 = vector.extract_strided_slice %168 {offsets = [0, 0], sizes = [64, 8], strides = [1, 1]} : vector<128x8xf32> to vector<64x8xf32>
    %319 = vector.extract_strided_slice %168 {offsets = [64, 0], sizes = [64, 8], strides = [1, 1]} : vector<128x8xf32> to vector<64x8xf32>
    %320 = arith.subf %318, %319 : vector<64x8xf32>
    %cst_129 = arith.constant 9.99999997E-7 : f32
    %321 = vector.broadcast %cst_129 : f32 to vector<64x8xf32>
    %322 = arith.addf %320, %321 : vector<64x8xf32>
    %c0_130 = arith.constant 0 : index
    %c0_131 = arith.constant 0 : index
    %323 = vector.load %arg25[%c0_130, %c0_131] : memref<8x64xf32, #tpu.memory_space<vmem>>, vector<8x64xf32>
    %324 = arith.mulf %322, %322 : vector<64x8xf32>
    %cst_132 = arith.constant dense<0.000000e+00> : vector<8x8xf32>
    %325 = tpu.matmul %323, %324, %cst_132 {dimension_numbers = #tpu.dot_dimension_numbers<[1], [0], [0], [1], [0, 0, 1, 1], [], []>} : vector<8x64xf32>, vector<64x8xf32>, vector<8x8xf32> -> vector<8x8xf32>
    %326 = vector.extract_strided_slice %325 {offsets = [0, 0], sizes = [8, 4], strides = [1, 1]} : vector<8x8xf32> to vector<8x4xf32>
    %327 = math.sqrt %326 : vector<8x4xf32>
    %c0_133 = arith.constant 0 : index
    %c0_134 = arith.constant 0 : index
    %c0_135 = arith.constant 0 : index
    %328 = vector.load %arg27[%c0_133, %c0_134, %c0_135] : memref<1x8x4xf32, #tpu.memory_space<vmem>>, vector<1x8x4xf32>
    %329 = vector.shape_cast %328 : vector<1x8x4xf32> to vector<8x4xf32>
    %330 = vector.shape_cast %327 : vector<8x4xf32> to vector<1x8x4xf32>
    tpu.vector_store %arg27[%c0_133, %c0_134, %c0_135], %330 {strides = array<i32>} : memref<1x8x4xf32, #tpu.memory_space<vmem>>, vector<1x8x4xf32>,
    return
  }
  func.func @transform_0(%arg0: i32) -> (i32, i32) {
    %c0_i32 = arith.constant 0 : i32
    %c0_i32_0 = arith.constant 0 : i32
    %c0_i32_1 = arith.constant 0 : i32
    return %c0_i32, %c0_i32_0 : i32, i32
  }
  func.func @transform_1(%arg0: i32) -> (i32, i32) {
    %c0_i32 = arith.constant 0 : i32
    %c0_i32_0 = arith.constant 0 : i32
    %c0_i32_1 = arith.constant 0 : i32
    return %c0_i32, %c0_i32_0 : i32, i32
  }
  func.func @transform_2(%arg0: i32) -> (i32, i32) {
    %c0_i32 = arith.constant 0 : i32
    %c0_i32_0 = arith.constant 0 : i32
    %c0_i32_1 = arith.constant 0 : i32
    return %c0_i32, %c0_i32_0 : i32, i32
  }
  func.func @transform_3(%arg0: i32) -> (i32, i32) {
    %c0_i32 = arith.constant 0 : i32
    %c0_i32_0 = arith.constant 0 : i32
    %c0_i32_1 = arith.constant 0 : i32
    return %c0_i32, %c0_i32_0 : i32, i32
  }
  func.func @transform_4(%arg0: i32) -> (i32, i32) {
    %c0_i32 = arith.constant 0 : i32
    %c0_i32_0 = arith.constant 0 : i32
    %c0_i32_1 = arith.constant 0 : i32
    return %c0_i32, %c0_i32_0 : i32, i32
  }
  func.func @transform_5(%arg0: i32) -> (i32, i32) {
    %c0_i32 = arith.constant 0 : i32
    %c0_i32_0 = arith.constant 0 : i32
    %c0_i32_1 = arith.constant 0 : i32
    return %c0_i32, %c0_i32_0 : i32, i32
  }
  func.func @transform_6(%arg0: i32) -> (i32, i32) {
    %c0_i32 = arith.constant 0 : i32
    %c0_i32_0 = arith.constant 0 : i32
    %c0_i32_1 = arith.constant 0 : i32
    return %c0_i32, %c0_i32_0 : i32, i32
  }
  func.func @transform_7(%arg0: i32) -> (i32, i32) {
    %c0_i32 = arith.constant 0 : i32
    %c0_i32_0 = arith.constant 0 : i32
    %c0_i32_1 = arith.constant 0 : i32
    return %c0_i32, %c0_i32_0 : i32, i32
  }
  func.func @transform_8(%arg0: i32) -> (i32, i32, i32) {
    %c0_i32 = arith.constant 0 : i32
    %c0_i32_0 = arith.constant 0 : i32
    %c0_i32_1 = arith.constant 0 : i32
    return %arg0, %c0_i32, %c0_i32_0 : i32, i32, i32
  }
  func.func @transform_9(%arg0: i32) -> (i32, i32, i32) {
    %c0_i32 = arith.constant 0 : i32
    %c0_i32_0 = arith.constant 0 : i32
    %c0_i32_1 = arith.constant 0 : i32
    return %arg0, %c0_i32, %c0_i32_0 : i32, i32, i32
  }
  func.func @transform_10(%arg0: i32) -> (i32, i32) {
    %c0_i32 = arith.constant 0 : i32
    %c0_i32_0 = arith.constant 0 : i32
    %c0_i32_1 = arith.constant 0 : i32
    return %c0_i32, %c0_i32_0 : i32, i32
  }
  func.func @transform_11(%arg0: i32) -> (i32, i32) {
    %c0_i32 = arith.constant 0 : i32
    %c0_i32_0 = arith.constant 0 : i32
    %c0_i32_1 = arith.constant 0 : i32
    return %c0_i32, %c0_i32_0 : i32, i32
  }
  func.func @transform_12(%arg0: i32) -> (i32, i32) {
    %c0_i32 = arith.constant 0 : i32
    %c0_i32_0 = arith.constant 0 : i32
    %c0_i32_1 = arith.constant 0 : i32
    return %c0_i32, %c0_i32_0 : i32, i32
  }
  func.func @transform_13(%arg0: i32) -> (i32, i32) {
    %c0_i32 = arith.constant 0 : i32
    %c0_i32_0 = arith.constant 0 : i32
    %c0_i32_1 = arith.constant 0 : i32
    return %c0_i32, %c0_i32_0 : i32, i32
  }
  func.func @transform_14(%arg0: i32) -> (i32, i32) {
    %c0_i32 = arith.constant 0 : i32
    %c0_i32_0 = arith.constant 0 : i32
    %c0_i32_1 = arith.constant 0 : i32
    return %c0_i32, %c0_i32_0 : i32, i32
  }
  func.func @transform_15(%arg0: i32) -> (i32, i32) {
    %c0_i32 = arith.constant 0 : i32
    %c0_i32_0 = arith.constant 0 : i32
    %c0_i32_1 = arith.constant 0 : i32
    return %c0_i32, %c0_i32_0 : i32, i32
  }
  func.func @transform_16(%arg0: i32) -> (i32, i32) {
    %c0_i32 = arith.constant 0 : i32
    %c0_i32_0 = arith.constant 0 : i32
    %c0_i32_1 = arith.constant 0 : i32
    return %c0_i32, %c0_i32_0 : i32, i32
  }
  func.func @transform_17(%arg0: i32) -> (i32, i32) {
    %c0_i32 = arith.constant 0 : i32
    %c0_i32_0 = arith.constant 0 : i32
    %c0_i32_1 = arith.constant 0 : i32
    return %c0_i32, %c0_i32_0 : i32, i32
  }
  func.func @transform_18(%arg0: i32) -> (i32, i32) {
    %c0_i32 = arith.constant 0 : i32
    %c0_i32_0 = arith.constant 0 : i32
    %c0_i32_1 = arith.constant 0 : i32
    return %c0_i32, %c0_i32_0 : i32, i32
  }
  func.func @transform_19(%arg0: i32) -> (i32, i32) {
    %c0_i32 = arith.constant 0 : i32
    %c0_i32_0 = arith.constant 0 : i32
    %c0_i32_1 = arith.constant 0 : i32
    return %c0_i32, %c0_i32_0 : i32, i32
  }
  func.func @transform_20(%arg0: i32) -> (i32, i32) {
    %c0_i32 = arith.constant 0 : i32
    %c0_i32_0 = arith.constant 0 : i32
    %c0_i32_1 = arith.constant 0 : i32
    return %c0_i32, %c0_i32_0 : i32, i32
  }
  func.func @transform_21(%arg0: i32) -> (i32, i32) {
    %c0_i32 = arith.constant 0 : i32
    %c0_i32_0 = arith.constant 0 : i32
    %c0_i32_1 = arith.constant 0 : i32
    return %c0_i32, %c0_i32_0 : i32, i32
  }
  func.func @transform_22(%arg0: i32) -> (i32, i32) {
    %c0_i32 = arith.constant 0 : i32
    %c0_i32_0 = arith.constant 0 : i32
    %c0_i32_1 = arith.constant 0 : i32
    return %c0_i32, %c0_i32_0 : i32, i32
  }
  func.func @transform_23(%arg0: i32) -> (i32, i32) {
    %c0_i32 = arith.constant 0 : i32
    %c0_i32_0 = arith.constant 0 : i32
    %c0_i32_1 = arith.constant 0 : i32
    return %c0_i32, %c0_i32_0 : i32, i32
  }
  func.func @transform_24(%arg0: i32) -> (i32, i32) {
    %c0_i32 = arith.constant 0 : i32
    %c0_i32_0 = arith.constant 0 : i32
    %c0_i32_1 = arith.constant 0 : i32
    return %c0_i32, %c0_i32_0 : i32, i32
  }
  func.func @transform_25(%arg0: i32) -> (i32, i32, i32) {
    %c0_i32 = arith.constant 0 : i32
    %c0_i32_0 = arith.constant 0 : i32
    %c0_i32_1 = arith.constant 0 : i32
    return %arg0, %c0_i32, %c0_i32_0 : i32, i32, i32
  }
  func.func @transform_26(%arg0: i32) -> (i32, i32, i32) {
    %c0_i32 = arith.constant 0 : i32
    %c0_i32_0 = arith.constant 0 : i32
    %c0_i32_1 = arith.constant 0 : i32
    return %arg0, %c0_i32, %c0_i32_0 : i32, i32, i32
  }
}

</mosaic_0001>

<bundles_post_ra>
// kernel: pf_change_clip_forward.2
= control target key start
LH: loop header
LB: loop body
LE: loop exit
PB: predicated region body
PF: predicated region fallthrough
CT: control target
= control target key end

     0   :  { %vm166_vm0 = vcmask 392192   ;;  %v1589_v23 = vmov 0   ;;  %vm716_vm1 = vcmask 261120   ;;  %s2580_s1 = inlined_call_operand.vmem [shape: bf16[48,32], index: 1, kind: input, shape index: {}]   ;;  %s2581_s0 = inlined_call_operand.vmem [shape: bf16[256,48], index: 0, kind: input, shape index: {}]   ;;  %s2582_s3 = inlined_call_operand.vmem [shape: bf16[32,160], index: 3, kind: input, shape index: {}]   ;;  %s2583_s2 = inlined_call_operand.vmem [shape: f32[1,32], index: 2, kind: input, shape index: {}]   ;;  %s2584_s4 = inlined_call_operand.vmem [shape: f32[1,160], index: 4, kind: input, shape index: {}]   ;;  %s2585_s6 = inlined_call_operand.vmem [shape: f32[256,32], index: 6, kind: output, shape index: {1}]   ;;  %s2586_s5 = inlined_call_operand.vmem [shape: f32[256,128], index: 5, kind: output, shape index: {0}]  }
   0x1   :  { %v1436_v0 = vld [vmem:[%s2580_s1] sm:$0xff]   ;;  %v1437_v1 = vld [vmem:[%s2580_s1 + $0x8] sm:$0xff]   ;;  %v1438_v3 = vld [vmem:[%s2580_s1 + $0x10] sm:$0xff]   ;;  %827 = vmatprep.mubr.bf16.mxu1 %v1589_v23 }
   0x2   :  { %1393 = vmatprep.subr.bf16.mxu0 %v1436_v0  ;;  %v1439_v2 = vld [vmem:[%s2581_s0] sm:$0xff]   ;;  %v1440_v4 = vld [vmem:[%s2581_s0 + $0x8] sm:$0xff]   ;;  %v1441_v5 = vld [vmem:[%s2581_s0 + $0x10] sm:$0xff]  }
   0x3   :  { %1394 = vmatpush3.bf16.msra.mxu0 %v1436_v0  ;;  %1399 = vmatprep.mubr.msk.bf16.mxu0 %vm166_vm0, %v1439_v2  ;;  %v1442_v6 = vld [vmem:[%s2581_s0 + $0x18] sm:$0xff]   ;;  %v1443_v7 = vld [vmem:[%s2581_s0 + $0x20] sm:$0xff]   ;;  %v1444_v8 = vld [vmem:[%s2581_s0 + $0x28] sm:$0xff]  }
   0x4   :  { %1395 = vmatprep.subr.bf16.mxu0 %v1437_v1  ;;  %v1445_v9 = vld [vmem:[%s2581_s0 + $0x30] sm:$0xff]   ;;  %v1446_v10 = vld [vmem:[%s2581_s0 + $0x38] sm:$0xff]   ;;  %v1447_v11 = vld [vmem:[%s2581_s0 + $0x40] sm:$0xff]  }
   0x5   :  { %v1448_v12 = vld [vmem:[%s2581_s0 + $0x48] sm:$0xff]   ;;  %v1449_v13 = vld [vmem:[%s2581_s0 + $0x50] sm:$0xff]   ;;  %v1450_v14 = vld [vmem:[%s2581_s0 + $0x58] sm:$0xff]  }
   0x6   :  { %v1451_v15 = vld [vmem:[%s2581_s0 + $0x60] sm:$0xff]   ;;  %v1452_v16 = vld [vmem:[%s2581_s0 + $0x68] sm:$0xff]   ;;  %v1453_v17 = vld [vmem:[%s2581_s0 + $0x70] sm:$0xff]  }
   0x7   :  { %1396 = vmatpush3.bf16.msra.mxu0 %v1437_v1  ;;  %v1454_v18 = vld [vmem:[%s2581_s0 + $0x78] sm:$0xff]   ;;  %v1457_v19 = vld [vmem:[%s2582_s3 + $0x4] ss:$8 sps:$4 sm:$0xff]   ;;  %v1455_v20 = vld [vmem:[%s2582_s3] ss:$8 sps:$4 sm:$0xff]  }
   0x8   :  { %1397 = vmatprep.subr.bf16.mxu0 %v1438_v3  ;;  %1431 = vmatprep.subr.bf16.mxu1 %v1457_v19  ;;  %v1460_v21 = vld [vmem:[%s2582_s3 + $0x14] ss:$8 sps:$4 sm:$0xff]   ;;  %v1458_v22 = vld [vmem:[%s2582_s3 + $0x10] ss:$8 sps:$4 sm:$0xff]   ;;  %v1715_v24 = vld [vmem:[%s2583_s2] ss:$0 sm:$0xff] }
   0x9   :  { %1433 = vmatpush1.bf16.msra.mxu1 %v1455_v20 }
   0xa   :  { %1432 = vmatprep.subr.bf16.mxu1 %v1460_v21 }
   0xb   :  { %1398 = vmatpush3.bf16.msra.mxu0 %v1438_v3 }
   0xc   :  { %765 = vmatprep.subr.bf16.mxu0 %v1457_v19 }
   0xd   :  { %1434 = vmatpush1.bf16.msra.mxu1 %v1458_v22 }
   0xe   :  { %1400 = vmatmul.mubr.msk.bf16.vlgmr.msra.gmra.mrb[0].mxu0 %vm166_vm0, %v1440_v4 }
   0xf   :  { %1403 = vmatprep.mubr.msk.bf16.mxu0 %vm166_vm0, %v1441_v5  ;;  %766 = vmatpush1.bf16.msra.mxu0 %v1455_v20 }
  0x10   :  { %767 = vmatprep.subr.bf16.mxu0 %v1460_v21 }
  0x13   :  { %768 = vmatpush1.bf16.msra.mxu0 %v1458_v22 }
  0x16   :  { %1404 = vmatmul.mubr.msk.bf16.gmra.mrb[4].mxu0 %vm166_vm0, %v1442_v6 }
  0x17   :  { %1407 = vmatprep.mubr.msk.bf16.mxu0 %vm166_vm0, %v1443_v7 }
  0x1e   :  { %1408 = vmatmul.mubr.msk.bf16.gmra.mrb[8].mxu0 %vm166_vm0, %v1444_v8 }
  0x1f   :  { %1411 = vmatprep.mubr.msk.bf16.mxu0 %vm166_vm0, %v1445_v9 }
  0x26   :  { %1412 = vmatmul.mubr.msk.bf16.gmra.mrb[12].mxu0 %vm166_vm0, %v1446_v10 }
  0x27   :  { %1415 = vmatprep.mubr.msk.bf16.mxu0 %vm166_vm0, %v1447_v11 }
  0x2e   :  { %1416 = vmatmul.mubr.msk.bf16.gmra.mrb[16].mxu0 %vm166_vm0, %v1448_v12 }
  0x2f   :  { %1419 = vmatprep.mubr.msk.bf16.mxu0 %vm166_vm0, %v1449_v13 }
  0x36   :  { %1420 = vmatmul.mubr.msk.bf16.gmra.mrb[20].mxu0 %vm166_vm0, %v1450_v14 }
  0x37   :  { %1423 = vmatprep.mubr.msk.bf16.mxu0 %vm166_vm0, %v1451_v15 }
  0x3e   :  { %1424 = vmatmul.mubr.msk.bf16.gmra.mrb[24].mxu0 %vm166_vm0, %v1452_v16 }
  0x3f   :  { %1427 = vmatprep.mubr.msk.bf16.mxu0 %vm166_vm0, %v1453_v17 }
  0x46   :  { %1428 = vmatmul.mubr.msk.bf16.gmra.mrb[28].mxu0 %vm166_vm0, %v1454_v18 }
  0x47   :  { %797 = vmatprep.mubr.bf16.mxu0 %v1589_v23 }
  0xe1   :  { %v1401_v25 = vpop.f32.mrb[0].mxu0 }
  0xe2   :  { %v1718_v26 = vadd.f32 %v1401_v25, %v1715_v24  ;;  %v249_v27 = vpop.f32.mrb[1].mxu0 }
  0xe3   :  { %v1721_v28 = vadd.f32 %v1715_v24, %v249_v27  ;;  %v1402_v29 = vpop.f32.mrb[2].mxu0 }
  0xe4   :  { %v378_v30 = vmul.f32 %v1718_v26, %v1718_v26  ;;  %v1726_v31 = vadd.f32 %v1402_v29, %v1715_v24  ;;  %v252_v32 = vpop.f32.mrb[3].mxu0 }
  0xe5   :  { %v376_v33 = vmul.f32 %v1721_v28, %v1721_v28  ;;  %v1731_v34 = vadd.f32 %v1715_v24, %v252_v32 }
  0xe6   :  { %v410_v35 = vmul.f32 %v378_v30, %v1718_v26  ;;  %v379_v36 = vmul.f32 %v1726_v31, %v1726_v31 }
  0xe7   :  { %v408_v37 = vmul.f32 %v376_v33, %v1721_v28  ;;  %v377_v38 = vmul.f32 %v1731_v34, %v1731_v34 }
  0xe8   :  { %v442_v39 = vmul.f32 0.044715, %v410_v35  ;;  %v411_v40 = vmul.f32 %v379_v36, %v1726_v31 }
  0xe9   :  { %v440_v41 = vmul.f32 0.044715, %v408_v37  ;;  %v409_v42 = vmul.f32 %v377_v38, %v1731_v34  ;;  %v1405_v43 = vpop.f32.mrb[4].mxu0 }
  0xea   :  { %v474_v44 = vadd.f32 %v442_v39, %v1718_v26  ;;  %v443_v45 = vmul.f32 0.044715, %v411_v40  ;;  %v1743_v46 = vadd.f32 %v1405_v43, %v1715_v24  ;;  %v265_v47 = vpop.f32.mrb[5].mxu0 }
  0xeb   :  { %v472_v48 = vadd.f32 %v440_v41, %v1721_v28  ;;  %v441_v49 = vmul.f32 0.044715, %v409_v42  ;;  %v1747_v50 = vadd.f32 %v1715_v24, %v265_v47  ;;  %v1406_v51 = vpop.f32.mrb[6].mxu0 }
  0xec   :  { %v506_v52 = vmul.f32 0.7978846, %v474_v44  ;;  %v475_v53 = vadd.f32 %v443_v45, %v1726_v31  ;;  %v382_v54 = vmul.f32 %v1743_v46, %v1743_v46  ;;  %v1753_v55 = vadd.f32 %v1406_v51, %v1715_v24  ;;  %v268_v56 = vpop.f32.mrb[7].mxu0 }
  0xed   :  { %v504_v57 = vmul.f32 0.7978846, %v472_v48  ;;  %v473_v58 = vadd.f32 %v441_v49, %v1731_v34  ;;  %v380_v59 = vmul.f32 %v1747_v50, %v1747_v50  ;;  %v1759_v60 = vadd.f32 %v1715_v24, %v268_v56 }
  0xee   :  { %1461 = vtanh.f32 %v506_v52  ;;  %v507_v61 = vmul.f32 0.7978846, %v475_v53  ;;  %v414_v62 = vmul.f32 %v382_v54, %v1743_v46  ;;  %v383_v63 = vmul.f32 %v1753_v55, %v1753_v55 }
  0xef   :  { %1463 = vtanh.f32 %v504_v57  ;;  %v505_v0 = vmul.f32 0.7978846, %v473_v58  ;;  %v412_v1 = vmul.f32 %v380_v59, %v1747_v50  ;;  %v381_v2 = vmul.f32 %v1759_v60, %v1759_v60 }
  0xf0   :  { %1465 = vtanh.f32 %v507_v61  ;;  %v446_v3 = vmul.f32 0.044715, %v414_v62  ;;  %v415_v4 = vmul.f32 %v383_v63, %v1753_v55 }
  0xf1   :  { %1467 = vtanh.f32 %v505_v0  ;;  %v444_v5 = vmul.f32 0.044715, %v412_v1  ;;  %v413_v6 = vmul.f32 %v381_v2, %v1759_v60  ;;  %v1409_v7 = vpop.f32.mrb[8].mxu0 }
  0xf2   :  { %v478_v8 = vadd.f32 %v446_v3, %v1743_v46  ;;  %v447_v9 = vmul.f32 0.044715, %v415_v4  ;;  %v1771_v10 = vadd.f32 %v1409_v7, %v1715_v24  ;;  %v281_v11 = vpop.f32.mrb[9].mxu0 }
  0xf3   :  { %v476_v12 = vadd.f32 %v444_v5, %v1747_v50  ;;  %v445_v13 = vmul.f32 0.044715, %v413_v6  ;;  %v1775_v14 = vadd.f32 %v1715_v24, %v281_v11  ;;  %v1410_v15 = vpop.f32.mrb[10].mxu0 }
  0xf4   :  { %v510_v16 = vmul.f32 0.7978846, %v478_v8  ;;  %v479_v17 = vadd.f32 %v447_v9, %v1753_v55  ;;  %v386_v18 = vmul.f32 %v1771_v10, %v1771_v10  ;;  %v1781_v19 = vadd.f32 %v1410_v15, %v1715_v24  ;;  %v284_v20 = vpop.f32.mrb[11].mxu0 }
  0xf5   :  { %v508_v21 = vmul.f32 0.7978846, %v476_v12  ;;  %v477_v22 = vadd.f32 %v445_v13, %v1759_v60  ;;  %v384_v25 = vmul.f32 %v1775_v14, %v1775_v14  ;;  %v1787_v27 = vadd.f32 %v1715_v24, %v284_v20 }
  0xf6   :  { %1469 = vtanh.f32 %v510_v16  ;;  %v511_v29 = vmul.f32 0.7978846, %v479_v17  ;;  %v418_v30 = vmul.f32 %v386_v18, %v1771_v10  ;;  %v387_v32 = vmul.f32 %v1781_v19, %v1781_v19 }
  0xf7   :  { %1471 = vtanh.f32 %v508_v21  ;;  %v509_v33 = vmul.f32 0.7978846, %v477_v22  ;;  %v416_v35 = vmul.f32 %v384_v25, %v1775_v14  ;;  %v385_v36 = vmul.f32 %v1787_v27, %v1787_v27 }
  0xf8   :  { %v1462_v37 = vpop.eup %1461  ;;  %1473 = vtanh.f32 %v511_v29  ;;  %v450_v38 = vmul.f32 0.044715, %v418_v30  ;;  %v419_v39 = vmul.f32 %v387_v32, %v1781_v19 }
  0xf9   :  { %v1464_v40 = vpop.eup %1463  ;;  %v570_v41 = vadd.f32 1.0, %v1462_v37  ;;  %1475 = vtanh.f32 %v509_v33  ;;  %v448_v42 = vmul.f32 0.044715, %v416_v35  ;;  %v417_v43 = vmul.f32 %v385_v36, %v1787_v27  ;;  %v1413_v44 = vpop.f32.mrb[12].mxu0 }
  0xfa   :  { %v1466_v45 = vpop.eup %1465  ;;  %v568_v47 = vadd.f32 1.0, %v1464_v40  ;;  %v482_v48 = vadd.f32 %v450_v38, %v1771_v10  ;;  %v451_v49 = vmul.f32 0.044715, %v419_v39  ;;  %v1799_v51 = vadd.f32 %v1413_v44, %v1715_v24  ;;  %v297_v52 = vpop.f32.mrb[13].mxu0 }
  0xfb   :  { %v1468_v53 = vpop.eup %1467  ;;  %v602_v54 = vmul.f32 0.5, %v570_v41  ;;  %v571_v56 = vadd.f32 1.0, %v1466_v45  ;;  %v480_v57 = vadd.f32 %v448_v42, %v1775_v14  ;;  %v449_v58 = vmul.f32 0.044715, %v417_v43  ;;  %v1414_v59 = vpop.f32.mrb[14].mxu0 }
  0xfc   :  { %v600_v61 = vmul.f32 0.5, %v568_v47  ;;  %v569_v62 = vadd.f32 1.0, %v1468_v53  ;;  %v514_v63 = vmul.f32 0.7978846, %v482_v48  ;;  %v483_v0 = vadd.f32 %v451_v49, %v1781_v19  ;;  %v300_v1 = vpop.f32.mrb[15].mxu0 }
  0xfd   :  { %v1804_v2 = vmul.f32 %v602_v54, %v1718_v26  ;;  %v512_v3 = vmul.f32 0.7978846, %v480_v57  ;;  %v481_v4 = vadd.f32 %v449_v58, %v1787_v27  ;;  %v603_v5 = vmul.f32 0.5, %v571_v56 }
  0xfe   :  { %v601_v6 = vmul.f32 0.5, %v569_v62  ;;  %1477 = vtanh.f32 %v514_v63  ;;  %v515_v7 = vmul.f32 0.7978846, %v483_v0  ;;  %v632_v8 = vmul.f32 %v600_v61, %v1721_v28 }
  0xff   :  { %1479 = vtanh.f32 %v512_v3  ;;  %v513_v9 = vmul.f32 0.7978846, %v481_v4  ;;  %v390_v11 = vmul.f32 %v1799_v51, %v1799_v51  ;;  %v1812_v26 = vadd.f32 %v1715_v24, %v297_v52 }
 0x100   :  { %v1470_v12 = vpop.eup %1469  ;;  %v633_v13 = vmul.f32 %v601_v6, %v1731_v34  ;;  %1481 = vtanh.f32 %v515_v7  ;;  %v1815_v15 = vadd.f32 %v1414_v59, %v1715_v24  ;;  %v1819_v18 = vadd.f32 %v1715_v24, %v300_v1 }
 0x101   :  { %v1472_v16 = vpop.eup %1471  ;;  %v574_v17 = vadd.f32 1.0, %v1470_v12  ;;  %1483 = vtanh.f32 %v513_v9  ;;  %v422_v28 = vmul.f32 %v390_v11, %v1799_v51  ;;  %v1417_v20 = vpop.f32.mrb[16].mxu0  ;;  %v388_v34 = vmul.f32 %v1812_v26, %v1812_v26 }
 0x102   :  { %v1474_v21 = vpop.eup %1473  ;;  %v668_v22 = vpack.c.bf16 %v633_v13, %v632_v8  ;;  %v572_v25 = vadd.f32 1.0, %v1472_v16  ;;  %v391_v29 = vmul.f32 %v1815_v15, %v1815_v15  ;;  %v313_v30 = vpop.f32.mrb[17].mxu0  ;;  %v389_v37 = vmul.f32 %v1819_v18, %v1819_v18 }
 0x103   :  { %v1476_v32 = vpop.eup %1475  ;;  %v606_v33 = vmul.f32 0.5, %v574_v17  ;;  %v575_v35 = vadd.f32 1.0, %v1474_v21  ;;  %v454_v36 = vmul.f32 0.044715, %v422_v28  ;;  %v1418_v38 = vpop.f32.mrb[18].mxu0  ;;  %v420_v41 = vmul.f32 %v388_v34, %v1812_v26 }
 0x104   :  { %v604_v39 = vmul.f32 0.5, %v572_v25  ;;  %v573_v40 = vadd.f32 1.0, %v1476_v32  ;;  %v423_v42 = vmul.f32 %v391_v29, %v1815_v15  ;;  %v316_v43 = vpop.f32.mrb[19].mxu0  ;;  %1358 = vmatmul.mubr.msk.bf16.vlgmr.msra.gmra.mrb[32].mxu0 %vm716_vm1, %v668_v22  ;;  %v1831_v44 = vmul.f32 %v603_v5, %v1726_v31 }
 0x105   :  { %v607_v45 = vmul.f32 0.5, %v575_v35  ;;  %v486_v47 = vadd.f32 %v454_v36, %v1799_v51  ;;  %v421_v48 = vmul.f32 %v389_v37, %v1819_v18  ;;  %807 = vmatprep.mubr.bf16.mxu0 %v1589_v23  ;;  %v1837_v49 = vmul.f32 %v606_v33, %v1743_v46 }
 0x106   :  { %v1840_v52 = vmul.f32 %v604_v39, %v1747_v50  ;;  %v452_v53 = vmul.f32 0.044715, %v420_v41  ;;  %v455_v54 = vmul.f32 0.044715, %v423_v42  ;;  %v605_v56 = vmul.f32 0.5, %v573_v40 }
 0x107   :  { %v518_v57 = vmul.f32 0.7978846, %v486_v47  ;;  %v453_v58 = vmul.f32 0.044715, %v421_v48  ;;  %v1843_v31 = vadd.f32 %v1417_v20, %v1715_v24  ;;  %v1846_v61 = vmul.f32 %v607_v45, %v1753_v55 }
 0x108   :  { %v1478_v59 = vpop.eup %1477  ;;  %v484_v62 = vadd.f32 %v452_v53, %v1812_v26  ;;  %v487_v46 = vadd.f32 %v455_v54, %v1815_v15  ;;  %v1851_v63 = vadd.f32 %v1715_v24, %v313_v30  ;;  %v1861_v34 = vmul.f32 %v605_v56, %v1759_v60 }
 0x109   :  { %v1480_v50 = vpop.eup %1479  ;;  %v578_v0 = vadd.f32 1.0, %v1478_v59  ;;  %1485 = vtanh.f32 %v518_v57  ;;  %v485_v1 = vadd.f32 %v453_v58, %v1819_v18  ;;  %v394_v3 = vmul.f32 %v1843_v31, %v1843_v31  ;;  %v1421_v4 = vpop.f32.mrb[20].mxu0 }
 0x10a   :  { %v1482_v5 = vpop.eup %1481  ;;  %v576_v6 = vadd.f32 1.0, %v1480_v50  ;;  %v516_v55 = vmul.f32 0.7978846, %v484_v62  ;;  %v519_v7 = vmul.f32 0.7978846, %v487_v46  ;;  %v392_v8 = vmul.f32 %v1851_v63, %v1851_v63  ;;  %v329_v9 = vpop.f32.mrb[21].mxu0 }
 0x10b   :  { %v1484_v11 = vpop.eup %1483  ;;  %v610_v12 = vmul.f32 0.5, %v578_v0  ;;  %v579_v13 = vadd.f32 1.0, %v1482_v5  ;;  %v517_v16 = vmul.f32 0.7978846, %v485_v1  ;;  %v426_v17 = vmul.f32 %v394_v3, %v1843_v31  ;;  %v1422_v28 = vpop.f32.mrb[22].mxu0 }
 0x10c   :  { %v608_v20 = vmul.f32 0.5, %v576_v6  ;;  %v577_v21 = vadd.f32 1.0, %v1484_v11  ;;  %1487 = vtanh.f32 %v516_v55  ;;  %v424_v22 = vmul.f32 %v392_v8, %v1851_v63  ;;  %v332_v25 = vpop.f32.mrb[23].mxu0 }
 0x10d   :  { %v611_v29 = vmul.f32 0.5, %v579_v13  ;;  %1489 = vtanh.f32 %v519_v7  ;;  %v458_v30 = vmul.f32 0.044715, %v426_v17  ;;  %v1864_v32 = vmul.f32 %v610_v12, %v1771_v10 }
 0x10e   :  { %v1867_v33 = vmul.f32 %v608_v20, %v1775_v14  ;;  %1491 = vtanh.f32 %v517_v16  ;;  %v456_v35 = vmul.f32 0.044715, %v424_v22  ;;  %v609_v36 = vmul.f32 0.5, %v577_v21 }
 0x10f   :  { %v490_v37 = vadd.f32 %v458_v30, %v1843_v31  ;;  %v1871_v39 = vadd.f32 %v1418_v38, %v1715_v24  ;;  %v1874_v60 = vadd.f32 %v1715_v24, %v316_v43  ;;  %v1877_v40 = vmul.f32 %v611_v29, %v1781_v19 }
 0x110   :  { %v488_v10 = vadd.f32 %v456_v35, %v1851_v63  ;;  %v1881_v41 = vadd.f32 %v1421_v4, %v1715_v24  ;;  %v1884_v14 = vadd.f32 %v1715_v24, %v329_v9  ;;  %v1891_v43 = vadd.f32 %v1422_v28, %v1715_v24 }
 0x111   :  { %v522_v42 = vmul.f32 0.7978846, %v490_v37  ;;  %v395_v45 = vmul.f32 %v1871_v39, %v1871_v39  ;;  %v393_v38 = vmul.f32 %v1874_v60, %v1874_v60  ;;  %v1893_v19 = vpop.f32.mrb[24].mxu0  ;;  %v671_v54 = vpack.c.bf16 %v1846_v61, %v1837_v49 }
 0x112   :  { %v520_v47 = vmul.f32 0.7978846, %v488_v10  ;;  %v398_v48 = vmul.f32 %v1881_v41, %v1881_v41  ;;  %v396_v53 = vmul.f32 %v1884_v14, %v1884_v14  ;;  %v1901_v56 = vpop.f32.mrb[25].mxu0  ;;  %v399_v62 = vmul.f32 %v1891_v43, %v1891_v43 }
 0x113   :  { %v1486_v57 = vpop.eup %1485  ;;  %1493 = vtanh.f32 %v522_v42  ;;  %v427_v58 = vmul.f32 %v395_v45, %v1871_v39  ;;  %v425_v59 = vmul.f32 %v393_v38, %v1874_v60  ;;  %v1907_v46 = vpop.f32.mrb[26].mxu0  ;;  %1361 = vmatmul.mubr.msk.bf16.vlgmr.msra.gmra.mrb[0].mxu1 %vm716_vm1, %v671_v54  ;;  %v1914_v5 = vadd.f32 %v1715_v24, %v332_v25 }
 0x114   :  { %v582_v50 = vadd.f32 1.0, %v1486_v57  ;;  %1495 = vtanh.f32 %v520_v47  ;;  %v430_v0 = vmul.f32 %v398_v48, %v1881_v41  ;;  %v428_v1 = vmul.f32 %v396_v53, %v1884_v14  ;;  %v348_v49 = vpop.f32.mrb[27].mxu0  ;;  %837 = vmatprep.mubr.bf16.mxu1 %v1589_v23 }
 0x115   :  { %v459_v61 = vmul.f32 0.044715, %v427_v58  ;;  %v457_v3 = vmul.f32 0.044715, %v425_v59  ;;  %v431_v4 = vmul.f32 %v399_v62, %v1891_v43  ;;  %v669_v9 = vpack.c.bf16 %v1831_v44, %v1804_v2 }
 0x116   :  { %v1488_v6 = vpop.eup %1487  ;;  %v614_v55 = vmul.f32 0.5, %v582_v50  ;;  %v462_v7 = vmul.f32 0.044715, %v430_v0  ;;  %v460_v8 = vmul.f32 0.044715, %v428_v1  ;;  %v641_v20 = vmul.f32 %v609_v36, %v1787_v27 }
 0x117   :  { %v1490_v11 = vpop.eup %1489  ;;  %v580_v12 = vadd.f32 1.0, %v1488_v6  ;;  %v491_v13 = vadd.f32 %v459_v61, %v1871_v39  ;;  %v489_v16 = vadd.f32 %v457_v3, %v1874_v60  ;;  %v463_v17 = vmul.f32 0.044715, %v431_v4  ;;  %1359 = vmatmul.mubr.msk.bf16.gmra.mrb[36].mxu0 %vm716_vm1, %v669_v9 }
 0x118   :  { %v1492_v28 = vpop.eup %1491  ;;  %v583_v21 = vadd.f32 1.0, %v1490_v11  ;;  %v494_v22 = vadd.f32 %v462_v7, %v1881_v41  ;;  %v492_v25 = vadd.f32 %v460_v8, %v1884_v14  ;;  %817 = vmatprep.mubr.bf16.mxu0 %v1589_v23  ;;  %v1927_v35 = vmul.f32 %v614_v55, %v1799_v51 }
 0x119   :  { %v612_v29 = vmul.f32 0.5, %v580_v12  ;;  %v581_v30 = vadd.f32 1.0, %v1492_v28  ;;  %v523_v2 = vmul.f32 0.7978846, %v491_v13  ;;  %v521_v44 = vmul.f32 0.7978846, %v489_v16 }
 0x11a   :  { %v526_v37 = vmul.f32 0.7978846, %v494_v22  ;;  %v524_v10 = vmul.f32 0.7978846, %v492_v25  ;;  %v495_v27 = vadd.f32 %v463_v17, %v1891_v43  ;;  %v1429_v36 = vpop.f32.mrb[28].mxu0  ;;  %v615_v42 = vmul.f32 0.5, %v583_v21 }
 0x11b   :  { %v613_v45 = vmul.f32 0.5, %v581_v30  ;;  %1497 = vtanh.f32 %v523_v2  ;;  %v397_v38 = vmul.f32 %v1914_v5, %v1914_v5  ;;  %v361_v47 = vpop.f32.mrb[29].mxu0  ;;  %v1933_v48 = vmul.f32 %v612_v29, %v1812_v26 }
 0x11c   :  { %1499 = vtanh.f32 %v521_v44  ;;  %v527_v53 = vmul.f32 0.7978846, %v495_v27  ;;  %v670_v51 = vpack.c.bf16 %v1861_v34, %v1840_v52  ;;  %v1430_v54 = vpop.f32.mrb[30].mxu0  ;;  %v672_v62 = vpack.c.bf16 %v641_v20, %v1867_v33 }
 0x11d   :  { %v1494_v57 = vpop.eup %1493  ;;  %v1938_v58 = vmul.f32 %v613_v45, %v1819_v18  ;;  %1501 = vtanh.f32 %v526_v37  ;;  %v429_v59 = vmul.f32 %v397_v38, %v1914_v5  ;;  %v1942_v50 = vpop.f32.mrb[31].mxu0  ;;  %v1946_v1 = vadd.f32 %v1893_v19, %v1715_v24 }
 0x11e   :  { %v1496_v0 = vpop.eup %1495  ;;  %v586_v26 = vadd.f32 1.0, %v1494_v57  ;;  %1503 = vtanh.f32 %v524_v10  ;;  %v1950_v52 = vadd.f32 %v1715_v24, %v1901_v56  ;;  %1362 = vmatmul.mubr.msk.bf16.gmra.mrb[4].mxu1 %vm716_vm1, %v672_v62  ;;  %v1955_v33 = vadd.f32 %v1907_v46, %v1715_v24 }
 0x11f   :  { %v584_v18 = vadd.f32 1.0, %v1496_v0  ;;  %1505 = vtanh.f32 %v527_v53  ;;  %v461_v34 = vmul.f32 0.044715, %v429_v59  ;;  %1360 = vmatmul.mubr.msk.bf16.gmra.mrb[40].mxu0 %vm716_vm1, %v670_v51  ;;  %v402_v19 = vmul.f32 %v1946_v1, %v1946_v1  ;;  %847 = vmatprep.mubr.bf16.mxu1 %v1589_v23 }
 0x120   :  { %v618_v61 = vmul.f32 0.5, %v586_v26  ;;  %v400_v3 = vmul.f32 %v1950_v52, %v1950_v52  ;;  %v1963_v56 = vadd.f32 %v1715_v24, %v348_v49  ;;  %v1967_v4 = vmul.f32 %v615_v42, %v1815_v15 }
 0x121   :  { %v493_v46 = vadd.f32 %v461_v34, %v1914_v5  ;;  %v403_v6 = vmul.f32 %v1955_v33, %v1955_v33  ;;  %v673_v55 = vpack.c.bf16 %v1877_v40, %v1864_v32  ;;  %v616_v7 = vmul.f32 0.5, %v584_v18 }
 0x122   :  { %v434_v8 = vmul.f32 %v402_v19, %v1946_v1  ;;  %v432_v9 = vmul.f32 %v400_v3, %v1950_v52  ;;  %v401_v49 = vmul.f32 %v1963_v56, %v1963_v56  ;;  %v1979_v11 = vmul.f32 %v618_v61, %v1843_v31 }
 0x123   :  { %v525_v15 = vmul.f32 0.7978846, %v493_v46  ;;  %v435_v12 = vmul.f32 %v403_v6, %v1955_v33  ;;  %v674_v13 = vpack.c.bf16 %v1938_v58, %v1933_v48  ;;  %v1986_v40 = vadd.f32 %v1429_v36, %v1715_v24 }
 0x124   :  { %v466_v16 = vmul.f32 0.044715, %v434_v8  ;;  %v464_v17 = vmul.f32 0.044715, %v432_v9  ;;  %v433_v32 = vmul.f32 %v401_v49, %v1963_v56  ;;  %v1989_v21 = vadd.f32 %v1715_v24, %v361_v47 }
 0x125   :  { %v1498_v28 = vpop.eup %1497  ;;  %1507 = vtanh.f32 %v525_v15  ;;  %v467_v20 = vmul.f32 0.044715, %v435_v12  ;;  %v1992_v31 = vadd.f32 %v1430_v54, %v1715_v24  ;;  %v406_v27 = vmul.f32 %v1986_v40, %v1986_v40 }
 0x126   :  { %v1500_v22 = vpop.eup %1499  ;;  %v587_v25 = vadd.f32 1.0, %v1498_v28  ;;  %v498_v29 = vadd.f32 %v466_v16, %v1946_v1  ;;  %v496_v30 = vadd.f32 %v464_v17, %v1950_v52  ;;  %v465_v2 = vmul.f32 0.044715, %v433_v32  ;;  %1363 = vmatmul.mubr.msk.bf16.gmra.mrb[8].mxu1 %vm716_vm1, %v673_v55 }
 0x127   :  { %v1502_v44 = vpop.eup %1501  ;;  %v585_v37 = vadd.f32 1.0, %v1500_v22  ;;  %v499_v10 = vadd.f32 %v467_v20, %v1955_v33  ;;  %v404_v36 = vmul.f32 %v1989_v21, %v1989_v21  ;;  %857 = vmatprep.mubr.bf16.mxu1 %v1589_v23  ;;  %v2005_v59 = vmul.f32 %v616_v7, %v1851_v63 }
 0x128   :  { %v1504_v42 = vpop.eup %1503  ;;  %v619_v45 = vmul.f32 0.5, %v587_v25  ;;  %v590_v38 = vadd.f32 1.0, %v1502_v44  ;;  %v530_v47 = vmul.f32 0.7978846, %v498_v29  ;;  %v528_v48 = vmul.f32 0.7978846, %v496_v30 }
 0x129   :  { %v1506_v53 = vpop.eup %1505  ;;  %v617_v51 = vmul.f32 0.5, %v585_v37  ;;  %v588_v54 = vadd.f32 1.0, %v1504_v42  ;;  %v531_v57 = vmul.f32 0.7978846, %v499_v10  ;;  %v497_v58 = vadd.f32 %v465_v2, %v1963_v56 }
 0x12a   :  { %v622_v62 = vmul.f32 0.5, %v590_v38  ;;  %v591_v0 = vadd.f32 1.0, %v1506_v53  ;;  %1509 = vtanh.f32 %v530_v47  ;;  %v2008_v26 = vmul.f32 %v619_v45, %v1871_v39 }
 0x12b   :  { %v2011_v18 = vmul.f32 %v617_v51, %v1874_v60  ;;  %1511 = vtanh.f32 %v528_v48  ;;  %v529_v34 = vmul.f32 0.7978846, %v497_v58  ;;  %v620_v61 = vmul.f32 0.5, %v588_v54 }
 0x12c   :  { %v623_v19 = vmul.f32 0.5, %v591_v0  ;;  %1513 = vtanh.f32 %v531_v57  ;;  %v438_v3 = vmul.f32 %v406_v27, %v1986_v40  ;;  %v2015_v46 = vmul.f32 %v622_v62, %v1881_v41 }
 0x12d   :  { %1515 = vtanh.f32 %v529_v34  ;;  %v436_v63 = vmul.f32 %v404_v36, %v1989_v21  ;;  %v407_v39 = vmul.f32 %v1992_v31, %v1992_v31  ;;  %v2025_v55 = vadd.f32 %v1715_v24, %v1942_v50 }
 0x12e   :  { %v2021_v6 = vmul.f32 %v623_v19, %v1891_v43  ;;  %v470_v60 = vmul.f32 0.044715, %v438_v3  ;;  %v675_v7 = vpack.c.bf16 %v1967_v4, %v1927_v35  ;;  %1364 = vmatmul.mubr.msk.bf16.gmra.mrb[12].mxu1 %vm716_vm1, %v674_v13  ;;  %v676_v49 = vpack.c.bf16 %v2011_v18, %v2005_v59 }
 0x12f   :  { %v1508_v8 = vpop.eup %1507  ;;  %v468_v41 = vmul.f32 0.044715, %v436_v63  ;;  %v439_v9 = vmul.f32 %v407_v39, %v1992_v31  ;;  %v677_v43 = vpack.c.bf16 %v2008_v26, %v1979_v11  ;;  %v405_v24 = vmul.f32 %v2025_v55, %v2025_v55  ;;  %867 = vmatprep.mubr.bf16.mxu1 %v1589_v23 }
 0x130   :  { %v589_v15 = vadd.f32 1.0, %v1508_v8  ;;  %v502_v12 = vadd.f32 %v470_v60, %v1986_v40  ;;  %v679_v35 = vpack.c.bf16 %v2021_v6, %v2015_v46  ;;  %v652_v20 = vmul.f32 %v620_v61, %v1884_v14  ;;  %v684_v46 = vld [vmem:[%s2584_s4] sm:$0x3] }
 0x131   :  { %v500_v50 = vadd.f32 %v468_v41, %v1989_v21  ;;  %v471_v4 = vmul.f32 0.044715, %v439_v9  ;;  %v437_v17 = vmul.f32 %v405_v24, %v2025_v55 }
 0x132   :  { %v621_v13 = vmul.f32 0.5, %v589_v15  ;;  %v534_v16 = vmul.f32 0.7978846, %v502_v12 }
 0x133   :  { %v532_v32 = vmul.f32 0.7978846, %v500_v50  ;;  %v503_v11 = vadd.f32 %v471_v4, %v1992_v31  ;;  %v469_v25 = vmul.f32 0.044715, %v437_v17 }
 0x134   :  { %v1510_v28 = vpop.eup %1509  ;;  %v653_v22 = vmul.f32 %v621_v13, %v1914_v5  ;;  %1517 = vtanh.f32 %v534_v16 }
 0x135   :  { %v1512_v29 = vpop.eup %1511  ;;  %v594_v30 = vadd.f32 1.0, %v1510_v28  ;;  %1519 = vtanh.f32 %v532_v32  ;;  %v535_v2 = vmul.f32 0.7978846, %v503_v11  ;;  %v501_v10 = vadd.f32 %v469_v25, %v2025_v55 }
 0x136   :  { %v1514_v44 = vpop.eup %1513  ;;  %v592_v37 = vadd.f32 1.0, %v1512_v29  ;;  %v678_v27 = vpack.c.bf16 %v653_v22, %v652_v20  ;;  %1365 = vmatmul.mubr.msk.bf16.gmra.mrb[16].mxu1 %vm716_vm1, %v675_v7 }
 0x137   :  { %v1516_v36 = vpop.eup %1515  ;;  %v626_v42 = vmul.f32 0.5, %v594_v30  ;;  %v595_v45 = vadd.f32 1.0, %v1514_v44  ;;  %1521 = vtanh.f32 %v535_v2  ;;  %v533_v5 = vmul.f32 0.7978846, %v501_v10  ;;  %877 = vmatprep.mubr.bf16.mxu1 %v1589_v23 }
 0x138   :  { %v624_v14 = vmul.f32 0.5, %v592_v37  ;;  %v593_v38 = vadd.f32 1.0, %v1516_v36 }
 0x139   :  { %v658_v47 = vmul.f32 %v626_v42, %v1946_v1  ;;  %v627_v48 = vmul.f32 0.5, %v595_v45  ;;  %1523 = vtanh.f32 %v533_v5 }
 0x13a   :  { %v656_v53 = vmul.f32 %v624_v14, %v1950_v52  ;;  %v625_v51 = vmul.f32 0.5, %v593_v38 }
 0x13b   :  { %v659_v54 = vmul.f32 %v627_v48, %v1955_v33 }
 0x13c   :  { %v657_v57 = vmul.f32 %v625_v51, %v1963_v56 }
 0x13d   :  { %v681_v58 = vpack.c.bf16 %v659_v54, %v658_v47 }
 0x13e   :  { %v1518_v59 = vpop.eup %1517  ;;  %v680_v62 = vpack.c.bf16 %v657_v57, %v656_v53  ;;  %1366 = vmatmul.mubr.msk.bf16.gmra.mrb[20].mxu1 %vm716_vm1, %v676_v49 }
 0x13f   :  { %v1520_v0 = vpop.eup %1519  ;;  %v598_v26 = vadd.f32 1.0, %v1518_v59  ;;  %887 = vmatprep.mubr.bf16.mxu1 %v1589_v23 }
 0x140   :  { %v596_v18 = vadd.f32 1.0, %v1520_v0 }
 0x141   :  { %v1522_v1 = vpop.eup %1521  ;;  %v630_v34 = vmul.f32 0.5, %v598_v26 }
 0x142   :  { %v599_v61 = vadd.f32 1.0, %v1522_v1  ;;  %v628_v52 = vmul.f32 0.5, %v596_v18 }
 0x143   :  { %v1524_v19 = vpop.eup %1523  ;;  %v662_v3 = vmul.f32 %v630_v34, %v1986_v40  ;;  %v686_v40 = vlaneseq }
 0x144   :  { %v631_v33 = vmul.f32 0.5, %v599_v61  ;;  %v597_v63 = vadd.f32 1.0, %v1524_v19  ;;  %v660_v39 = vmul.f32 %v628_v52, %v1989_v21 }
 0x145   :  { %v687_v21 = vshrl.u32 %v686_v40, 7 }
 0x146   :  { %v663_v56 = vmul.f32 %v631_v33, %v1992_v31  ;;  %v629_v60 = vmul.f32 0.5, %v597_v63  ;;  %1367 = vmatmul.mubr.msk.bf16.gmra.mrb[24].mxu1 %vm716_vm1, %v677_v43 }
 0x147   :  { %897 = vmatprep.mubr.bf16.mxu1 %v1589_v23  ;;  %v688_v31 = vsub.s32 0, %v687_v21  ;;  %v692_v6 = vsub.s32 1, %v687_v21 }
 0x148   :  { %v683_v7 = vpack.c.bf16 %v663_v56, %v662_v3  ;;  %v661_v8 = vmul.f32 %v629_v60, %v2025_v55 }
 0x149   :  { %v2078_v55 = vrot.slane %v684_v46, %v688_v31  ;;  %v2080_v9 = vrot.slane %v684_v46, %v692_v6 }
 0x14a   :  { %v682_v41 = vpack.c.bf16 %v661_v8, %v660_v39 }
 0x14e   :  { %1368 = vmatmul.mubr.msk.bf16.gmra.mrb[28].mxu1 %vm716_vm1, %v678_v27 }
 0x14f   :  { %907 = vmatprep.mubr.bf16.mxu1 %v1589_v23 }
 0x156   :  { %1369 = vmatmul.mubr.msk.bf16.gmra.mrb[32].mxu1 %vm716_vm1, %v679_v35 }
 0x157   :  { %917 = vmatprep.mubr.bf16.mxu1 %v1589_v23 }
 0x15e   :  { %1370 = vmatmul.mubr.msk.bf16.gmra.mrb[36].mxu1 %vm716_vm1, %v680_v62 }
 0x15f   :  { %927 = vmatprep.mubr.bf16.mxu1 %v1589_v23 }
 0x166   :  { %1371 = vmatmul.mubr.msk.bf16.gmra.mrb[40].mxu1 %vm716_vm1, %v681_v58 }
 0x167   :  { %937 = vmatprep.mubr.bf16.mxu1 %v1589_v23 }
 0x16e   :  { %1372 = vmatmul.mubr.msk.bf16.gmra.mrb[44].mxu1 %vm716_vm1, %v682_v41 }
 0x16f   :  { %947 = vmatprep.mubr.bf16.mxu1 %v1589_v23 }
 0x176   :  { %1373 = vmatmul.mubr.msk.bf16.gmra.mrb[48].mxu1 %vm716_vm1, %v683_v7 }
 0x1d7   :  { %v799_v49 = vpop.f32.mrb[32].mxu0 }
 0x1d8   :  { %v2083_v43 = vadd.f32 %v799_v49, %v2078_v55  ;;  %v801_v15 = vpop.f32.mrb[33].mxu0 }
 0x1d9   :  { %v802_v23 = vadd.f32 %v801_v15, %v2080_v9  ;;  %v803_v12 = vpop.f32.mrb[34].mxu0 }
 0x1da   :  { %v958_v24 = vmul.f32 %v2083_v43, %v2083_v43  ;;  %v2089_v35 = vadd.f32 %v803_v12, %v2078_v55  ;;  %v805_v50 = vpop.f32.mrb[35].mxu0 }
 0x1db   :  { %1278 = vst.msk [vmem:[%s2585_s6] sm:$0xff] %vm716_vm1, %v802_v23  ;;  %v806_v4 = vadd.f32 %v805_v50, %v2080_v9 }
 0x1dc   :  { %v990_v13 = vmul.f32 %v958_v24, %v2083_v43  ;;  %v959_v16 = vmul.f32 %v2089_v35, %v2089_v35 }
 0x1dd   :  { %1279 = vst.msk [vmem:[%s2585_s6 + $0x8] sm:$0xff] %vm716_vm1, %v806_v4 }
 0x1de   :  { %v1022_v17 = vmul.f32 0.044715, %v990_v13  ;;  %v991_v32 = vmul.f32 %v959_v16, %v2089_v35 }
 0x1e0   :  { %v1054_v11 = vadd.f32 %v1022_v17, %v2083_v43  ;;  %v1023_v28 = vmul.f32 0.044715, %v991_v32 }
 0x1e2   :  { %v1086_v20 = vmul.f32 0.7978846, %v1054_v11  ;;  %v1055_v22 = vadd.f32 %v1023_v28, %v2089_v35 }
 0x1e4   :  { %1525 = vtanh.f32 %v1086_v20  ;;  %v1087_v25 = vmul.f32 0.7978846, %v1055_v22 }
 0x1e6   :  { %1527 = vtanh.f32 %v1087_v25  ;;  %v829_v29 = vpop.f32.mrb[0].mxu1 }
 0x1e7   :  { %v2107_v30 = vadd.f32 %v829_v29, %v2078_v55  ;;  %v831_v2 = vpop.f32.mrb[1].mxu1 }
 0x1e8   :  { %v832_v44 = vadd.f32 %v831_v2, %v2080_v9  ;;  %v833_v37 = vpop.f32.mrb[2].mxu1 }
 0x1e9   :  { %v964_v10 = vmul.f32 %v2107_v30, %v2107_v30  ;;  %v2113_v27 = vadd.f32 %v833_v37, %v2078_v55  ;;  %v835_v36 = vpop.f32.mrb[3].mxu1 }
 0x1ea   :  { %v809_v42 = vpop.f32.mrb[36].mxu0  ;;  %1284 = vst.msk [vmem:[%s2585_s6 + $0x30] sm:$0xff] %vm716_vm1, %v832_v44  ;;  %v836_v45 = vadd.f32 %v835_v36, %v2080_v9 }
 0x1eb   :  { %v996_v14 = vmul.f32 %v964_v10, %v2107_v30  ;;  %v2122_v38 = vadd.f32 %v809_v42, %v2078_v55  ;;  %v811_v5 = vpop.f32.mrb[37].mxu0  ;;  %v965_v47 = vmul.f32 %v2113_v27, %v2113_v27 }
 0x1ec   :  { %v812_v48 = vadd.f32 %v811_v5, %v2080_v9  ;;  %v813_v53 = vpop.f32.mrb[38].mxu0  ;;  %1285 = vst.msk [vmem:[%s2585_s6 + $0x38] sm:$0xff] %vm716_vm1, %v836_v45 }
 0x1ed   :  { %v1028_v54 = vmul.f32 0.044715, %v996_v14  ;;  %v960_v57 = vmul.f32 %v2122_v38, %v2122_v38  ;;  %v997_v58 = vmul.f32 %v965_v47, %v2113_v27  ;;  %v2135_v59 = vadd.f32 %v813_v53, %v2078_v55  ;;  %v815_v62 = vpop.f32.mrb[39].mxu0 }
 0x1ee   :  { %v1526_v51 = vpop.eup %1525  ;;  %1280 = vst.msk [vmem:[%s2585_s6 + $0x10] sm:$0xff] %vm716_vm1, %v812_v48  ;;  %v816_v26 = vadd.f32 %v815_v62, %v2080_v9 }
 0x1ef   :  { %v1150_v0 = vadd.f32 1.0, %v1526_v51  ;;  %v1060_v1 = vadd.f32 %v1028_v54, %v2107_v30  ;;  %v992_v34 = vmul.f32 %v960_v57, %v2122_v38  ;;  %v1029_v61 = vmul.f32 0.044715, %v997_v58 }
 0x1f0   :  { %v1528_v18 = vpop.eup %1527  ;;  %v961_v52 = vmul.f32 %v2135_v59, %v2135_v59  ;;  %1281 = vst.msk [vmem:[%s2585_s6 + $0x18] sm:$0xff] %vm716_vm1, %v816_v26 }
 0x1f1   :  { %v1182_v19 = vmul.f32 0.5, %v1150_v0  ;;  %v1151_v3 = vadd.f32 1.0, %v1528_v18  ;;  %v1092_v33 = vmul.f32 0.7978846, %v1060_v1  ;;  %v1024_v63 = vmul.f32 0.044715, %v992_v34 }
 0x1f2   :  { %v1061_v56 = vadd.f32 %v1029_v61, %v2113_v27  ;;  %v993_v39 = vmul.f32 %v961_v52, %v2135_v59  ;;  %v839_v60 = vpop.f32.mrb[4].mxu1  ;;  %v819_v41 = vpop.f32.mrb[40].mxu0 }
 0x1f3   :  { %v1214_v7 = vmul.f32 %v1182_v19, %v2083_v43  ;;  %v1183_v8 = vmul.f32 0.5, %v1151_v3  ;;  %v2154_v40 = vadd.f32 %v839_v60, %v2078_v55  ;;  %v841_v21 = vpop.f32.mrb[5].mxu1  ;;  %1529 = vtanh.f32 %v1092_v33  ;;  %v821_v49 = vpop.f32.mrb[41].mxu0 }
 0x1f4   :  { %v1056_v31 = vadd.f32 %v1024_v63, %v2122_v38  ;;  %v1093_v46 = vmul.f32 0.7978846, %v1061_v56  ;;  %v1025_v6 = vmul.f32 0.044715, %v993_v39  ;;  %v843_v15 = vpop.f32.mrb[6].mxu1  ;;  %v2162_v43 = vadd.f32 %v819_v41, %v2078_v55  ;;  %v823_v50 = vpop.f32.mrb[42].mxu0 }
 0x1f5   :  { %1246 = vst [vmem:[%s2586_s5] sm:$0xff] %v1214_v7  ;;  %v1215_v23 = vmul.f32 %v1183_v8, %v2089_v35  ;;  %v966_v12 = vmul.f32 %v2154_v40, %v2154_v40  ;;  %v822_v24 = vadd.f32 %v821_v49, %v2080_v9  ;;  %v845_v4 = vpop.f32.mrb[7].mxu1  ;;  %v842_v17 = vadd.f32 %v841_v21, %v2080_v9  ;;  %v825_v32 = vpop.f32.mrb[43].mxu0 }
 0x1f6   :  { %v1088_v13 = vmul.f32 0.7978846, %v1056_v31  ;;  %1531 = vtanh.f32 %v1093_v46  ;;  %v1057_v16 = vadd.f32 %v1025_v6, %v2135_v59  ;;  %v962_v35 = vmul.f32 %v2162_v43, %v2162_v43 }
 0x1f7   :  { %1247 = vst [vmem:[%s2586_s5 + $0x8] sm:$0xff] %v1215_v23  ;;  %v998_v11 = vmul.f32 %v966_v12, %v2154_v40  ;;  %1282 = vst.msk [vmem:[%s2585_s6 + $0x20] sm:$0xff] %vm716_vm1, %v822_v24  ;;  %v2180_v28 = vadd.f32 %v823_v50, %v2078_v55  ;;  %v2183_v20 = vadd.f32 %v843_v15, %v2078_v55 }
 0x1f8   :  { %1533 = vtanh.f32 %v1088_v13  ;;  %v1089_v22 = vmul.f32 0.7978846, %v1057_v16  ;;  %1286 = vst.msk [vmem:[%s2585_s6 + $0x40] sm:$0xff] %vm716_vm1, %v842_v17  ;;  %v826_v25 = vadd.f32 %v825_v32, %v2080_v9  ;;  %v846_v29 = vadd.f32 %v845_v4, %v2080_v9 }
 0x1f9   :  { %v994_v2 = vmul.f32 %v962_v35, %v2162_v43  ;;  %v1030_v44 = vmul.f32 0.044715, %v998_v11  ;;  %v963_v37 = vmul.f32 %v2180_v28, %v2180_v28  ;;  %v967_v10 = vmul.f32 %v2183_v20, %v2183_v20  ;;  %v849_v36 = vpop.f32.mrb[8].mxu1 }
 0x1fa   :  { %1535 = vtanh.f32 %v1089_v22  ;;  %1283 = vst.msk [vmem:[%s2585_s6 + $0x28] sm:$0xff] %vm716_vm1, %v826_v25  ;;  %1287 = vst.msk [vmem:[%s2585_s6 + $0x48] sm:$0xff] %vm716_vm1, %v846_v29  ;;  %v851_v47 = vpop.f32.mrb[9].mxu1  ;;  %v2208_v48 = vadd.f32 %v849_v36, %v2078_v55 }
 0x1fb   :  { %v1026_v42 = vmul.f32 0.044715, %v994_v2  ;;  %v1062_v45 = vadd.f32 %v1030_v44, %v2154_v40  ;;  %v995_v14 = vmul.f32 %v963_v37, %v2180_v28  ;;  %v999_v5 = vmul.f32 %v967_v10, %v2183_v20  ;;  %v853_v51 = vpop.f32.mrb[10].mxu1 }
 0x1fc   :  { %v852_v53 = vadd.f32 %v851_v47, %v2080_v9  ;;  %v968_v26 = vmul.f32 %v2208_v48, %v2208_v48  ;;  %v2219_v18 = vadd.f32 %v853_v51, %v2078_v55  ;;  %v855_v1 = vpop.f32.mrb[11].mxu1 }
 0x1fd   :  { %v1058_v54 = vadd.f32 %v1026_v42, %v2162_v43  ;;  %v1094_v57 = vmul.f32 0.7978846, %v1062_v45  ;;  %v1027_v58 = vmul.f32 0.044715, %v995_v14  ;;  %v1031_v62 = vmul.f32 0.044715, %v999_v5  ;;  %v1530_v0 = vpop.eup %1529 }
 0x1fe   :  { %1288 = vst.msk [vmem:[%s2585_s6 + $0x50] sm:$0xff] %vm716_vm1, %v852_v53  ;;  %v1156_v34 = vadd.f32 1.0, %v1530_v0  ;;  %v1000_v33 = vmul.f32 %v968_v26, %v2208_v48  ;;  %v969_v63 = vmul.f32 %v2219_v18, %v2219_v18  ;;  %v856_v56 = vadd.f32 %v855_v1, %v2080_v9 }
 0x1ff   :  { %v1090_v61 = vmul.f32 0.7978846, %v1058_v54  ;;  %1537 = vtanh.f32 %v1094_v57  ;;  %v1059_v52 = vadd.f32 %v1027_v58, %v2180_v28  ;;  %v1063_v3 = vadd.f32 %v1031_v62, %v2183_v20 }
 0x200   :  { %v1532_v19 = vpop.eup %1531  ;;  %v1188_v39 = vmul.f32 0.5, %v1156_v34  ;;  %v1032_v21 = vmul.f32 0.044715, %v1000_v33  ;;  %v1001_v31 = vmul.f32 %v969_v63, %v2219_v18  ;;  %1289 = vst.msk [vmem:[%s2585_s6 + $0x58] sm:$0xff] %vm716_vm1, %v856_v56 }
 0x201   :  { %v1157_v60 = vadd.f32 1.0, %v1532_v19  ;;  %1539 = vtanh.f32 %v1090_v61  ;;  %v1091_v7 = vmul.f32 0.7978846, %v1059_v52  ;;  %v1095_v41 = vmul.f32 0.7978846, %v1063_v3  ;;  %v859_v46 = vpop.f32.mrb[12].mxu1 }
 0x202   :  { %v1534_v8 = vpop.eup %1533  ;;  %v1220_v6 = vmul.f32 %v1188_v39, %v2107_v30  ;;  %v861_v23 = vpop.f32.mrb[13].mxu1  ;;  %v1064_v24 = vadd.f32 %v1032_v21, %v2208_v48  ;;  %v1033_v50 = vmul.f32 0.044715, %v1001_v31  ;;  %v2235_v4 = vadd.f32 %v859_v46, %v2078_v55 }
 0x203   :  { %v1152_v49 = vadd.f32 1.0, %v1534_v8  ;;  %v1189_v15 = vmul.f32 0.5, %v1157_v60  ;;  %1541 = vtanh.f32 %v1091_v7  ;;  %v863_v13 = vpop.f32.mrb[14].mxu1  ;;  %v862_v32 = vadd.f32 %v861_v23, %v2080_v9 }
 0x204   :  { %v1536_v12 = vpop.eup %1535  ;;  %1543 = vtanh.f32 %v1095_v41  ;;  %1252 = vst [vmem:[%s2586_s5 + $0x30] sm:$0xff] %v1220_v6  ;;  %v865_v35 = vpop.f32.mrb[15].mxu1  ;;  %v1096_v11 = vmul.f32 0.7978846, %v1064_v24  ;;  %v1065_v22 = vadd.f32 %v1033_v50, %v2219_v18  ;;  %v970_v25 = vmul.f32 %v2235_v4, %v2235_v4 }
 0x205   :  { %v1184_v16 = vmul.f32 0.5, %v1152_v49  ;;  %v1221_v30 = vmul.f32 %v1189_v15, %v2113_v27  ;;  %v1153_v17 = vadd.f32 1.0, %v1536_v12  ;;  %v2246_v29 = vadd.f32 %v863_v13, %v2078_v55  ;;  %1290 = vst.msk [vmem:[%s2585_s6 + $0x60] sm:$0xff] %vm716_vm1, %v862_v32 }
 0x206   :  { %v866_v44 = vadd.f32 %v865_v35, %v2080_v9  ;;  %1545 = vtanh.f32 %v1096_v11  ;;  %v1097_v37 = vmul.f32 0.7978846, %v1065_v22  ;;  %v1002_v10 = vmul.f32 %v970_v25, %v2235_v4 }
 0x207   :  { %v1216_v2 = vmul.f32 %v1184_v16, %v2122_v38  ;;  %1253 = vst [vmem:[%s2586_s5 + $0x38] sm:$0xff] %v1221_v30  ;;  %v1185_v27 = vmul.f32 0.5, %v1153_v17  ;;  %v971_v36 = vmul.f32 %v2246_v29, %v2246_v29 }
 0x208   :  { %1291 = vst.msk [vmem:[%s2585_s6 + $0x68] sm:$0xff] %vm716_vm1, %v866_v44  ;;  %1547 = vtanh.f32 %v1097_v37  ;;  %v1034_v14 = vmul.f32 0.044715, %v1002_v10 }
 0x209   :  { %v1538_v38 = vpop.eup %1537  ;;  %1248 = vst [vmem:[%s2586_s5 + $0x10] sm:$0xff] %v1216_v2  ;;  %v1217_v42 = vmul.f32 %v1185_v27, %v2135_v59  ;;  %v1003_v5 = vmul.f32 %v971_v36, %v2246_v29  ;;  %v869_v47 = vpop.f32.mrb[16].mxu1 }
 0x20a   :  { %v1158_v45 = vadd.f32 1.0, %v1538_v38  ;;  %v2273_v51 = vadd.f32 %v869_v47, %v2078_v55  ;;  %v871_v59 = vpop.f32.mrb[17].mxu1  ;;  %v1066_v58 = vadd.f32 %v1034_v14, %v2235_v4 }
 0x20b   :  { %v1540_v53 = vpop.eup %1539  ;;  %1249 = vst [vmem:[%s2586_s5 + $0x18] sm:$0xff] %v1217_v42  ;;  %v1035_v62 = vmul.f32 0.044715, %v1003_v5  ;;  %v873_v0 = vpop.f32.mrb[18].mxu1  ;;  %v872_v34 = vadd.f32 %v871_v59, %v2080_v9 }
 0x20c   :  { %v1154_v54 = vadd.f32 1.0, %v1540_v53  ;;  %v1190_v57 = vmul.f32 0.5, %v1158_v45  ;;  %v972_v1 = vmul.f32 %v2273_v51, %v2273_v51  ;;  %v2280_v61 = vadd.f32 %v873_v0, %v2078_v55  ;;  %v875_v52 = vpop.f32.mrb[19].mxu1 }
 0x20d   :  { %v1542_v26 = vpop.eup %1541  ;;  %v1098_v56 = vmul.f32 0.7978846, %v1066_v58  ;;  %v1067_v60 = vadd.f32 %v1035_v62, %v2246_v29  ;;  %1292 = vst.msk [vmem:[%s2585_s6 + $0x70] sm:$0xff] %vm716_vm1, %v872_v34  ;;  %v876_v21 = vadd.f32 %v875_v52, %v2080_v9 }
 0x20e   :  { %v1544_v19 = vpop.eup %1543  ;;  %v1186_v3 = vmul.f32 0.5, %v1154_v54  ;;  %v1222_v33 = vmul.f32 %v1190_v57, %v2154_v40  ;;  %v1155_v63 = vadd.f32 1.0, %v1542_v26  ;;  %v1004_v7 = vmul.f32 %v972_v1, %v2273_v51 }
 0x20f   :  { %v1159_v39 = vadd.f32 1.0, %v1544_v19  ;;  %v973_v8 = vmul.f32 %v2280_v61, %v2280_v61  ;;  %1549 = vtanh.f32 %v1098_v56  ;;  %v1099_v46 = vmul.f32 0.7978846, %v1067_v60  ;;  %1293 = vst.msk [vmem:[%s2585_s6 + $0x78] sm:$0xff] %vm716_vm1, %v876_v21 }
 0x210   :  { %v1218_v41 = vmul.f32 %v1186_v3, %v2162_v43  ;;  %1254 = vst [vmem:[%s2586_s5 + $0x40] sm:$0xff] %v1222_v33  ;;  %v1187_v40 = vmul.f32 0.5, %v1155_v63  ;;  %v1036_v6 = vmul.f32 0.044715, %v1004_v7  ;;  %v1546_v15 = vpop.eup %1545 }
 0x211   :  { %v1191_v31 = vmul.f32 0.5, %v1159_v39  ;;  %v1005_v49 = vmul.f32 %v973_v8, %v2280_v61  ;;  %v879_v23 = vpop.f32.mrb[20].mxu1  ;;  %v1160_v24 = vadd.f32 1.0, %v1546_v15  ;;  %1551 = vtanh.f32 %v1099_v46 }
 0x212   :  { %1250 = vst [vmem:[%s2586_s5 + $0x20] sm:$0xff] %v1218_v41  ;;  %v1219_v43 = vmul.f32 %v1187_v40, %v2180_v28  ;;  %v1068_v50 = vadd.f32 %v1036_v6, %v2273_v51  ;;  %v881_v13 = vpop.f32.mrb[21].mxu1  ;;  %v1548_v16 = vpop.eup %1547  ;;  %v2311_v28 = vadd.f32 %v879_v23, %v2078_v55 }
 0x213   :  { %v1223_v12 = vmul.f32 %v1191_v31, %v2183_v20  ;;  %v1037_v30 = vmul.f32 0.044715, %v1005_v49  ;;  %v882_v17 = vadd.f32 %v881_v13, %v2080_v9  ;;  %v883_v32 = vpop.f32.mrb[22].mxu1  ;;  %v1192_v20 = vmul.f32 0.5, %v1160_v24 }
 0x214   :  { %1251 = vst [vmem:[%s2586_s5 + $0x28] sm:$0xff] %v1219_v43  ;;  %v1161_v35 = vadd.f32 1.0, %v1548_v16  ;;  %v1100_v11 = vmul.f32 0.7978846, %v1068_v50  ;;  %v2318_v22 = vadd.f32 %v883_v32, %v2078_v55  ;;  %v885_v25 = vpop.f32.mrb[23].mxu1  ;;  %v974_v27 = vmul.f32 %v2311_v28, %v2311_v28 }
 0x215   :  { %1255 = vst [vmem:[%s2586_s5 + $0x48] sm:$0xff] %v1223_v12  ;;  %v1069_v2 = vadd.f32 %v1037_v30, %v2280_v61  ;;  %1294 = vst.msk [vmem:[%s2585_s6 + $0x80] sm:$0xff] %vm716_vm1, %v882_v17  ;;  %v886_v44 = vadd.f32 %v885_v25, %v2080_v9  ;;  %v1224_v37 = vmul.f32 %v1192_v20, %v2208_v48 }
 0x216   :  { %v1193_v10 = vmul.f32 0.5, %v1161_v35  ;;  %1553 = vtanh.f32 %v1100_v11  ;;  %v975_v36 = vmul.f32 %v2318_v22, %v2318_v22  ;;  %v1006_v42 = vmul.f32 %v974_v27, %v2311_v28 }
 0x217   :  { %v1101_v38 = vmul.f32 0.7978846, %v1069_v2  ;;  %1295 = vst.msk [vmem:[%s2585_s6 + $0x88] sm:$0xff] %vm716_vm1, %v886_v44  ;;  %1256 = vst [vmem:[%s2586_s5 + $0x50] sm:$0xff] %v1224_v37 }
 0x218   :  { %v1225_v45 = vmul.f32 %v1193_v10, %v2219_v18  ;;  %v1007_v48 = vmul.f32 %v975_v36, %v2318_v22  ;;  %v1038_v5 = vmul.f32 0.044715, %v1006_v42 }
 0x219   :  { %v1550_v14 = vpop.eup %1549  ;;  %1555 = vtanh.f32 %v1101_v38  ;;  %v889_v47 = vpop.f32.mrb[24].mxu1 }
 0x21a   :  { %1257 = vst [vmem:[%s2586_s5 + $0x58] sm:$0xff] %v1225_v45  ;;  %v1162_v53 = vadd.f32 1.0, %v1550_v14  ;;  %v1039_v59 = vmul.f32 0.044715, %v1007_v48  ;;  %v2345_v54 = vadd.f32 %v889_v47, %v2078_v55  ;;  %v891_v57 = vpop.f32.mrb[25].mxu1  ;;  %v1070_v58 = vadd.f32 %v1038_v5, %v2311_v28 }
 0x21b   :  { %v892_v18 = vadd.f32 %v891_v57, %v2080_v9  ;;  %v893_v62 = vpop.f32.mrb[26].mxu1  ;;  %v1552_v0 = vpop.eup %1551 }
 0x21c   :  { %v1194_v26 = vmul.f32 0.5, %v1162_v53  ;;  %v1071_v1 = vadd.f32 %v1039_v59, %v2318_v22  ;;  %v976_v34 = vmul.f32 %v2345_v54, %v2345_v54  ;;  %v2353_v52 = vadd.f32 %v893_v62, %v2078_v55  ;;  %v895_v19 = vpop.f32.mrb[27].mxu1 }
 0x21d   :  { %v1163_v3 = vadd.f32 1.0, %v1552_v0  ;;  %v1102_v33 = vmul.f32 0.7978846, %v1070_v58  ;;  %1296 = vst.msk [vmem:[%s2585_s6 + $0x90] sm:$0xff] %vm716_vm1, %v892_v18  ;;  %v896_v63 = vadd.f32 %v895_v19, %v2080_v9 }
 0x21e   :  { %v1226_v56 = vmul.f32 %v1194_v26, %v2235_v4  ;;  %v1103_v39 = vmul.f32 0.7978846, %v1071_v1  ;;  %v1008_v60 = vmul.f32 %v976_v34, %v2345_v54  ;;  %v977_v7 = vmul.f32 %v2353_v52, %v2353_v52 }
 0x21f   :  { %v1195_v8 = vmul.f32 0.5, %v1163_v3  ;;  %1557 = vtanh.f32 %v1102_v33  ;;  %1297 = vst.msk [vmem:[%s2585_s6 + $0x98] sm:$0xff] %vm716_vm1, %v896_v63 }
 0x220   :  { %v1554_v41 = vpop.eup %1553  ;;  %1258 = vst [vmem:[%s2586_s5 + $0x60] sm:$0xff] %v1226_v56  ;;  %1559 = vtanh.f32 %v1103_v39  ;;  %v1040_v4 = vmul.f32 0.044715, %v1008_v60  ;;  %v1009_v40 = vmul.f32 %v977_v7, %v2353_v52 }
 0x221   :  { %v1227_v21 = vmul.f32 %v1195_v8, %v2246_v29  ;;  %v1164_v31 = vadd.f32 1.0, %v1554_v41  ;;  %v899_v46 = vpop.f32.mrb[28].mxu1 }
 0x222   :  { %v1072_v6 = vadd.f32 %v1040_v4, %v2345_v54  ;;  %v1041_v49 = vmul.f32 0.044715, %v1009_v40  ;;  %v2375_v15 = vadd.f32 %v899_v46, %v2078_v55  ;;  %v901_v43 = vpop.f32.mrb[29].mxu1 }
 0x223   :  { %v1556_v23 = vpop.eup %1555  ;;  %1259 = vst [vmem:[%s2586_s5 + $0x68] sm:$0xff] %v1227_v21  ;;  %v1196_v12 = vmul.f32 0.5, %v1164_v31  ;;  %v902_v24 = vadd.f32 %v901_v43, %v2080_v9  ;;  %v903_v50 = vpop.f32.mrb[30].mxu1 }
 0x224   :  { %v1165_v13 = vadd.f32 1.0, %v1556_v23  ;;  %v1104_v29 = vmul.f32 0.7978846, %v1072_v6  ;;  %v1073_v16 = vadd.f32 %v1041_v49, %v2353_v52  ;;  %v978_v30 = vmul.f32 %v2375_v15, %v2375_v15  ;;  %v905_v17 = vpop.f32.mrb[31].mxu1 }
 0x225   :  { %v1228_v32 = vmul.f32 %v1196_v12, %v2273_v51  ;;  %1298 = vst.msk [vmem:[%s2585_s6 + $0xa0] sm:$0xff] %vm716_vm1, %v902_v24  ;;  %v2390_v20 = vadd.f32 %v903_v50, %v2078_v55  ;;  %v906_v35 = vadd.f32 %v905_v17, %v2080_v9 }
 0x226   :  { %v1197_v11 = vmul.f32 0.5, %v1165_v13  ;;  %1561 = vtanh.f32 %v1104_v29  ;;  %v1105_v25 = vmul.f32 0.7978846, %v1073_v16  ;;  %v1010_v2 = vmul.f32 %v978_v30, %v2375_v15 }
 0x227   :  { %1260 = vst [vmem:[%s2586_s5 + $0x70] sm:$0xff] %v1228_v32  ;;  %v979_v51 = vmul.f32 %v2390_v20, %v2390_v20  ;;  %1299 = vst.msk [vmem:[%s2585_s6 + $0xa8] sm:$0xff] %vm716_vm1, %v906_v35 }
 0x228   :  { %v1229_v27 = vmul.f32 %v1197_v11, %v2280_v61  ;;  %1563 = vtanh.f32 %v1105_v25  ;;  %v1042_v44 = vmul.f32 0.044715, %v1010_v2 }
 0x229   :  { %v1558_v37 = vpop.eup %1557  ;;  %v1011_v10 = vmul.f32 %v979_v51, %v2390_v20  ;;  %v909_v36 = vpop.f32.mrb[32].mxu1 }
 0x22a   :  { %v1560_v38 = vpop.eup %1559  ;;  %1261 = vst [vmem:[%s2586_s5 + $0x78] sm:$0xff] %v1229_v27  ;;  %v1166_v42 = vadd.f32 1.0, %v1558_v37  ;;  %v1074_v45 = vadd.f32 %v1042_v44, %v2375_v15  ;;  %v2410_v48 = vadd.f32 %v909_v36, %v2078_v55  ;;  %v911_v14 = vpop.f32.mrb[33].mxu1 }
 0x22b   :  { %v1167_v5 = vadd.f32 1.0, %v1560_v38  ;;  %v1043_v61 = vmul.f32 0.044715, %v1011_v10  ;;  %v912_v47 = vadd.f32 %v911_v14, %v2080_v9  ;;  %v913_v53 = vpop.f32.mrb[34].mxu1 }
 0x22c   :  { %v1198_v59 = vmul.f32 0.5, %v1166_v42  ;;  %v1106_v57 = vmul.f32 0.7978846, %v1074_v45  ;;  %v980_v58 = vmul.f32 %v2410_v48, %v2410_v48  ;;  %v2416_v18 = vadd.f32 %v913_v53, %v2078_v55  ;;  %v915_v62 = vpop.f32.mrb[35].mxu1 }
 0x22d   :  { %v1199_v0 = vmul.f32 0.5, %v1167_v5  ;;  %v1075_v26 = vadd.f32 %v1043_v61, %v2390_v20  ;;  %1300 = vst.msk [vmem:[%s2585_s6 + $0xb0] sm:$0xff] %vm716_vm1, %v912_v47  ;;  %v916_v1 = vadd.f32 %v915_v62, %v2080_v9 }
 0x22e   :  { %v1230_v34 = vmul.f32 %v1198_v59, %v2311_v28  ;;  %1565 = vtanh.f32 %v1106_v57  ;;  %v1012_v19 = vmul.f32 %v980_v58, %v2410_v48  ;;  %v981_v3 = vmul.f32 %v2416_v18, %v2416_v18 }
 0x22f   :  { %v1231_v33 = vmul.f32 %v1199_v0, %v2318_v22  ;;  %v1107_v63 = vmul.f32 0.7978846, %v1075_v26  ;;  %1301 = vst.msk [vmem:[%s2585_s6 + $0xb8] sm:$0xff] %vm716_vm1, %v916_v1 }
 0x230   :  { %v1562_v56 = vpop.eup %1561  ;;  %1262 = vst [vmem:[%s2586_s5 + $0x80] sm:$0xff] %v1230_v34  ;;  %v1044_v28 = vmul.f32 0.044715, %v1012_v19  ;;  %v1013_v39 = vmul.f32 %v981_v3, %v2416_v18 }
 0x231   :  { %1263 = vst [vmem:[%s2586_s5 + $0x88] sm:$0xff] %v1231_v33  ;;  %v1168_v60 = vadd.f32 1.0, %v1562_v56  ;;  %1567 = vtanh.f32 %v1107_v63  ;;  %v919_v22 = vpop.f32.mrb[36].mxu1 }
 0x232   :  { %v1564_v7 = vpop.eup %1563  ;;  %v1076_v8 = vadd.f32 %v1044_v28, %v2410_v48  ;;  %v1045_v41 = vmul.f32 0.044715, %v1013_v39  ;;  %v2442_v4 = vadd.f32 %v919_v22, %v2078_v55  ;;  %v921_v40 = vpop.f32.mrb[37].mxu1 }
 0x233   :  { %v1200_v21 = vmul.f32 0.5, %v1168_v60  ;;  %v1169_v31 = vadd.f32 1.0, %v1564_v7  ;;  %v922_v46 = vadd.f32 %v921_v40, %v2080_v9  ;;  %v923_v6 = vpop.f32.mrb[38].mxu1 }
 0x234   :  { %v1108_v49 = vmul.f32 0.7978846, %v1076_v8  ;;  %v1077_v43 = vadd.f32 %v1045_v41, %v2416_v18  ;;  %v982_v23 = vmul.f32 %v2442_v4, %v2442_v4  ;;  %v2449_v12 = vadd.f32 %v923_v6, %v2078_v55  ;;  %v925_v24 = vpop.f32.mrb[39].mxu1 }
 0x235   :  { %v1232_v50 = vmul.f32 %v1200_v21, %v2345_v54  ;;  %v1201_v13 = vmul.f32 0.5, %v1169_v31  ;;  %1302 = vst.msk [vmem:[%s2585_s6 + $0xc0] sm:$0xff] %vm716_vm1, %v922_v46  ;;  %v926_v29 = vadd.f32 %v925_v24, %v2080_v9 }
 0x236   :  { %1569 = vtanh.f32 %v1108_v49  ;;  %v1109_v16 = vmul.f32 0.7978846, %v1077_v43  ;;  %v1014_v30 = vmul.f32 %v982_v23, %v2442_v4  ;;  %v983_v17 = vmul.f32 %v2449_v12, %v2449_v12 }
 0x237   :  { %1264 = vst [vmem:[%s2586_s5 + $0x90] sm:$0xff] %v1232_v50  ;;  %v1233_v54 = vmul.f32 %v1201_v13, %v2353_v52  ;;  %1303 = vst.msk [vmem:[%s2585_s6 + $0xc8] sm:$0xff] %vm716_vm1, %v926_v29 }
 0x238   :  { %v1566_v32 = vpop.eup %1565  ;;  %1571 = vtanh.f32 %v1109_v16  ;;  %v1046_v35 = vmul.f32 0.044715, %v1014_v30  ;;  %v1015_v11 = vmul.f32 %v983_v17, %v2449_v12 }
 0x239   :  { %1265 = vst [vmem:[%s2586_s5 + $0x98] sm:$0xff] %v1233_v54  ;;  %v1170_v25 = vadd.f32 1.0, %v1566_v32  ;;  %v929_v2 = vpop.f32.mrb[40].mxu1 }
 0x23a   :  { %v1078_v51 = vadd.f32 %v1046_v35, %v2442_v4  ;;  %v1047_v27 = vmul.f32 0.044715, %v1015_v11  ;;  %v2474_v52 = vadd.f32 %v929_v2, %v2078_v55  ;;  %v931_v44 = vpop.f32.mrb[41].mxu1 }
 0x23b   :  { %v1568_v37 = vpop.eup %1567  ;;  %v1202_v10 = vmul.f32 0.5, %v1170_v25  ;;  %v932_v36 = vadd.f32 %v931_v44, %v2080_v9  ;;  %v933_v38 = vpop.f32.mrb[42].mxu1 }
 0x23c   :  { %v1171_v42 = vadd.f32 1.0, %v1568_v37  ;;  %v1110_v45 = vmul.f32 0.7978846, %v1078_v51  ;;  %v1079_v14 = vadd.f32 %v1047_v27, %v2449_v12  ;;  %v984_v5 = vmul.f32 %v2474_v52, %v2474_v52  ;;  %v935_v61 = vpop.f32.mrb[43].mxu1 }
 0x23d   :  { %v1234_v47 = vmul.f32 %v1202_v10, %v2375_v15  ;;  %1304 = vst.msk [vmem:[%s2585_s6 + $0xd0] sm:$0xff] %vm716_vm1, %v932_v36  ;;  %v2486_v53 = vadd.f32 %v933_v38, %v2078_v55  ;;  %v936_v59 = vadd.f32 %v935_v61, %v2080_v9 }
 0x23e   :  { %v1203_v57 = vmul.f32 0.5, %v1171_v42  ;;  %1573 = vtanh.f32 %v1110_v45  ;;  %v1111_v58 = vmul.f32 0.7978846, %v1079_v14  ;;  %v1016_v62 = vmul.f32 %v984_v5, %v2474_v52 }
 0x23f   :  { %1266 = vst [vmem:[%s2586_s5 + $0xa0] sm:$0xff] %v1234_v47  ;;  %v985_v15 = vmul.f32 %v2486_v53, %v2486_v53  ;;  %1305 = vst.msk [vmem:[%s2585_s6 + $0xd8] sm:$0xff] %vm716_vm1, %v936_v59 }
 0x240   :  { %v1570_v0 = vpop.eup %1569  ;;  %v1235_v26 = vmul.f32 %v1203_v57, %v2390_v20  ;;  %1575 = vtanh.f32 %v1111_v58  ;;  %v1048_v1 = vmul.f32 0.044715, %v1016_v62 }
 0x241   :  { %v1172_v34 = vadd.f32 1.0, %v1570_v0  ;;  %v1017_v19 = vmul.f32 %v985_v15, %v2486_v53  ;;  %v939_v3 = vpop.f32.mrb[44].mxu1 }
 0x242   :  { %v1572_v33 = vpop.eup %1571  ;;  %1267 = vst [vmem:[%s2586_s5 + $0xa8] sm:$0xff] %v1235_v26  ;;  %v1080_v63 = vadd.f32 %v1048_v1, %v2474_v52  ;;  %v2506_v56 = vadd.f32 %v939_v3, %v2078_v55  ;;  %v941_v28 = vpop.f32.mrb[45].mxu1 }
 0x243   :  { %v1204_v39 = vmul.f32 0.5, %v1172_v34  ;;  %v1173_v60 = vadd.f32 1.0, %v1572_v33  ;;  %v1049_v20 = vmul.f32 0.044715, %v1017_v19  ;;  %v942_v22 = vadd.f32 %v941_v28, %v2080_v9  ;;  %v943_v7 = vpop.f32.mrb[46].mxu1 }
 0x244   :  { %v1112_v8 = vmul.f32 0.7978846, %v1080_v63  ;;  %v986_v41 = vmul.f32 %v2506_v56, %v2506_v56  ;;  %v2512_v40 = vadd.f32 %v943_v7, %v2078_v55  ;;  %v945_v21 = vpop.f32.mrb[47].mxu1 }
 0x245   :  { %v1236_v31 = vmul.f32 %v1204_v39, %v2410_v48  ;;  %v1205_v46 = vmul.f32 0.5, %v1173_v60  ;;  %v1081_v6 = vadd.f32 %v1049_v20, %v2486_v53  ;;  %1306 = vst.msk [vmem:[%s2585_s6 + $0xe0] sm:$0xff] %vm716_vm1, %v942_v22  ;;  %v946_v49 = vadd.f32 %v945_v21, %v2080_v9 }
 0x246   :  { %1577 = vtanh.f32 %v1112_v8  ;;  %v1018_v43 = vmul.f32 %v986_v41, %v2506_v56  ;;  %v987_v23 = vmul.f32 %v2512_v40, %v2512_v40 }
 0x247   :  { %1268 = vst [vmem:[%s2586_s5 + $0xb0] sm:$0xff] %v1236_v31  ;;  %v1237_v48 = vmul.f32 %v1205_v46, %v2416_v18  ;;  %v1113_v24 = vmul.f32 0.7978846, %v1081_v6  ;;  %1307 = vst.msk [vmem:[%s2585_s6 + $0xe8] sm:$0xff] %vm716_vm1, %v946_v49 }
 0x248   :  { %v1574_v50 = vpop.eup %1573  ;;  %v1050_v13 = vmul.f32 0.044715, %v1018_v43  ;;  %v1019_v29 = vmul.f32 %v987_v23, %v2512_v40 }
 0x249   :  { %1269 = vst [vmem:[%s2586_s5 + $0xb8] sm:$0xff] %v1237_v48  ;;  %v1174_v16 = vadd.f32 1.0, %v1574_v50  ;;  %1579 = vtanh.f32 %v1113_v24  ;;  %v949_v30 = vpop.f32.mrb[48].mxu1 }
 0x24a   :  { %v1576_v17 = vpop.eup %1575  ;;  %v1082_v18 = vadd.f32 %v1050_v13, %v2506_v56  ;;  %v1051_v54 = vmul.f32 0.044715, %v1019_v29  ;;  %v950_v32 = vadd.f32 %v949_v30, %v2078_v55  ;;  %v951_v35 = vpop.f32.mrb[49].mxu1 }
 0x24b   :  { %v1206_v11 = vmul.f32 0.5, %v1174_v16  ;;  %v1175_v25 = vadd.f32 1.0, %v1576_v17  ;;  %v952_v2 = vadd.f32 %v951_v35, %v2080_v9  ;;  %v953_v51 = vpop.f32.mrb[50].mxu1 }
 0x24c   :  { %v1114_v27 = vmul.f32 0.7978846, %v1082_v18  ;;  %v1083_v44 = vadd.f32 %v1051_v54, %v2512_v40  ;;  %v988_v37 = vmul.f32 %v950_v32, %v950_v32  ;;  %v954_v10 = vadd.f32 %v953_v51, %v2078_v55  ;;  %v955_v36 = vpop.f32.mrb[51].mxu1 }
 0x24d   :  { %v1238_v38 = vmul.f32 %v1206_v11, %v2442_v4  ;;  %v1207_v42 = vmul.f32 0.5, %v1175_v25  ;;  %1308 = vst.msk [vmem:[%s2585_s6 + $0xf0] sm:$0xff] %vm716_vm1, %v952_v2  ;;  %v956_v45 = vadd.f32 %v955_v36, %v2080_v9 }
 0x24e   :  { %1581 = vtanh.f32 %v1114_v27  ;;  %v1115_v14 = vmul.f32 0.7978846, %v1083_v44  ;;  %v1020_v5 = vmul.f32 %v988_v37, %v950_v32  ;;  %v989_v61 = vmul.f32 %v954_v10, %v954_v10 }
 0x24f   :  { %1270 = vst [vmem:[%s2586_s5 + $0xc0] sm:$0xff] %v1238_v38  ;;  %v1239_v55 = vmul.f32 %v1207_v42, %v2449_v12  ;;  %1309 = vst.msk [vmem:[%s2585_s6 + $0xf8] sm:$0xff] %vm716_vm1, %v956_v45 }
 0x250   :  { %v1578_v4 = vpop.eup %1577  ;;  %1583 = vtanh.f32 %v1115_v14  ;;  %v1052_v47 = vmul.f32 0.044715, %v1020_v5  ;;  %v1021_v59 = vmul.f32 %v989_v61, %v954_v10 }
 0x251   :  { %1271 = vst [vmem:[%s2586_s5 + $0xc8] sm:$0xff] %v1239_v55  ;;  %v1176_v9 = vadd.f32 1.0, %v1578_v4 }
 0x252   :  { %v1084_v57 = vadd.f32 %v1052_v47, %v950_v32  ;;  %v1053_v58 = vmul.f32 0.044715, %v1021_v59 }
 0x253   :  { %v1580_v62 = vpop.eup %1579  ;;  %v1208_v15 = vmul.f32 0.5, %v1176_v9 }
 0x254   :  { %v1177_v0 = vadd.f32 1.0, %v1580_v62  ;;  %v1116_v12 = vmul.f32 0.7978846, %v1084_v57  ;;  %v1085_v26 = vadd.f32 %v1053_v58, %v954_v10 }
 0x255   :  { %v1240_v1 = vmul.f32 %v1208_v15, %v2474_v52 }
 0x256   :  { %v1209_v34 = vmul.f32 0.5, %v1177_v0  ;;  %1585 = vtanh.f32 %v1116_v12  ;;  %v1117_v19 = vmul.f32 0.7978846, %v1085_v26 }
 0x257   :  { %1272 = vst [vmem:[%s2586_s5 + $0xd0] sm:$0xff] %v1240_v1 }
 0x258   :  { %v1582_v3 = vpop.eup %1581  ;;  %v1241_v33 = vmul.f32 %v1209_v34, %v2486_v53  ;;  %1587 = vtanh.f32 %v1117_v19 }
 0x259   :  { %v1178_v63 = vadd.f32 1.0, %v1582_v3 }
 0x25a   :  { %v1584_v28 = vpop.eup %1583  ;;  %1273 = vst [vmem:[%s2586_s5 + $0xd8] sm:$0xff] %v1241_v33 }
 0x25b   :  { %v1210_v39 = vmul.f32 0.5, %v1178_v63  ;;  %v1179_v60 = vadd.f32 1.0, %v1584_v28 }
 0x25d   :  { %v1242_v52 = vmul.f32 %v1210_v39, %v2506_v56  ;;  %v1211_v20 = vmul.f32 0.5, %v1179_v60 }
 0x25f   :  { %1274 = vst [vmem:[%s2586_s5 + $0xe0] sm:$0xff] %v1242_v52  ;;  %v1243_v22 = vmul.f32 %v1211_v20, %v2512_v40 }
 0x260   :  { %v1586_v7 = vpop.eup %1585 }
 0x261   :  { %1275 = vst [vmem:[%s2586_s5 + $0xe8] sm:$0xff] %v1243_v22  ;;  %v1180_v53 = vadd.f32 1.0, %v1586_v7 }
 0x262   :  { %v1588_v8 = vpop.eup %1587 }
 0x263   :  { %v1212_v41 = vmul.f32 0.5, %v1180_v53  ;;  %v1181_v21 = vadd.f32 1.0, %v1588_v8 }
 0x265   :  { %v1244_v31 = vmul.f32 %v1212_v41, %v950_v32  ;;  %v1213_v46 = vmul.f32 0.5, %v1181_v21 }
 0x267   :  { %1276 = vst [vmem:[%s2586_s5 + $0xf0] sm:$0xff] %v1244_v31  ;;  %v1245_v56 = vmul.f32 %v1213_v46, %v954_v10 }
 0x269   :  { %1277 = vst [vmem:[%s2586_s5 + $0xf8] sm:$0xff] %v1245_v56 }

// kernel: pf_change_clip_forward.3
= control target key start
LH: loop header
LB: loop body
LE: loop exit
PB: predicated region body
PF: predicated region fallthrough
CT: control target
= control target key end

     0   :  { %s5848_s27 = smov 0   ;;  %s7397_s0 = inlined_call_operand.vmem [shape: f32[8,32], index: 0, kind: input, shape index: {}]   ;;  %s7398_s1 = inlined_call_operand.vmem [shape: f32[1,32], index: 1, kind: input, shape index: {}]   ;;  %s7399_s2 = inlined_call_operand.vmem [shape: f32[1,32], index: 2, kind: input, shape index: {}]   ;;  %s7400_s3 = inlined_call_operand.vmem [shape: bf16[32,32], index: 3, kind: input, shape index: {}]   ;;  %s7401_s4 = inlined_call_operand.vmem [shape: bf16[32,32], index: 4, kind: input, shape index: {}]   ;;  %s7402_s5 = inlined_call_operand.vmem [shape: bf16[32,64], index: 5, kind: input, shape index: {}]   ;;  %s7403_s6 = inlined_call_operand.vmem [shape: bf16[32,32], index: 6, kind: input, shape index: {}]   ;;  %s7404_s7 = inlined_call_operand.vmem [shape: f32[1,32], index: 7, kind: input, shape index: {}]   ;;  %s7405_s8 = inlined_call_operand.vmem [shape: f32[2,128,128], index: 8, kind: input, shape index: {}]   ;;  %s7406_s9 = inlined_call_operand.vmem [shape: f32[2,128,32], index: 9, kind: input, shape index: {}]   ;;  %s7407_s10 = inlined_call_operand.vmem [shape: bf16[40,128], index: 10, kind: input, shape index: {}]   ;;  %s7408_s11 = inlined_call_operand.vmem [shape: f32[1,128], index: 11, kind: input, shape index: {}]   ;;  %s7409_s12 = inlined_call_operand.vmem [shape: bf16[128,32], index: 12, kind: input, shape index: {}]   ;;  %s7410_s13 = inlined_call_operand.vmem [shape: f32[1,32], index: 13, kind: input, shape index: {}]   ;;  %s7411_s14 = inlined_call_operand.vmem [shape: bf16[128,128], index: 14, kind: input, shape index: {}]   ;;  %s7412_s15 = inlined_call_operand.vmem [shape: f32[1,128], index: 15, kind: input, shape index: {}]   ;;  %s7413_s16 = inlined_call_operand.vmem [shape: bf16[128,32], index: 16, kind: input, shape index: {}]   ;;  %s7414_s17 = inlined_call_operand.vmem [shape: f32[1,32], index: 17, kind: input, shape index: {}]   ;;  %s7415_s18 = inlined_call_operand.vmem [shape: f32[1,32], index: 18, kind: input, shape index: {}]   ;;  %s7416_s19 = inlined_call_operand.vmem [shape: f32[1,32], index: 19, kind: input, shape index: {}]   ;;  %s7417_s20 = inlined_call_operand.vmem [shape: bf16[32,96], index: 20, kind: input, shape index: {}]   ;;  %s7418_s21 = inlined_call_operand.vmem [shape: bf16[32,32], index: 21, kind: input, shape index: {}]   ;;  %s7419_s22 = inlined_call_operand.vmem [shape: bf16[4,32], index: 22, kind: input, shape index: {}]   ;;  %s7420_s23 = inlined_call_operand.vmem [shape: f32[4,1], index: 23, kind: input, shape index: {}]   ;;  %s7421_s24 = inlined_call_operand.vmem [shape: f32[8,64], index: 24, kind: input, shape index: {}]   ;;  %s7422_s25 = inlined_call_operand.vmem [shape: f32[2,4,64], index: 25, kind: output, shape index: {0}]   ;;  %s7423_s26 = inlined_call_operand.vmem [shape: f32[2,8,4], index: 26, kind: output, shape index: {1}]  }
   0x1   :  { %7436 = sst [smem:[#allocation2_spill]] %s7397_s0 }
   0x2   :  { %7437 = sst [smem:[#allocation3_spill]] %s7398_s1 }
   0x3   :  { %7438 = sst [smem:[#allocation4_spill]] %s7399_s2 }
   0x4   :  { %7439 = sst [smem:[#allocation5_spill]] %s7400_s3 }
   0x5   :  { %7440 = sst [smem:[#allocation6_spill]] %s7401_s4 }
   0x6   :  { %7441 = sst [smem:[#allocation7_spill]] %s7402_s5 }
   0x7   :  { %7442 = sst [smem:[#allocation8_spill]] %s7403_s6 }
   0x8   :  { %7443 = sst [smem:[#allocation9_spill]] %s7404_s7 }
   0x9   :  { %7444 = sst [smem:[#allocation10_spill]] %s7405_s8 }
   0xa   :  { %7445 = sst [smem:[#allocation11_spill]] %s7406_s9 }
   0xb   :  { %7446 = sst [smem:[#allocation12_spill]] %s7407_s10 }
   0xc LB: > { %s4610_s3 = sadd.s32 4294967295, %s5705_s27   ;;  %p4614_p0 = scmp.ge.s32.totalorder %s5705_s27, 1  ;;  %s5705_s27 = sphi %s5848_s27, %s37_s27  }
   0xd   : > { %p725_p1 = scmp.lt.s32.totalorder %s5705_s27, 3 }
   0xf   : > { %p726_p2 = pnand %p4614_p0, %p725_p1 }
  0x10   : > { %s7447_s8 = sld [smem:[#allocation2_spill]] (!%p726_p2)  ;;  %vm825_vm0 = vcmask (!%p726_p2), 261120   ;;  %s7448_s0 = sld [smem:[#allocation5_spill]] (!%p726_p2)  ;;  %v7434_v8 = vmov (!%p726_p2), 0.0   ;;  %vm5708_vm1 = vmmov (!%p726_p2), 0   ;;  %vm1286_vm2 = vcmask (!%p726_p2), 523520  }
  0x11   : > { %729 = sbr.rel (%p726_p2) target bundleno = 5641 (0x1609), region = 120  ;;  %4931 = vmatprep.subr.bf16.mxu1 (!%p726_p2), %v7434_v8  ;;  %4935 = vmatprep.mubr.msk.bf16.mxu1 (!%p726_p2), %vm5708_vm1, %v7434_v8  ;;  %s7449_s10 = sld [smem:[#allocation7_spill]] (!%p726_p2)  ;;  %vm1375_vm3 = vcmask (!%p726_p2), 523264   ;;  %vm1989_vm4 = vcmask (!%p726_p2), 1043456   ;;  %vm1964_vm5 = vcmask (!%p726_p2), 64512   ;;  %vm2670_vm6 = vcmask (!%p726_p2), 785408  }
  0x12   : > { %p803_p3 = scmp.lt.s32.totalorder (!%p726_p2), %s4610_s3, 1  ;;  %s7450_s4 = sld [smem:[#allocation11_spill]] (!%p726_p2)  ;;  %vm4512_vm9 = vcmask (!%p726_p2), 31744   ;;  %vm4405_vm10 = vcmask (!%p726_p2), 519168  }
  0x13   : > { %s7451_s2 = sld [smem:[#allocation3_spill]] (!%p726_p2)  ;;  %s7452_s1 = sld [smem:[#allocation4_spill]] (!%p726_p2) }
  0x14   : > { %s7455_s5 = sld [smem:[#allocation9_spill]] (!%p726_p2)  ;;  %s7459_s28 = smov (!%p726_p2), 96  }
  0x16   : > { %v822_v0 = vld [vmem:[%s7447_s8] sm:$0xff] (!%p726_p2)  ;;  %v5440_v9 = vld [vmem:[%s7448_s0 + $0x8] sm:$0xff] (!%p726_p2)   ;;  %s7456_s8 = sld [smem:[#allocation12_spill]] (!%p726_p2) }
  0x17   : > { %v826_v1 = vsel (!%p726_p2), %vm825_vm0, %v822_v0, 0.0  ;;  %v5439_v7 = vld [vmem:[%s7448_s0] sm:$0xff] (!%p726_p2)   ;;  %v5442_v11 = vld [vmem:[%s7449_s10 + $0x8] sm:$0xff] (!%p726_p2)  }
  0x18   : > { %827 = vadd.xlane.f32.xlu0 %v826_v1  ;;  %4932 = vmatpush3.bf16.msra.mxu1 %v5439_v7  ;;  %v5441_v10 = vld [vmem:[%s7449_s10] sm:$0xff]   ;;  %s7466_s3 = smov (!%p803_p3, %s4610_s3), 1 }
  0x19   : > { %4933 = vmatprep.subr.bf16.mxu1 %v7434_v8  ;;  %4947 = vmatprep.subr.bf16.mxu0 %v5441_v10  ;;  %s4744_s7 = sshll.u32 %s7466_s3, 7  ;;  %v4621_v40 = vld [vmem:[%s7451_s2] ss:$0 sm:$0xff]  ;;  %s7429_s2 = smov 96  }
  0x1a   : > { %4948 = vmatpush3.bf16.msra.mxu0 %v5441_v10  ;;  %s5890_s29 = scalar_lea.vmem %s7450_s4, %s4744_s7  ;;  %v4622_v42 = vld [vmem:[%s7452_s1] ss:$0 sm:$0xff]  ;;  %s7453_s4 = sld [smem:[#allocation6_spill]] }
  0x1b   : > { %4949 = vmatprep.subr.bf16.mxu0 %v5442_v11  ;;  %v5893_v12 = vld [vmem:[%s5890_s29] sm:$0xff]  ;;  %v5896_v13 = vld [vmem:[%s5890_s29 + $0x8] sm:$0xff]  ;;  %v5899_v14 = vld [vmem:[%s5890_s29 + $0x10] sm:$0xff]  ;;  %s7454_s1 = sld [smem:[#allocation8_spill]]  ;;  %s4620_s9 = sshll.u32 %s7466_s3, 3 }
  0x1c   : > { %4934 = vmatpush3.bf16.msra.mxu1 %v5440_v9  ;;  %v1010_v15 = vpack.c.bf16 %v5896_v13, %v5893_v12  ;;  %v5904_v16 = vld [vmem:[%s5890_s29 + $0x18] sm:$0xff]  ;;  %v5907_v17 = vld [vmem:[%s5890_s29 + $0x20] sm:$0xff]  ;;  %v5910_v18 = vld [vmem:[%s5890_s29 + $0x28] sm:$0xff]  ;;  %s4619_s0 = sshll.u32 %s7466_s3, 2 }
  0x1d   : > { %4939 = vmatprep.subr.bf16.mxu1 %v7434_v8  ;;  %v1011_v19 = vpack.c.bf16 %v5904_v16, %v5899_v14  ;;  %v1012_v20 = vpack.c.bf16 %v5910_v18, %v5907_v17  ;;  %v5921_v21 = vld [vmem:[%s5890_s29 + $0x30] sm:$0xff]  ;;  %v5924_v22 = vld [vmem:[%s5890_s29 + $0x38] sm:$0xff]  ;;  %v5927_v23 = vld [vmem:[%s5890_s29 + $0x40] sm:$0xff] }
  0x1e   : > { %4950 = vmatpush3.bf16.msra.mxu0 %v5442_v11  ;;  %4951 = vmatprep.mubr.msk.bf16.mxu0 %vm825_vm0, %v1010_v15  ;;  %v5930_v24 = vld [vmem:[%s5890_s29 + $0x48] sm:$0xff]  ;;  %v1013_v25 = vpack.c.bf16 %v5924_v22, %v5921_v21  ;;  %v5939_v27 = vld [vmem:[%s5890_s29 + $0x50] sm:$0xff]  ;;  %v5942_v28 = vld [vmem:[%s5890_s29 + $0x58] sm:$0xff] }
  0x1f   : > { %4979 = vmatprep.subr.bf16.mxu0 %v7434_v8  ;;  %v1014_v26 = vpack.c.bf16 %v5930_v24, %v5927_v23  ;;  %v5945_v29 = vld [vmem:[%s5890_s29 + $0x60] sm:$0xff]  ;;  %v5948_v30 = vld [vmem:[%s5890_s29 + $0x68] sm:$0xff]  ;;  %v1015_v31 = vpack.c.bf16 %v5942_v28, %v5939_v27  ;;  %v5957_v33 = vld [vmem:[%s5890_s29 + $0x70] sm:$0xff] }
  0x20   : > { %v1016_v32 = vpack.c.bf16 %v5948_v30, %v5945_v29  ;;  %v5960_v34 = vld [vmem:[%s5890_s29 + $0x78] sm:$0xff]  ;;  %v5443_v45 = vld [vmem:[%s7453_s4] sm:$0xff]   ;;  %v5444_v47 = vld [vmem:[%s7453_s4 + $0x8] sm:$0xff]  }
  0x21   : > { %4952 = vmatmul.mubr.msk.bf16.vlgmr.msra.gmra.mrb[0].mxu0 %vm825_vm0, %v1011_v19  ;;  %v1017_v35 = vpack.c.bf16 %v5960_v34, %v5957_v33 }
  0x22   : > { %4955 = vmatprep.mubr.msk.bf16.mxu0 %vm825_vm0, %v1012_v20 }
  0x29   : > { %4956 = vmatmul.mubr.msk.bf16.gmra.mrb[4].mxu0 %vm825_vm0, %v1013_v25 }
  0x2a   : > { %4959 = vmatprep.mubr.msk.bf16.mxu0 %vm825_vm0, %v1014_v26 }
  0x31   : > { %4960 = vmatmul.mubr.msk.bf16.gmra.mrb[8].mxu0 %vm825_vm0, %v1015_v31 }
  0x32   : > { %4963 = vmatprep.mubr.msk.bf16.mxu0 %vm825_vm0, %v1016_v32 }
  0x39   : > { %4964 = vmatmul.mubr.msk.bf16.gmra.mrb[12].mxu0 %vm825_vm0, %v1017_v35 }
  0x3a   : > { %4987 = vmatprep.mubr.msk.bf16.mxu0 %vm5708_vm1, %v7434_v8 }
  0xa5   : > { %v828_v2 = vpop.xlane.xlu0 %827 }
  0xa6   : > { %v830_v3 = vmul.f32 0.03125, %v828_v2 }
  0xa8   : > { %v5860_v4 = vsub.f32 %v822_v0, %v830_v3 }
  0xaa   : > { %v832_v5 = vmul.f32 %v5860_v4, %v5860_v4 }
  0xac   : > { %v833_v6 = vsel %vm825_vm0, %v832_v5, 0.0 }
  0xad   : > { %834 = vadd.xlane.f32.xlu0 %v833_v6 }
  0xf4   : > { %v4953_v48 = vpop.f32.mrb[0].mxu0 }
  0xf5   : > { %v1088_v49 = vpop.f32.mrb[1].mxu0  ;;  %v1266_v53 = vsel %vm825_vm0, %v4953_v48, 0.0  ;;  %v1290_v56 = vsel %vm1286_vm2, %v4953_v48, 0.0 }
  0xf6   : > { %v1263_v50 = vsel %vm825_vm0, %v1088_v49, 0.0  ;;  %v1287_v51 = vsel %vm1286_vm2, %v1088_v49, 0.0  ;;  %v4954_v52 = vpop.f32.mrb[2].mxu0 }
  0xf7   : > { %v1091_v54 = vpop.f32.mrb[3].mxu0  ;;  %v5988_v55 = vpack.c.bf16 %v4954_v52, %v4953_v48  ;;  %v1268_v62 = vsel %vm825_vm0, %v4954_v52, 0.0  ;;  %v1292_v63 = vsel %vm1286_vm2, %v4954_v52, 0.0 }
  0xf8   : > { %v1264_v57 = vsel %vm825_vm0, %v1091_v54, 0.0  ;;  %v1288_v58 = vsel %vm1286_vm2, %v1091_v54, 0.0  ;;  %v5993_v59 = vpack.c.bf16 %v1091_v54, %v1088_v49 }
  0xf9   : > { %v1265_v60 = vadd.f32 %v1264_v57, %v1263_v50  ;;  %v1289_v61 = vadd.f32 %v1288_v58, %v1287_v51  ;;  %1394 = vrot.lane.b32.xlu1 %v5988_v55, %s7429_s2 }
  0xfa   : > { %1392 = vrot.lane.b32.xlu0 %v5993_v59, %s7429_s2 }
  0xfb   : > { %v1267_v0 = vadd.f32 %v1266_v53, %v1265_v60  ;;  %v1291_v1 = vadd.f32 %v1290_v56, %v1289_v61 }
  0xfc   : > { %v4957_v2 = vpop.f32.mrb[4].mxu0 }
  0xfd   : > { %v1104_v3 = vpop.f32.mrb[5].mxu0  ;;  %v1293_v5 = vadd.f32 %v1292_v63, %v1291_v1  ;;  %v1274_v10 = vsel %vm825_vm0, %v4957_v2, 0.0  ;;  %v1298_v11 = vsel %vm1286_vm2, %v4957_v2, 0.0 }
  0xfe   : > { %v1270_v6 = vsel %vm825_vm0, %v1104_v3, 0.0  ;;  %v1294_v7 = vsel %vm1286_vm2, %v1104_v3, 0.0  ;;  %v4958_v9 = vpop.f32.mrb[6].mxu0 }
  0xff   : > { %v1295_v19 = vadd.f32 %v1294_v7, %v1293_v5  ;;  %v1107_v20 = vpop.f32.mrb[7].mxu0  ;;  %v6005_v25 = vpack.c.bf16 %v4958_v9, %v4957_v2 }
 0x100   : > { %v1272_v26 = vsel %vm825_vm0, %v1107_v20, 0.0  ;;  %v1296_v31 = vsel %vm1286_vm2, %v1107_v20, 0.0  ;;  %v6009_v32 = vpack.c.bf16 %v1107_v20, %v1104_v3 }
 0x102   : > { %1396 = vrot.lane.b32.xlu1 %v6009_v32, %s7429_s2 }
 0x13a   : > { %v835_v36 = vpop.xlane.xlu0 %834 }
 0x13b   : > { %v836_v37 = vmul.f32 0.03125, %v835_v36  ;;  %v1297_v36 = vadd.f32 %v1296_v31, %v1295_v19 }
 0x13d   : > { %v837_v38 = vadd.f32 1e-05, %v836_v37  ;;  %v1276_v37 = vsel %vm825_vm0, %v4958_v9, 0.0 }
 0x13f   : > { %5477 = vrsqrt.f32 %v837_v38  ;;  %v1300_v38 = vsel %vm1286_vm2, %v4958_v9, 0.0 }
 0x149   : > { %v5478_v39 = vpop.eup %5477 }
 0x14a   : > { %v839_v41 = vmul.f32 %v5478_v39, %v5860_v4  ;;  %v1269_v4 = vadd.f32 %v1268_v62, %v1267_v0 }
 0x14c   : > { %v846_v43 = vmul.f32 %v4621_v40, %v839_v41  ;;  %v1271_v15 = vadd.f32 %v1270_v6, %v1269_v4  ;;  %v1299_v40 = vadd.f32 %v1298_v11, %v1297_v36  ;;  %v4961_v41 = vpop.f32.mrb[8].mxu0 }
 0x14d   : > { %v1621_v49 = vsel %vm825_vm0, %v4961_v41, 0.0 }
 0x14e   : > { %v853_v44 = vadd.f32 %v4622_v42, %v846_v43  ;;  %v1273_v35 = vadd.f32 %v1272_v26, %v1271_v15  ;;  %v6017_v43 = vadd.f32 %v1300_v38, %v1299_v40 }
 0x150   : > { %v858_v46 = vpack.c.bf16 %v853_v44, %v853_v44  ;;  %v1275_v39 = vadd.f32 %v1274_v10, %v1273_v35  ;;  %v1643_v44 = vsel %vm1286_vm2, %v4961_v41, 0.0 }
 0x152   : > { %4936 = vmatmul.mubr.msk.bf16.vlgmr.msra.gmra.mrb[0].mxu1 %vm825_vm0, %v858_v46  ;;  %v6015_v42 = vadd.f32 %v1276_v37, %v1275_v39 }
 0x153   : > { %4940 = vmatpush3.bf16.msra.mxu1 %v5443_v45  ;;  %4943 = vmatprep.mubr.msk.bf16.mxu1 %vm5708_vm1, %v7434_v8  ;;  %v1120_v45 = vpop.f32.mrb[9].mxu0 }
 0x154   : > { %4941 = vmatprep.subr.bf16.mxu1 %v7434_v8  ;;  %v1618_v46 = vsel %vm825_vm0, %v1120_v45, 0.0  ;;  %v4962_v48 = vpop.f32.mrb[10].mxu0 }
 0x155   : > { %v1645_v50 = vsel %vm1286_vm2, %v4962_v48, 0.0  ;;  %v1123_v51 = vpop.f32.mrb[11].mxu0  ;;  %v6024_v52 = vpack.c.bf16 %v4962_v48, %v4961_v41  ;;  %v1623_v60 = vsel %vm825_vm0, %v4962_v48, 0.0 }
 0x156   : > { %v1619_v53 = vsel %vm825_vm0, %v1123_v51, 0.0  ;;  %v1641_v54 = vsel %vm1286_vm2, %v1123_v51, 0.0  ;;  %v6028_v56 = vpack.c.bf16 %v1123_v51, %v1120_v45  ;;  %v4965_v63 = vpop.f32.mrb[12].mxu0  ;;  %v1324_v51 = vsel %vm825_vm0, %v6009_v32, 0 }
 0x157   : > { %4942 = vmatpush3.bf16.msra.mxu1 %v5444_v47  ;;  %v1640_v47 = vsel %vm1286_vm2, %v1120_v45, 0.0  ;;  %v1620_v57 = vadd.f32 %v1619_v53, %v1618_v46  ;;  %v1651_v0 = vsel %vm1286_vm2, %v4965_v63, 0.0  ;;  %v1136_v1 = vpop.f32.mrb[13].mxu0  ;;  %v1629_v7 = vsel %vm825_vm0, %v4965_v63, 0.0 }
 0x158   : > { %4967 = vmatprep.subr.bf16.mxu1 %v7434_v8  ;;  %v1642_v58 = vadd.f32 %v1641_v54, %v1640_v47  ;;  %v1625_v4 = vsel %vm825_vm0, %v1136_v1, 0.0  ;;  %v1647_v5 = vsel %vm1286_vm2, %v1136_v1, 0.0  ;;  %v4966_v6 = vpop.f32.mrb[14].mxu0  ;;  %v1318_v47 = vsel %vm825_vm0, %v5993_v59, 0 }
 0x159   : > { %v1622_v61 = vadd.f32 %v1621_v49, %v1620_v57  ;;  %v1653_v11 = vsel %vm1286_vm2, %v4966_v6, 0.0  ;;  %v1139_v15 = vpop.f32.mrb[15].mxu0  ;;  %v6036_v19 = vpack.c.bf16 %v4966_v6, %v4965_v63  ;;  %v1631_v37 = vsel %vm825_vm0, %v4966_v6, 0.0 }
 0x15a   : > { %v1644_v62 = vadd.f32 %v1643_v44, %v1642_v58  ;;  %v1627_v20 = vsel %vm825_vm0, %v1139_v15, 0.0  ;;  %v1649_v26 = vsel %vm1286_vm2, %v1139_v15, 0.0  ;;  %v6040_v31 = vpack.c.bf16 %v1139_v15, %v1136_v1 }
 0x15b   : > { %v1624_v2 = vadd.f32 %v1623_v60, %v1622_v61  ;;  %v1327_v59 = vsel %vm825_vm0, %v6005_v25, 0  ;;  %v1278_v57 = vrot.slane %v6015_v42, 4 }
 0x15c   : > { %v1646_v3 = vadd.f32 %v1645_v50, %v1644_v62  ;;  %v1321_v50 = vsel %vm825_vm0, %v5988_v55, 0 }
 0x15d   : > { %v1626_v9 = vadd.f32 %v1625_v4, %v1624_v2  ;;  %v1279_v60 = vadd.f32 %v1278_v57, %v6015_v42 }
 0x15e   : > { %v1648_v10 = vadd.f32 %v1647_v5, %v1646_v3 }
 0x15f   : > { %v1628_v35 = vadd.f32 %v1627_v20, %v1626_v9  ;;  %v1280_v62 = vrot.slane %v1279_v60, 2 }
 0x160   : > { %v1650_v36 = vadd.f32 %v1649_v26, %v1648_v10 }
 0x161   : > { %v1630_v38 = vadd.f32 %v1629_v7, %v1628_v35 }
 0x162   : > { %v1652_v39 = vadd.f32 %v1651_v0, %v1650_v36  ;;  %v1281_v0 = vadd.f32 %v1280_v62, %v1279_v60 }
 0x163   : > { %v1632_v40 = vadd.f32 %v1631_v37, %v1630_v38 }
 0x164   : > { %v6043_v41 = vadd.f32 %v1653_v11, %v1652_v39  ;;  %v1282_v2 = vrot.slane %v1281_v0, 1 }
 0x165   : > { %v1633_v32 = vrot.slane %v1632_v40, 4 }
 0x166   : > { %v1283_v4 = vadd.f32 %v1282_v2, %v1281_v0  ;;  %v6095_v2 = vld [vmem:[%s7454_s1 + $0x8] sm:$0xff]  }
 0x167   : > { %v1634_v58 = vadd.f32 %v1633_v32, %v1632_v40 }
 0x168   : > { %v1285_v6 = vmul.f32 0.015625, %v1283_v4  ;;  %v1152_v4 = vmul.f32 %v5896_v13, %v5896_v13 }
 0x169   : > { %v1635_v61 = vrot.slane %v1634_v58, 2 }
 0x16b   : > { %v1395_v54 = vpop.permute.xlu1 %1394  ;;  %v1636_v63 = vadd.f32 %v1635_v61, %v1634_v58 }
 0x16c   : > { %v1393_v53 = vpop.permute.xlu0 %1392 }
 0x16d   : > { %4980 = vmatpush3.bf16.msra.mxu0 %v1393_v53  ;;  %v1637_v1 = vrot.slane %v1636_v63, 1 }
 0x16e   : > { %4981 = vmatprep.subr.bf16.mxu0 %v7434_v8 }
 0x16f   : > { %v1638_v3 = vadd.f32 %v1637_v1, %v1636_v63  ;;  %v6089_v1 = vld [vmem:[%s7454_s1] sm:$0xff]  }
 0x171   : > { %4982 = vmatpush3.bf16.msra.mxu0 %v1395_v54  ;;  %v1639_v5 = vmul.f32 0.015625, %v1638_v3  ;;  %v1151_v3 = vmul.f32 %v5893_v12, %v5893_v12 }
 0x172   : > { %4983 = vmatprep.subr.bf16.mxu0 %v7434_v8 }
 0x174   : > { %v1397_v55 = vpop.permute.xlu1 %1396 }
 0x175   : > { %4984 = vmatpush3.bf16.msra.mxu0 %v1397_v55 }
 0x176   : > { %4985 = vmatprep.subr.bf16.mxu0 %v7434_v8 }
 0x225   : > { %v6045_v44 = vpop.f32.mrb[0].mxu1 }
 0x226   : > { %v950_v45 = vpack.c.bf16 %v6045_v44, %v6045_v44  ;;  %v4937_v46 = vpop.f32.mrb[1].mxu1 }
 0x227   : > { %v911_v48 = vpop.f32.mrb[2].mxu1 }
 0x228   : > { %v4938_v49 = vpop.f32.mrb[3].mxu1  ;;  %4944 = vmatmul.mubr.msk.bf16.vlgmr.msra.gmra.mrb[4].mxu1 %vm825_vm0, %v950_v45  ;;  %v1302_v45 = vrot.slane %v6017_v43, 4 }
 0x229   : > { %4968 = vmatpush3.bf16.xpose.msra.mxu1 %v1318_v47  ;;  %4975 = vmatprep.mubr.msk.bf16.mxu1 %vm5708_vm1, %v7434_v8 }
 0x22a   : > { %4969 = vmatprep.subr.bf16.mxu1 %v7434_v8  ;;  %v1303_v47 = vadd.f32 %v1302_v45, %v6017_v43 }
 0x231   : > { %4970 = vmatpush3.bf16.xpose.msra.mxu1 %v1321_v50 }
 0x232   : > { %4971 = vmatprep.subr.bf16.mxu1 %v7434_v8 }
 0x239   : > { %4972 = vmatpush3.bf16.xpose.msra.mxu1 %v1324_v51  ;;  %v1304_v51 = vrot.slane %v1303_v47, 2 }
 0x23a   : > { %4973 = vmatprep.subr.bf16.mxu1 %v7434_v8 }
 0x23b   : > { %v1305_v57 = vadd.f32 %v1304_v51, %v1303_v47  ;;  %v1676_v51 = vsel %vm825_vm0, %v6036_v19, 0 }
 0x23d   : > { %v1306_v58 = vrot.slane %v1305_v57, 1 }
 0x241   : > { %4974 = vmatpush3.bf16.xpose.msra.mxu1 %v1327_v59 }
 0x242   : > { %4991 = vmatprep.subr.bf16.mxu1 %v7434_v8 }
 0x2fb   : > { %v1000_v7 = vpop.f32.mrb[4].mxu1 }
 0x2fc   : > { %v6069_v9 = vpack.c.bf16 %v1000_v7, %v1000_v7  ;;  %v4945_v10 = vpop.f32.mrb[5].mxu1  ;;  %v1370_v11 = vmul.f32 %v1285_v6, %v1000_v7  ;;  %v6071_v15 = vmul.f32 %v1639_v5, %v1000_v7  ;;  %v1155_v5 = vmul.f32 %v5907_v17, %v5907_v17 }
 0x2fd   : > { %v1003_v20 = vpop.f32.mrb[6].mxu1  ;;  %v1167_v6 = vsel %vm825_vm0, %v1151_v3, 0.0  ;;  %v1170_v10 = vsel %vm825_vm0, %v1152_v4, 0.0 }
 0x2fe   : > { %v4946_v26 = vpop.f32.mrb[7].mxu1  ;;  %4976 = vmatmul.mubr.msk.bf16.vlgmr.msra.gmra.mrb[8].mxu1 %vm825_vm0, %v6069_v9  ;;  %v1371_v42 = vsel %vm825_vm0, %v1370_v11, 0.0  ;;  %v1179_v7 = vsel %vm825_vm0, %v1155_v5, 0.0  ;;  %v1153_v11 = vmul.f32 %v5899_v14, %v5899_v14  ;;  %v1720_v5 = vsel %vm825_vm0, %v6071_v15, 0.0 }
 0x2ff   : > { %1372 = vadd.xlane.f32.xlu1 %v1371_v42  ;;  %4995 = vmatprep.mubr.msk.bf16.mxu1 %vm5708_vm1, %v7434_v8 }
 0x300   : > { %4992 = vmatpush3.bf16.msra.mxu1 %v6089_v1  ;;  %v1173_v20 = vsel %vm825_vm0, %v1153_v11, 0.0 }
 0x301   : > { %4993 = vmatprep.subr.bf16.mxu1 %v7434_v8 }
 0x304   : > { %4994 = vmatpush3.bf16.msra.mxu1 %v6095_v2 }
 0x305   : > { %5009 = vmatprep.subr.bf16.mxu1 %v7434_v8 }
 0x38c   : > { %v1373_v46 = vpop.xlane.xlu1 %1372 }
 0x38d   : > { %v1374_v48 = vmul.f32 0.17677669, %v1373_v46 }
 0x3d1   : > { %v1363_v35 = vpop.f32.mrb[8].mxu1 }
 0x3d2   : > { %v1369_v36 = vmul.f32 0.17677669, %v1363_v35  ;;  %v4977_v37 = vpop.f32.mrb[9].mxu1 }
 0x3d3   : > { %v1366_v38 = vpop.f32.mrb[10].mxu1 }
 0x3d4   : > { %v4978_v39 = vpop.f32.mrb[11].mxu1  ;;  %v1376_v40 = vsel %vm1375_vm3, %v1369_v36, -inf }
 0x3d5   : > { %1377 = vmax.xlane.f32.xlu1 %v1376_v40 }
 0x3e6   : > { %1398 = vrot.lane.b32.xlu1 %v6005_v25, %s7429_s2  ;;  %v1307_v25 = vadd.f32 %v1306_v58, %v1305_v57 }
 0x3e8   : > { %v1308_v61 = vmul.f32 0.015625, %v1307_v25  ;;  %v6143_v25 = vld [vmem:[%s7455_s5] ss:$0 sm:$0xff]  ;;  %s7457_s5 = sld [smem:[#allocation10_spill]] }
 0x3ee   : > { %s6262_s6 = scalar_lea.vmem %s7457_s5, %s4744_s7  ;;  %s7431_s7 = smov 64  }
 0x462   : > { %v1378_v49 = vpop.xlane.xlu1 %1377 }
 0x463   : > { %v1379_v50 = vmax.f32 %v1378_v49, %v1374_v48  ;;  %v1670_v49 = vsel %vm825_vm0, %v6024_v52, 0 }
 0x465   : > { %v1380_v59 = vsub.f32 %v1369_v36, %v1379_v50  ;;  %v1383_v53 = vsub.f32 %v1374_v48, %v1379_v50  ;;  %v1667_v48 = vsel %vm825_vm0, %v6028_v56, 0  ;;  %v1673_v50 = vsel %vm825_vm0, %v6040_v31, 0 }
 0x466   : > { %v1399_v54 = vpop.permute.xlu1 %1398 }
 0x467   : > { %v1381_v55 = vmul.f32 1.442695, %v1380_v59  ;;  %v1384_v32 = vmul.f32 1.442695, %v1383_v53  ;;  %4986 = vmatpush3.bf16.msra.mxu0 %v1399_v54  ;;  %v1154_v59 = vmul.f32 %v5904_v16, %v5904_v16  ;;  %v1157_v54 = vmul.f32 %v5921_v21, %v5921_v21 }
 0x469   : > { %5479 = vpow2.f32 %v1381_v55  ;;  %v1176_v53 = vsel %vm825_vm0, %v1154_v59, 0.0  ;;  %v1156_v55 = vmul.f32 %v5910_v18, %v5910_v18 }
 0x46a   : > { %5481 = vpow2.f32 %v1384_v32  ;;  %v1185_v32 = vsel %vm825_vm0, %v1157_v54, 0.0 }
 0x46b   : > { %v1182_v57 = vsel %vm825_vm0, %v1156_v55, 0.0 }
 0x473   : > { %v5480_v60 = vpop.eup %5479 }
 0x474   : > { %v5482_v62 = vpop.eup %5481  ;;  %v1386_v63 = vpack.c.bf16 %v5480_v60, %v5480_v60  ;;  %v1451_v43 = vsel %vm1375_vm3, %v5480_v60, 0.0 }
 0x475   : > { %1452 = vadd.xlane.f32.xlu0 %v1451_v43  ;;  %v1387_v0 = vmul.f32 %v5482_v62, %v1308_v61 }
 0x476   : > { %4988 = vmatmul.mubr.msk.bf16.vlgmr.msra.gmra.mrb[16].mxu0 %vm1375_vm3, %v1386_v63 }
 0x477   : > { %1405 = vrot.lane.b32.xlu1 %v1387_v0, %s7429_s2 }
 0x479   : > { %1168 = vadd.xlane.f32.xlu0 %v1167_v6 }
 0x47d   : > { %1171 = vadd.xlane.f32.xlu0 %v1170_v10 }
 0x481   : > { %1174 = vadd.xlane.f32.xlu0 %v1173_v20 }
 0x485   : > { %1177 = vadd.xlane.f32.xlu0 %v1176_v53 }
 0x489   : > { %1183 = vadd.xlane.f32.xlu0 %v1182_v57 }
 0x49b   : > { %1180 = vadd.xlane.f32.xlu1 %v1179_v7 }
 0x49f   : > { %1186 = vadd.xlane.f32.xlu1 %v1185_v32 }
 0x4e9   : > { %v1406_v35 = vpop.permute.xlu1 %1405 }
 0x502   : > { %v1453_v26 = vpop.xlane.xlu0 %1452 }
 0x503   : > { %v1454_v42 = vadd.f32 %v5482_v62, %v1453_v26 }
 0x505   : > { %5483 = vrcp.f32 %v1454_v42 }
 0x506   : > { %v1169_v6 = vpop.xlane.xlu0 %1168 }
 0x507   : > { %v1215_v7 = vmax.f32 %v1169_v6, 1e-24 }
 0x509   : > { %5485 = vrsqrt.f32 %v1215_v7 }
 0x50a   : > { %v1172_v10 = vpop.xlane.xlu0 %1171 }
 0x50b   : > { %v1216_v11 = vmax.f32 %v1172_v10, 1e-24 }
 0x50d   : > { %5487 = vrsqrt.f32 %v1216_v11 }
 0x50f   : > { %v5484_v39 = vpop.eup %5483 }
 0x513   : > { %v5486_v26 = vpop.eup %5485 }
 0x549   : > { %v1445_v36 = vpop.f32.mrb[16].mxu0 }
 0x54a   : > { %v1446_v37 = vadd.f32 %v1445_v36, %v1406_v35  ;;  %v4989_v38 = vpop.f32.mrb[17].mxu0  ;;  %v5488_v36 = vpop.eup %5487 }
 0x54b   : > { %v1448_v40 = vpop.f32.mrb[18].mxu0 }
 0x54c   : > { %v1456_v45 = vmul.f32 %v5484_v39, %v1446_v37  ;;  %v4990_v46 = vpop.f32.mrb[19].mxu0  ;;  %v1248_v39 = vmul.f32 %v5488_v36, %v5896_v13 }
 0x54e   : > { %v1462_v47 = vpack.c.bf16 %v1456_v45, %v1456_v45  ;;  %v1175_v45 = vpop.xlane.xlu0 %1174 }
 0x550   : > { %4996 = vmatmul.mubr.msk.bf16.vlgmr.msra.gmra.mrb[12].mxu1 %vm825_vm0, %v1462_v47 }
 0x551   : > { %5010 = vmatpush3.bf16.xpose.msra.mxu1 %v1667_v48  ;;  %5017 = vmatprep.mubr.msk.bf16.mxu1 %vm5708_vm1, %v7434_v8  ;;  %v1217_v48 = vmax.f32 %v1175_v45, 1e-24 }
 0x552   : > { %5011 = vmatprep.subr.bf16.mxu1 %v7434_v8  ;;  %v1178_v47 = vpop.xlane.xlu0 %1177 }
 0x559   : > { %5012 = vmatpush3.bf16.xpose.msra.mxu1 %v1670_v49 }
 0x55a   : > { %5013 = vmatprep.subr.bf16.mxu1 %v7434_v8 }
 0x561   : > { %5014 = vmatpush3.bf16.xpose.msra.mxu1 %v1673_v50  ;;  %v1218_v50 = vmax.f32 %v1178_v47, 1e-24 }
 0x562   : > { %5015 = vmatprep.subr.bf16.mxu1 %v7434_v8 }
 0x569   : > { %5016 = vmatpush3.bf16.xpose.msra.mxu1 %v1676_v51  ;;  %v1184_v51 = vpop.xlane.xlu0 %1183 }
 0x570   : > { %5018 = vmatmul.mubr.msk.bf16.vlgmr.msra.gmra.mrb[16].mxu1 %vm825_vm0, %v6069_v9  ;;  %v1158_v9 = vmul.f32 %v5924_v22, %v5924_v22 }
 0x572   : > { %v1188_v58 = vsel %vm825_vm0, %v1158_v9, 0.0 }
 0x573   : > { %1189 = vadd.xlane.f32.xlu0 %v1188_v58 }
 0x600   : > { %v1190_v13 = vpop.xlane.xlu0 %1189 }
 0x601   : > { %v1222_v54 = vmax.f32 %v1190_v13, 1e-24 }
 0x623   : > { %v1512_v60 = vpop.f32.mrb[12].mxu1 }
 0x624   : > { %v1524_v61 = vmul.f32 %v6143_v25, %v1512_v60  ;;  %v4997_v62 = vpop.f32.mrb[13].mxu1 }
 0x625   : > { %v1515_v63 = vpop.f32.mrb[14].mxu1 }
 0x626   : > { %v1525_v43 = vadd.f32 %v1524_v61, %v6045_v44  ;;  %v4998_v0 = vpop.f32.mrb[15].mxu1 }
 0x628   : > { %v1526_v3 = vmul.f32 %v1525_v43, %v1525_v43 }
 0x62a   : > { %v1527_v4 = vsel %vm825_vm0, %v1526_v3, 0.0  ;;  %v1655_v3 = vrot.slane %v6043_v41, 4 }
 0x62b   : > { %1528 = vadd.xlane.f32.xlu1 %v1527_v4 }
 0x62f   : > { %1721 = vadd.xlane.f32.xlu1 %v1720_v5 }
 0x640   : > { %1740 = vrot.lane.b32.xlu1 %v6028_v56, %s7429_s2  ;;  %v1247_v56 = vmul.f32 %v5486_v26, %v5893_v12  ;;  %v1220_v12 = vmax.f32 %v1184_v51, 1e-24 }
 0x642   : > { %v1533_v40 = vpack.c.bf16 %v1248_v39, %v1247_v56 }
 0x643   : > { %v1712_v20 = vpop.f32.mrb[16].mxu1 }
 0x644   : > { %v6152_v42 = vmul.f32 0.17677669, %v1712_v20  ;;  %v5019_v35 = vpop.f32.mrb[17].mxu1  ;;  %1744 = vrot.lane.b32.xlu1 %v6040_v31, %s7429_s2  ;;  %5001 = vmatprep.mubr.msk.bf16.mxu0 %vm825_vm0, %v1533_v40  ;;  %v1181_v31 = vpop.xlane.xlu1 %1180 }
 0x645   : > { %v1715_v15 = vpop.f32.mrb[18].mxu1 }
 0x646   : > { %v5020_v37 = vpop.f32.mrb[19].mxu1  ;;  %v1724_v38 = vsel %vm1375_vm3, %v6152_v42, -inf }
 0x647   : > { %1725 = vmax.xlane.f32.xlu0 %v1724_v38 }
 0x648   : > { %1746 = vrot.lane.b32.xlu1 %v6036_v19, %s7429_s2  ;;  %v1187_v46 = vpop.xlane.xlu1 %1186  ;;  %v1219_v19 = vmax.f32 %v1181_v31, 1e-24 }
 0x649   : > { %v1221_v53 = vmax.f32 %v1187_v46, 1e-24 }
 0x65d   : > { %1742 = vrot.lane.b32.xlu0 %v6024_v52, %s7429_s2 }
 0x6b8   : > { %v1529_v49 = vpop.xlane.xlu1 %1528 }
 0x6b9   : > { %v1530_v59 = vmax.f32 %v1529_v49, 1e-24 }
 0x6bb   : > { %5489 = vrsqrt.f32 %v1530_v59 }
 0x6bc   : > { %5491 = vrsqrt.f32 %v1217_v48  ;;  %v1722_v0 = vpop.xlane.xlu1 %1721 }
 0x6bd   : > { %5493 = vrsqrt.f32 %v1218_v50  ;;  %v1723_v11 = vmul.f32 0.17677669, %v1722_v0  ;;  %v1955_v50 = vld [vmem:[%s7456_s8 + $0x10] sm:$0xf] }
 0x6be   : > { %5495 = vrsqrt.f32 %v1219_v19  ;;  %5374 = vmatprep.subr.msk.bf16.mxu1 %vm1989_vm4, %v1955_v50  ;;  %v1991_v51 = vsel %vm1989_vm4, %v1955_v50, 0  ;;  %v6305_v50 = vld [vmem:[%s6262_s6 + $0x30] sm:$0xff] }
 0x6bf   : > { %5497 = vrsqrt.f32 %v1220_v12  ;;  %5052 = vmatpush3.bf16.msra.mxu1 %v1991_v51  ;;  %v6308_v51 = vld [vmem:[%s6262_s6 + $0x38] sm:$0xff] }
 0x6c0   : > { %5499 = vrsqrt.f32 %v1221_v53  ;;  %v1741_v10 = vpop.permute.xlu1 %1740 }
 0x6c1   : > { %5501 = vrsqrt.f32 %v1222_v54 }
 0x6c4   : > { %v1745_v40 = vpop.permute.xlu1 %1744 }
 0x6c5   : > { %v5490_v52 = vpop.eup %5489 }
 0x6c6   : > { %v5492_v55 = vpop.eup %5491  ;;  %v1532_v32 = vmul.f32 %v5490_v52, %v1525_v43 }
 0x6c7   : > { %v5494_v57 = vpop.eup %5493  ;;  %v1249_v61 = vmul.f32 %v5492_v55, %v5899_v14 }
 0x6c8   : > { %v1537_v9 = vpack.c.bf16 %v1532_v32, %v1532_v32  ;;  %v5496_v58 = vpop.eup %5495  ;;  %v1250_v62 = vmul.f32 %v5494_v57, %v5904_v16  ;;  %v1656_v16 = vadd.f32 %v1655_v3, %v6043_v41 }
 0x6c9   : > { %v5498_v60 = vpop.eup %5497  ;;  %v1251_v43 = vmul.f32 %v5496_v58, %v5907_v17 }
 0x6ca   : > { %5372 = vmatprep.subr.msk.bf16.mxu0 %vm825_vm0, %v1537_v9  ;;  %v1551_v63 = vsel %vm825_vm0, %v1537_v9, 0  ;;  %v1252_v4 = vmul.f32 %v5498_v60, %v5910_v18  ;;  %v1534_v5 = vpack.c.bf16 %v1250_v62, %v1249_v61  ;;  %v5500_v6 = vpop.eup %5499  ;;  %v1657_v35 = vrot.slane %v1656_v16, 2 }
 0x6cb   : > { %5000 = vmatpush3.bf16.xpose.msra.mxu0 %v1551_v63  ;;  %v5502_v7 = vpop.eup %5501  ;;  %v1253_v17 = vmul.f32 %v5500_v6, %v5921_v21  ;;  %v1160_v6 = vmul.f32 %v5930_v24, %v5930_v24 }
 0x6cc   : > { %5021 = vmatprep.subr.bf16.mxu0 %v7434_v8  ;;  %v1535_v14 = vpack.c.bf16 %v1252_v4, %v1251_v43  ;;  %v1254_v18 = vmul.f32 %v5502_v7, %v5924_v22  ;;  %v1658_v39 = vadd.f32 %v1657_v35, %v1656_v16  ;;  %v1747_v22 = vpop.permute.xlu1 %1746 }
 0x6cd   : > { %v1194_v7 = vsel %vm825_vm0, %v1160_v6, 0.0 }
 0x6ce   : > { %v1536_v37 = vpack.c.bf16 %v1254_v18, %v1253_v17  ;;  %v1659_v21 = vrot.slane %v1658_v39, 1 }
 0x6d2   : > { %5002 = vmatmul.mubr.msk.bf16.vlgmr.msra.gmra.mrb[20].mxu0 %vm825_vm0, %v1534_v5 }
 0x6d3   : > { %5005 = vmatprep.mubr.msk.bf16.mxu0 %vm825_vm0, %v1535_v14  ;;  %5022 = vmatpush3.bf16.msra.mxu0 %v1741_v10  ;;  %v1162_v14 = vmul.f32 %v5942_v28, %v5942_v28  ;;  %v1164_v10 = vmul.f32 %v5948_v30, %v5948_v30 }
 0x6d4   : > { %v1726_v20 = vpop.xlane.xlu0 %1725  ;;  %5023 = vmatprep.subr.bf16.mxu0 %v7434_v8 }
 0x6d5   : > { %v1727_v26 = vmax.f32 %v1726_v20, %v1723_v11  ;;  %v1200_v16 = vsel %vm825_vm0, %v1162_v14, 0.0  ;;  %v1166_v20 = vmul.f32 %v5960_v34, %v5960_v34 }
 0x6d7   : > { %v1728_v36 = vsub.f32 %v6152_v42, %v1727_v26  ;;  %v1731_v15 = vsub.f32 %v1723_v11, %v1727_v26  ;;  %v1660_v42 = vadd.f32 %v1659_v21, %v1658_v39  ;;  %v1206_v11 = vsel %vm825_vm0, %v1164_v10, 0.0  ;;  %v6279_v21 = vld [vmem:[%s6262_s6 + $0x20] sm:$0xff] }
 0x6d8   : > { %v1743_v41 = vpop.permute.xlu0 %1742  ;;  %v1212_v24 = vsel %vm825_vm0, %v1166_v20, 0.0 }
 0x6d9   : > { %v1729_v38 = vmul.f32 1.442695, %v1728_v36  ;;  %v1732_v56 = vmul.f32 1.442695, %v1731_v15  ;;  %5024 = vmatpush3.bf16.msra.mxu0 %v1743_v41  ;;  %v1661_v45 = vmul.f32 0.015625, %v1660_v42  ;;  %v1159_v15 = vmul.f32 %v5927_v23, %v5927_v23 }
 0x6da   : > { %5006 = vmatmul.mubr.msk.bf16.gmra.mrb[24].mxu0 %vm825_vm0, %v1536_v37  ;;  %5025 = vmatprep.subr.bf16.mxu0 %v7434_v8  ;;  %v1163_v37 = vmul.f32 %v5945_v29, %v5945_v29  ;;  %v1165_v23 = vmul.f32 %v5957_v33, %v5957_v33  ;;  %v6268_v29 = vld [vmem:[%s6262_s6 + $0x8] sm:$0xff]  ;;  %v6271_v33 = vld [vmem:[%s6262_s6 + $0x10] sm:$0xff] }
 0x6db   : > { %5503 = vpow2.f32 %v1729_v38  ;;  %5029 = vmatprep.mubr.msk.bf16.mxu0 %vm5708_vm1, %v7434_v8  ;;  %v1191_v41 = vsel %vm825_vm0, %v1159_v15, 0.0 }
 0x6dc   : > { %5505 = vpow2.f32 %v1732_v56  ;;  %v1203_v38 = vsel %vm825_vm0, %v1163_v37, 0.0  ;;  %v1209_v56 = vsel %vm825_vm0, %v1165_v23, 0.0  ;;  %v5690_v23 = vld [vmem:[%s5890_s29 + $0x40] sm:$0xff] }
 0x6dd   : > { %5026 = vmatpush3.bf16.msra.mxu0 %v1745_v40  ;;  %v6276_v40 = vld [vmem:[%s6262_s6 + $0x18] sm:$0xff] }
 0x6de   : > { %5027 = vmatprep.subr.bf16.mxu0 %v7434_v8  ;;  %v1948_v42 = vpack.c.bf16 %v6276_v40, %v6271_v33 }
 0x6e1   : > { %5028 = vmatpush3.bf16.msra.mxu0 %v1747_v22  ;;  %v6282_v22 = vld [vmem:[%s6262_s6 + $0x28] sm:$0xff] }
 0x6e2   : > { %5033 = vmatprep.subr.bf16.mxu0 %v7434_v8 }
 0x6e5   : > { %v5504_v31 = vpop.eup %5503 }
 0x6e6   : > { %v5506_v46 = vpop.eup %5505  ;;  %v1734_v47 = vpack.c.bf16 %v5504_v31, %v5504_v31  ;;  %v1799_v48 = vsel %vm1375_vm3, %v5504_v31, 0.0  ;;  %v6287_v31 = vld [vmem:[%s6262_s6 + $0x40] sm:$0xff] }
 0x6e7   : > { %1800 = vadd.xlane.f32.xlu1 %v1799_v48  ;;  %v1735_v49 = vmul.f32 %v5506_v46, %v1661_v45  ;;  %v6291_v45 = vld [vmem:[%s6262_s6 + $0x48] sm:$0xff]  ;;  %v6299_v48 = vld [vmem:[%s6262_s6 + $0x60] sm:$0xff] }
 0x6e8   : > { %5030 = vmatmul.mubr.msk.bf16.vlgmr.msra.gmra.mrb[28].mxu0 %vm1375_vm3, %v1734_v47  ;;  %v1951_v47 = vpack.c.bf16 %v6291_v45, %v6287_v31 }
 0x6e9   : > { %1753 = vrot.lane.b32.xlu0 %v1735_v49, %s7429_s2  ;;  %5034 = vmatpush3.bf16.msra.mxu0 %v6089_v1  ;;  %v6302_v49 = vld [vmem:[%s6262_s6 + $0x68] sm:$0xff]  ;;  %s7458_s2 = smov 64  }
 0x6ea   : > { %5035 = vmatprep.subr.bf16.mxu0 %v7434_v8  ;;  %5037 = vmatprep.mubr.msk.bf16.mxu0 %vm5708_vm1, %v7434_v8 }
 0x6eb   : > { %1195 = vadd.xlane.f32.xlu1 %v1194_v7 }
 0x6ed   : > { %5036 = vmatpush3.bf16.msra.mxu0 %v6095_v2 }
 0x6ef   : > { %1201 = vadd.xlane.f32.xlu1 %v1200_v16 }
 0x6f3   : > { %1207 = vadd.xlane.f32.xlu1 %v1206_v11 }
 0x6f7   : > { %1213 = vadd.xlane.f32.xlu1 %v1212_v24 }
 0x708   : > { %2100 = vrot.lane.b32.xlu1 %v1948_v42, %s7431_s7 }
 0x75b   : > { %v1754_v60 = vpop.permute.xlu0 %1753 }
 0x774   : > { %v1801_v53 = vpop.xlane.xlu1 %1800 }
 0x775   : > { %v1802_v55 = vadd.f32 %v5506_v46, %v1801_v53  ;;  %v1949_v46 = vpack.c.bf16 %v6282_v22, %v6279_v21  ;;  %v1950_v53 = vpack.c.bf16 %v6308_v51, %v6305_v50 }
 0x777   : > { %5507 = vrcp.f32 %v1802_v55  ;;  %2102 = vrot.lane.b32.xlu1 %v1949_v46, %s7431_s7  ;;  %v6320_v55 = vld [vmem:[%s6262_s6 + $0x50] sm:$0xff] }
 0x77b   : > { %2104 = vrot.lane.b32.xlu1 %v1950_v53, %s7431_s7 }
 0x781   : > { %v5508_v0 = vpop.eup %5507 }
 0x7a5   : > { %v6197_v59 = vpop.f32.mrb[20].mxu0 }
 0x7a6   : > { %v6199_v19 = vpop.f32.mrb[21].mxu0 }
 0x7a7   : > { %v6201_v1 = vpop.f32.mrb[22].mxu0 }
 0x7a8   : > { %v1957_v12 = vpack.c.bf16 %v6201_v1, %v6197_v59  ;;  %v6205_v13 = vpop.f32.mrb[23].mxu0 }
 0x7a9   : > { %v1956_v2 = vpack.c.bf16 %v6205_v13, %v6199_v19 }
 0x7ab   : > { %5053 = vmatprep.mubr.msk.bf16.mxu1 %vm1964_vm5, %v1956_v2  ;;  %v1953_v2 = vpack.c.bf16 %v6302_v49, %v6299_v48 }
 0x7ac   : > { %5054 = vmatmul.mubr.msk.bf16.vlgmr.msra.gmra.mrb[20].mxu1 %vm1964_vm5, %v1957_v12  ;;  %v5447_v12 = vld [vmem:[%s7456_s8] sm:$0xff]  }
 0x7ad   : > { %v6211_v54 = vpop.f32.mrb[24].mxu0  ;;  %5069 = vmatprep.subr.bf16.mxu1 %v5447_v12 }
 0x7ae   : > { %v6213_v52 = vpop.f32.mrb[25].mxu0  ;;  %5070 = vmatpush3.bf16.msra.mxu1 %v5447_v12  ;;  %v5692_v12 = vld [vmem:[%s5890_s29 + $0x50] sm:$0xff] }
 0x7af   : > { %v6215_v32 = vpop.f32.mrb[26].mxu0 }
 0x7b0   : > { %v1959_v57 = vpack.c.bf16 %v6215_v32, %v6211_v54  ;;  %v6219_v9 = vpop.f32.mrb[27].mxu0 }
 0x7b1   : > { %v1958_v58 = vpack.c.bf16 %v6219_v9, %v6213_v52 }
 0x7b3   : > { %5057 = vmatprep.mubr.msk.bf16.mxu1 %vm1964_vm5, %v1958_v58 }
 0x7b4   : > { %5058 = vmatmul.mubr.msk.bf16.gmra.mrb[24].mxu1 %vm1964_vm5, %v1959_v57  ;;  %v6323_v57 = vld [vmem:[%s6262_s6 + $0x58] sm:$0xff] }
 0x7b5   : > { %v1952_v58 = vpack.c.bf16 %v6323_v57, %v6320_v55 }
 0x7b7   : > { %2108 = vrot.lane.b32.xlu1 %v1952_v58, %s7431_s7 }
 0x7bb   : > { %v1793_v61 = vpop.f32.mrb[28].mxu0 }
 0x7bc   : > { %v1794_v62 = vadd.f32 %v1793_v61, %v1754_v60  ;;  %v5031_v63 = vpop.f32.mrb[29].mxu0  ;;  %v6330_v60 = vld [vmem:[%s6262_s6 + $0x70] sm:$0xff]  ;;  %v6333_v61 = vld [vmem:[%s6262_s6 + $0x78] sm:$0xff] }
 0x7bd   : > { %v1796_v3 = vpop.f32.mrb[30].mxu0  ;;  %v1196_v63 = vpop.xlane.xlu1 %1195 }
 0x7be   : > { %v1804_v43 = vmul.f32 %v5508_v0, %v1794_v62  ;;  %v5032_v4 = vpop.f32.mrb[31].mxu0  ;;  %v1954_v62 = vpack.c.bf16 %v6333_v61, %v6330_v60  ;;  %v1224_v3 = vmax.f32 %v1196_v63, 1e-24 }
 0x7c0   : > { %v1805_v5 = vpack.c.bf16 %v1804_v43, %v1804_v43  ;;  %2112 = vrot.lane.b32.xlu1 %v1954_v62, %s7431_s7  ;;  %5509 = vrsqrt.f32 %v1224_v3  ;;  %v5693_v62 = vld [vmem:[%s5890_s29 + $0x68] sm:$0xff]  ;;  %v5694_v3 = vld [vmem:[%s5890_s29 + $0x60] sm:$0xff] }
 0x7c1   : > { %v1202_v0 = vpop.xlane.xlu1 %1201 }
 0x7c2   : > { %5038 = vmatmul.mubr.msk.bf16.vlgmr.msra.gmra.mrb[32].mxu0 %vm825_vm0, %v1805_v5  ;;  %v1226_v6 = vmax.f32 %v1202_v0, 1e-24 }
 0x7c5   : > { %v1208_v5 = vpop.xlane.xlu1 %1207 }
 0x7c6   : > { %v1228_v16 = vmax.f32 %v1208_v5, 1e-24  ;;  %v5695_v5 = vld [vmem:[%s5890_s29 + $0x78] sm:$0xff] }
 0x7c9   : > { %v1214_v10 = vpop.xlane.xlu1 %1213 }
 0x7ca   : > { %v1230_v24 = vmax.f32 %v1214_v10, 1e-24 }
 0x895   : > { %v1843_v17 = vpop.f32.mrb[32].mxu0 }
 0x896   : > { %v1849_v18 = vmul.f32 %v6143_v25, %v1843_v17  ;;  %v5039_v26 = vpop.f32.mrb[33].mxu0  ;;  %v1161_v25 = vmul.f32 %v5939_v27, %v5939_v27  ;;  %v6265_v27 = vld [vmem:[%s6262_s6] sm:$0xff]  ;;  %v5510_v17 = vpop.eup %5509 }
 0x897   : > { %v1846_v28 = vpop.f32.mrb[34].mxu0  ;;  %v1947_v39 = vpack.c.bf16 %v6268_v29, %v6265_v27 }
 0x898   : > { %v6240_v35 = vadd.f32 %v1849_v18, %v6045_v44  ;;  %v5040_v36 = vpop.f32.mrb[35].mxu0  ;;  %v1197_v44 = vsel %vm825_vm0, %v1161_v25, 0.0 }
 0x89a   : > { %v1851_v30 = vmul.f32 %v6240_v35, %v6240_v35 }
 0x89c   : > { %v1852_v34 = vsel %vm825_vm0, %v1851_v30, 0.0 }
 0x89d   : > { %1853 = vadd.xlane.f32.xlu0 %v1852_v34 }
 0x8a1   : > { %1192 = vadd.xlane.f32.xlu0 %v1191_v41  ;;  %v5689_v41 = vld [vmem:[%s5890_s29 + $0x48] sm:$0xff] }
 0x8a2   : > { %v1256_v25 = vmul.f32 %v5689_v41, %v5510_v17 }
 0x8a5   : > { %1198 = vadd.xlane.f32.xlu0 %v1197_v44 }
 0x8a9   : > { %1204 = vadd.xlane.f32.xlu0 %v1203_v38 }
 0x8ad   : > { %1210 = vadd.xlane.f32.xlu0 %v1209_v56 }
 0x8c3   : > { %2098 = vrot.lane.b32.xlu0 %v1947_v39, %s7431_s7  ;;  %v5691_v39 = vld [vmem:[%s5890_s29 + $0x58] sm:$0xff] }
 0x8c7   : > { %2106 = vrot.lane.b32.xlu0 %v1951_v47, %s7431_s7 }
 0x8cb   : > { %2110 = vrot.lane.b32.xlu0 %v1953_v2, %s7431_s7 }
 0x92a   : > { %v1854_v43 = vpop.xlane.xlu0 %1853 }
 0x92b   : > { %v1855_v4 = vmax.f32 %v1854_v43, 1e-24 }
 0x92d   : > { %5511 = vrsqrt.f32 %v1855_v4 }
 0x92e   : > { %v1193_v7 = vpop.xlane.xlu0 %1192  ;;  %5513 = vrsqrt.f32 %v1226_v6 }
 0x92f   : > { %v1223_v14 = vmax.f32 %v1193_v7, 1e-24 }
 0x931   : > { %5515 = vrsqrt.f32 %v1223_v14  ;;  %v5696_v14 = vld [vmem:[%s5890_s29 + $0x70] sm:$0xff] }
 0x932   : > { %v1199_v11 = vpop.xlane.xlu0 %1198  ;;  %5517 = vrsqrt.f32 %v1228_v16 }
 0x933   : > { %v1225_v20 = vmax.f32 %v1199_v11, 1e-24  ;;  %v5448_v11 = vld [vmem:[%s7456_s8 + $0x8] sm:$0xff]  }
 0x934   : > { %5071 = vmatprep.subr.bf16.mxu1 %v5448_v11 }
 0x935   : > { %5519 = vrsqrt.f32 %v1225_v20  ;;  %5072 = vmatpush3.bf16.msra.mxu1 %v5448_v11 }
 0x936   : > { %v1205_v18 = vpop.xlane.xlu0 %1204  ;;  %5521 = vrsqrt.f32 %v1230_v24 }
 0x937   : > { %v5512_v26 = vpop.eup %5511  ;;  %v1227_v28 = vmax.f32 %v1205_v18, 1e-24 }
 0x938   : > { %v1857_v36 = vmul.f32 %v5512_v26, %v6240_v35  ;;  %v5514_v30 = vpop.eup %5513 }
 0x939   : > { %5523 = vrsqrt.f32 %v1227_v28  ;;  %v1258_v42 = vmul.f32 %v5691_v39, %v5514_v30 }
 0x93a   : > { %v1211_v15 = vpop.xlane.xlu0 %1210  ;;  %v1862_v34 = vpack.c.bf16 %v1857_v36, %v1857_v36 }
 0x93b   : > { %v5516_v44 = vpop.eup %5515  ;;  %v1229_v37 = vmax.f32 %v1211_v15, 1e-24 }
 0x93c   : > { %5373 = vmatprep.subr.msk.bf16.mxu0 %vm825_vm0, %v1862_v34  ;;  %v1876_v38 = vsel %vm825_vm0, %v1862_v34, 0  ;;  %v1255_v56 = vmul.f32 %v5690_v23, %v5516_v44  ;;  %v5518_v35 = vpop.eup %5517 }
 0x93d   : > { %5525 = vrsqrt.f32 %v1229_v37  ;;  %5042 = vmatpush3.bf16.xpose.msra.mxu0 %v1876_v38  ;;  %v1260_v63 = vmul.f32 %v5693_v62, %v5518_v35 }
 0x93e   : > { %v1858_v46 = vpack.c.bf16 %v1256_v25, %v1255_v56 }
 0x93f   : > { %v5520_v47 = vpop.eup %5519 }
 0x940   : > { %v1257_v2 = vmul.f32 %v5692_v12, %v5520_v47  ;;  %5043 = vmatprep.mubr.msk.bf16.mxu0 %vm825_vm0, %v1858_v46  ;;  %v5522_v53 = vpop.eup %5521 }
 0x941   : > { %v1262_v6 = vmul.f32 %v5695_v5, %v5522_v53 }
 0x942   : > { %v1859_v58 = vpack.c.bf16 %v1258_v42, %v1257_v2 }
 0x943   : > { %v5524_v0 = vpop.eup %5523 }
 0x944   : > { %5044 = vmatmul.mubr.msk.bf16.vlgmr.msra.gmra.mrb[36].mxu0 %vm825_vm0, %v1859_v58  ;;  %v1259_v43 = vmul.f32 %v5694_v3, %v5524_v0  ;;  %v2099_v3 = vpop.permute.xlu0 %2098 }
 0x946   : > { %v1860_v4 = vpack.c.bf16 %v1260_v63, %v1259_v43 }
 0x947   : > { %v5526_v7 = vpop.eup %5525 }
 0x948   : > { %5047 = vmatprep.mubr.msk.bf16.mxu0 %vm825_vm0, %v1860_v4  ;;  %v1261_v16 = vmul.f32 %v5696_v14, %v5526_v7 }
 0x94a   : > { %v1861_v10 = vpack.c.bf16 %v1262_v6, %v1261_v16  ;;  %v2107_v16 = vpop.permute.xlu0 %2106 }
 0x94c   : > { %5048 = vmatmul.mubr.msk.bf16.gmra.mrb[40].mxu0 %vm825_vm0, %v1861_v10 }
 0x94e   : > { %v2111_v11 = vpop.permute.xlu0 %2110 }
 0xa17   : > { %v5045_v20 = vpop.f32.mrb[36].mxu0 }
 0xa18   : > { %v4409_v24 = vsub.f32 %v6197_v59, %v5045_v20  ;;  %v1912_v17 = vpop.f32.mrb[37].mxu0 }
 0xa19   : > { %v4407_v18 = vsub.f32 %v6199_v19, %v1912_v17  ;;  %v5046_v26 = vpop.f32.mrb[38].mxu0 }
 0xa1a   : > { %v4417_v28 = vadd.f32 1e-06, %v4409_v24  ;;  %v1961_v36 = vpack.c.bf16 %v5046_v26, %v5045_v20  ;;  %v4410_v30 = vsub.f32 %v6201_v1, %v5046_v26  ;;  %v1915_v15 = vpop.f32.mrb[39].mxu0  ;;  %v5449_v24 = vld [vmem:[%s7409_s12] sm:$0xff]   ;;  %v5452_v26 = vld [vmem:[%s7409_s12 + $0x18] sm:$0xff]  }
 0xa1b   : > { %v4415_v34 = vadd.f32 1e-06, %v4407_v18  ;;  %v1960_v41 = vpack.c.bf16 %v1915_v15, %v1912_v17  ;;  %v4408_v25 = vsub.f32 %v6205_v13, %v1915_v15  ;;  %5089 = vmatprep.subr.bf16.mxu0 %v5449_v24  ;;  %v5450_v17 = vld [vmem:[%s7409_s12 + $0x8] sm:$0xff]   ;;  %v5451_v18 = vld [vmem:[%s7409_s12 + $0x10] sm:$0xff]   ;;  %v5456_v15 = vld [vmem:[%s7409_s12 + $0x38] sm:$0xff]  }
 0xa1c   : > { %v4418_v44 = vadd.f32 1e-06, %v4410_v30  ;;  %v6362_v38 = vmul.f32 %v4417_v28, %v4417_v28  ;;  %5090 = vmatpush3.bf16.msra.mxu0 %v5449_v24  ;;  %v5453_v28 = vld [vmem:[%s7409_s12 + $0x20] sm:$0xff]   ;;  %v5455_v30 = vld [vmem:[%s7409_s12 + $0x30] sm:$0xff]  }
 0xa1d   : > { %v4416_v37 = vadd.f32 1e-06, %v4408_v25  ;;  %5061 = vmatprep.mubr.msk.bf16.mxu1 %vm1964_vm5, %v1960_v41  ;;  %v6367_v19 = vmul.f32 %v4415_v34, %v4415_v34  ;;  %5091 = vmatprep.subr.bf16.mxu0 %v5450_v17  ;;  %v6428_v34 = vld [vmem:[%s7408_s11] ss:$0 sm:$0xff] }
 0xa1e   : > { %v6364_v59 = vmul.f32 %v4418_v44, %v4418_v44  ;;  %5062 = vmatmul.mubr.msk.bf16.gmra.mrb[28].mxu1 %vm1964_vm5, %v1961_v36  ;;  %v5454_v36 = vld [vmem:[%s7409_s12 + $0x28] sm:$0xff]  }
 0xa1f   : > { %v6369_v23 = vmul.f32 %v4416_v37, %v4416_v37  ;;  %v5049_v1 = vpop.f32.mrb[40].mxu0 }
 0xa20   : > { %v4413_v13 = vsub.f32 %v6211_v54, %v5049_v1  ;;  %v1928_v35 = vpop.f32.mrb[41].mxu0  ;;  %5092 = vmatpush3.bf16.msra.mxu0 %v5450_v17 }
 0xa21   : > { %v4411_v42 = vsub.f32 %v6213_v52, %v1928_v35  ;;  %v5050_v46 = vpop.f32.mrb[42].mxu0  ;;  %5093 = vmatprep.subr.bf16.mxu0 %v5451_v18 }
 0xa22   : > { %v4421_v47 = vadd.f32 1e-06, %v4413_v13  ;;  %v1963_v12 = vpack.c.bf16 %v5050_v46, %v5049_v1  ;;  %v4414_v2 = vsub.f32 %v6215_v32, %v5050_v46  ;;  %v1931_v53 = vpop.f32.mrb[43].mxu0  ;;  %v2101_v32 = vpop.permute.xlu1 %2100 }
 0xa23   : > { %v4419_v58 = vadd.f32 1e-06, %v4411_v42  ;;  %v1962_v62 = vpack.c.bf16 %v1931_v53, %v1928_v35  ;;  %v4412_v63 = vsub.f32 %v6219_v9, %v1931_v53 }
 0xa24   : > { %v4422_v0 = vadd.f32 1e-06, %v4414_v2  ;;  %v6380_v54 = vmul.f32 %v4421_v47, %v4421_v47  ;;  %5094 = vmatpush3.bf16.msra.mxu0 %v5451_v18 }
 0xa25   : > { %v4420_v43 = vadd.f32 1e-06, %v4412_v63  ;;  %5065 = vmatprep.mubr.msk.bf16.mxu1 %vm1964_vm5, %v1962_v62  ;;  %v6385_v52 = vmul.f32 %v4419_v58, %v4419_v58  ;;  %5095 = vmatprep.subr.bf16.mxu0 %v5452_v26 }
 0xa26   : > { %v6382_v4 = vmul.f32 %v4422_v0, %v4422_v0  ;;  %5066 = vmatmul.mubr.msk.bf16.gmra.mrb[32].mxu1 %vm1964_vm5, %v1963_v12  ;;  %v2103_v7 = vpop.permute.xlu1 %2102 }
 0xa27   : > { %v6387_v5 = vmul.f32 %v4420_v43, %v4420_v43  ;;  %5073 = vmatprep.mubr.msk.bf16.mxu1 %vm825_vm0, %v2099_v3 }
 0xa28   : > { %5096 = vmatpush3.bf16.msra.mxu0 %v5452_v26 }
 0xa29   : > { %5097 = vmatprep.subr.bf16.mxu0 %v5453_v28 }
 0xa2a   : > { %v2105_v14 = vpop.permute.xlu1 %2104 }
 0xa2c   : > { %5098 = vmatpush3.bf16.msra.mxu0 %v5453_v28 }
 0xa2d   : > { %5099 = vmatprep.subr.bf16.mxu0 %v5454_v36 }
 0xa2e   : > { %5074 = vmatmul.mubr.msk.bf16.vlgmr.msra.gmra.mrb[20].mxu1 %vm825_vm0, %v2101_v32  ;;  %v2109_v10 = vpop.permute.xlu1 %2108 }
 0xa2f   : > { %5077 = vmatprep.mubr.msk.bf16.mxu1 %vm825_vm0, %v2103_v7 }
 0xa30   : > { %5100 = vmatpush3.bf16.msra.mxu0 %v5454_v36 }
 0xa31   : > { %5101 = vmatprep.subr.bf16.mxu0 %v5455_v30 }
 0xa32   : > { %v2113_v20 = vpop.permute.xlu1 %2112 }
 0xa34   : > { %5102 = vmatpush3.bf16.msra.mxu0 %v5455_v30 }
 0xa35   : > { %5103 = vmatprep.subr.bf16.mxu0 %v5456_v15 }
 0xa36   : > { %5078 = vmatmul.mubr.msk.bf16.gmra.mrb[24].mxu1 %vm825_vm0, %v2105_v14 }
 0xa37   : > { %5081 = vmatprep.mubr.msk.bf16.mxu1 %vm825_vm0, %v2107_v16 }
 0xa38   : > { %5104 = vmatpush3.bf16.msra.mxu0 %v5456_v15 }
 0xa3e   : > { %5082 = vmatmul.mubr.msk.bf16.gmra.mrb[28].mxu1 %vm825_vm0, %v2109_v10 }
 0xa3f   : > { %5085 = vmatprep.mubr.msk.bf16.mxu1 %vm825_vm0, %v2111_v11 }
 0xa46   : > { %5086 = vmatmul.mubr.msk.bf16.gmra.mrb[32].mxu1 %vm825_vm0, %v2113_v20 }
 0xb01   : > { %v5075_v41 = vpop.f32.mrb[20].mxu1 }
 0xb02   : > { %v6431_v25 = vadd.f32 %v5075_v41, %v6428_v34  ;;  %v2184_v44 = vpop.f32.mrb[21].mxu1 }
 0xb03   : > { %v6434_v37 = vadd.f32 %v6428_v34, %v2184_v44  ;;  %v5076_v1 = vpop.f32.mrb[22].mxu1 }
 0xb04   : > { %v2272_v13 = vmul.f32 %v6431_v25, %v6431_v25  ;;  %v6439_v35 = vadd.f32 %v5076_v1, %v6428_v34  ;;  %v2187_v42 = vpop.f32.mrb[23].mxu1 }
 0xb05   : > { %v2270_v46 = vmul.f32 %v6434_v37, %v6434_v37  ;;  %v6444_v47 = vadd.f32 %v6428_v34, %v2187_v42 }
 0xb06   : > { %v2288_v12 = vmul.f32 %v2272_v13, %v6431_v25  ;;  %v2273_v2 = vmul.f32 %v6439_v35, %v6439_v35 }
 0xb07   : > { %v2286_v53 = vmul.f32 %v2270_v46, %v6434_v37  ;;  %v2271_v58 = vmul.f32 %v6444_v47, %v6444_v47 }
 0xb08   : > { %v2304_v62 = vmul.f32 0.044715, %v2288_v12  ;;  %v2289_v63 = vmul.f32 %v2273_v2, %v6439_v35 }
 0xb09   : > { %v2302_v0 = vmul.f32 0.044715, %v2286_v53  ;;  %v2287_v3 = vmul.f32 %v2271_v58, %v6444_v47  ;;  %v5079_v43 = vpop.f32.mrb[24].mxu1 }
 0xb0a   : > { %v2320_v32 = vadd.f32 %v2304_v62, %v6431_v25  ;;  %v2305_v7 = vmul.f32 0.044715, %v2289_v63  ;;  %v6456_v14 = vadd.f32 %v5079_v43, %v6428_v34  ;;  %v2200_v16 = vpop.f32.mrb[25].mxu1 }
 0xb0b   : > { %v2318_v10 = vadd.f32 %v2302_v0, %v6434_v37  ;;  %v2303_v11 = vmul.f32 0.044715, %v2287_v3  ;;  %v6460_v20 = vadd.f32 %v6428_v34, %v2200_v16  ;;  %v5080_v24 = vpop.f32.mrb[26].mxu1 }
 0xb0c   : > { %v2336_v17 = vmul.f32 0.7978846, %v2320_v32  ;;  %v2321_v18 = vadd.f32 %v2305_v7, %v6439_v35  ;;  %v2276_v26 = vmul.f32 %v6456_v14, %v6456_v14  ;;  %v6466_v28 = vadd.f32 %v5080_v24, %v6428_v34  ;;  %v2203_v36 = vpop.f32.mrb[27].mxu1 }
 0xb0d   : > { %v2334_v30 = vmul.f32 0.7978846, %v2318_v10  ;;  %v2319_v15 = vadd.f32 %v2303_v11, %v6444_v47  ;;  %v2274_v41 = vmul.f32 %v6460_v20, %v6460_v20  ;;  %v6472_v44 = vadd.f32 %v6428_v34, %v2203_v36 }
 0xb0e   : > { %5527 = vtanh.f32 %v2336_v17  ;;  %v2337_v1 = vmul.f32 0.7978846, %v2321_v18  ;;  %v2292_v13 = vmul.f32 %v2276_v26, %v6456_v14  ;;  %v2277_v42 = vmul.f32 %v6466_v28, %v6466_v28 }
 0xb0f   : > { %5529 = vtanh.f32 %v2334_v30  ;;  %v2335_v46 = vmul.f32 0.7978846, %v2319_v15  ;;  %v2290_v12 = vmul.f32 %v2274_v41, %v6460_v20  ;;  %v2275_v2 = vmul.f32 %v6472_v44, %v6472_v44 }
 0xb10   : > { %5531 = vtanh.f32 %v2337_v1  ;;  %v2308_v53 = vmul.f32 0.044715, %v2292_v13  ;;  %v2293_v58 = vmul.f32 %v2277_v42, %v6466_v28 }
 0xb11   : > { %v2306_v62 = vmul.f32 0.044715, %v2290_v12  ;;  %v2291_v63 = vmul.f32 %v2275_v2, %v6472_v44  ;;  %v5083_v0 = vpop.f32.mrb[28].mxu1  ;;  %5533 = vtanh.f32 %v2335_v46 }
 0xb12   : > { %v2324_v3 = vadd.f32 %v2308_v53, %v6456_v14  ;;  %v2309_v43 = vmul.f32 0.044715, %v2293_v58  ;;  %v6484_v32 = vadd.f32 %v5083_v0, %v6428_v34  ;;  %v2216_v7 = vpop.f32.mrb[29].mxu1 }
 0xb13   : > { %v2322_v16 = vadd.f32 %v2306_v62, %v6460_v20  ;;  %v2307_v10 = vmul.f32 0.044715, %v2291_v63  ;;  %v6488_v11 = vadd.f32 %v6428_v34, %v2216_v7  ;;  %v5084_v24 = vpop.f32.mrb[30].mxu1 }
 0xb14   : > { %v2340_v17 = vmul.f32 0.7978846, %v2324_v3  ;;  %v2325_v18 = vadd.f32 %v2309_v43, %v6466_v28  ;;  %v2280_v26 = vmul.f32 %v6484_v32, %v6484_v32  ;;  %v6494_v36 = vadd.f32 %v5084_v24, %v6428_v34  ;;  %v2219_v30 = vpop.f32.mrb[31].mxu1 }
 0xb15   : > { %v2338_v15 = vmul.f32 0.7978846, %v2322_v16  ;;  %v2323_v41 = vadd.f32 %v2307_v10, %v6472_v44  ;;  %v2278_v1 = vmul.f32 %v6488_v11, %v6488_v11  ;;  %v6500_v13 = vadd.f32 %v6428_v34, %v2219_v30 }
 0xb16   : > { %5535 = vtanh.f32 %v2340_v17  ;;  %v2341_v42 = vmul.f32 0.7978846, %v2325_v18  ;;  %v2296_v46 = vmul.f32 %v2280_v26, %v6484_v32  ;;  %v2281_v12 = vmul.f32 %v6494_v36, %v6494_v36 }
 0xb17   : > { %5537 = vtanh.f32 %v2338_v15  ;;  %v2339_v2 = vmul.f32 0.7978846, %v2323_v41  ;;  %v2294_v53 = vmul.f32 %v2278_v1, %v6488_v11  ;;  %v2279_v58 = vmul.f32 %v6500_v13, %v6500_v13 }
 0xb18   : > { %v5528_v62 = vpop.eup %5527  ;;  %5539 = vtanh.f32 %v2341_v42  ;;  %v2312_v63 = vmul.f32 0.044715, %v2296_v46  ;;  %v2297_v0 = vmul.f32 %v2281_v12, %v6494_v36 }
 0xb19   : > { %v5530_v3 = vpop.eup %5529  ;;  %v2368_v43 = vadd.f32 1.0, %v5528_v62  ;;  %5541 = vtanh.f32 %v2339_v2  ;;  %v2310_v7 = vmul.f32 0.044715, %v2294_v53  ;;  %v2295_v16 = vmul.f32 %v2279_v58, %v6500_v13  ;;  %v5087_v10 = vpop.f32.mrb[32].mxu1 }
 0xb1a   : > { %v5532_v24 = vpop.eup %5531  ;;  %v2328_v17 = vadd.f32 %v2312_v63, %v6484_v32  ;;  %v2313_v18 = vmul.f32 0.044715, %v2297_v0  ;;  %v6512_v26 = vadd.f32 %v5087_v10, %v6428_v34  ;;  %v2232_v30 = vpop.f32.mrb[33].mxu1  ;;  %v2366_v15 = vadd.f32 1.0, %v5530_v3 }
 0xb1b   : > { %v2384_v41 = vmul.f32 0.5, %v2368_v43  ;;  %v2369_v1 = vadd.f32 1.0, %v5532_v24  ;;  %v2326_v42 = vadd.f32 %v2310_v7, %v6488_v11  ;;  %v2311_v46 = vmul.f32 0.044715, %v2295_v16  ;;  %v5088_v12 = vpop.f32.mrb[34].mxu1  ;;  %v5534_v0 = vpop.eup %5533 }
 0xb1c   : > { %v2344_v2 = vmul.f32 0.7978846, %v2328_v17  ;;  %v2329_v53 = vadd.f32 %v2313_v18, %v6494_v36  ;;  %v2284_v58 = vmul.f32 %v6512_v26, %v6512_v26  ;;  %v6519_v62 = vadd.f32 %v6428_v34, %v2232_v30  ;;  %v2235_v63 = vpop.f32.mrb[35].mxu1 }
 0xb1d   : > { %v2400_v10 = vmul.f32 %v2384_v41, %v6431_v25  ;;  %v2385_v3 = vmul.f32 0.5, %v2369_v1  ;;  %v2342_v43 = vmul.f32 0.7978846, %v2326_v42  ;;  %v2327_v24 = vadd.f32 %v2311_v46, %v6500_v13 }
 0xb1e   : > { %5543 = vtanh.f32 %v2344_v2  ;;  %v2345_v7 = vmul.f32 0.7978846, %v2329_v53  ;;  %v2300_v16 = vmul.f32 %v2284_v58, %v6512_v26  ;;  %v2282_v17 = vmul.f32 %v6519_v62, %v6519_v62 }
 0xb1f   : > { %v2401_v18 = vmul.f32 %v2385_v3, %v6439_v35  ;;  %5545 = vtanh.f32 %v2342_v43  ;;  %v2343_v30 = vmul.f32 0.7978846, %v2327_v24  ;;  %v6528_v9 = vadd.f32 %v5088_v12, %v6428_v34 }
 0xb20   : > { %v5536_v6 = vpop.eup %5535  ;;  %5547 = vtanh.f32 %v2345_v7  ;;  %v2316_v25 = vmul.f32 0.044715, %v2300_v16  ;;  %v2298_v41 = vmul.f32 %v2282_v17, %v6519_v62  ;;  %v6532_v1 = vadd.f32 %v6428_v34, %v2235_v63 }
 0xb21   : > { %v5538_v42 = vpop.eup %5537  ;;  %v2431_v46 = vpack.c.bf16 %v2401_v18, %v2400_v10  ;;  %5549 = vtanh.f32 %v2343_v30  ;;  %v2285_v2 = vmul.f32 %v6528_v9, %v6528_v9  ;;  %v2367_v35 = vadd.f32 1.0, %v5534_v0 }
 0xb22   : > { %v5540_v53 = vpop.eup %5539  ;;  %v2332_v58 = vadd.f32 %v2316_v25, %v6512_v26  ;;  %v2314_v12 = vmul.f32 0.044715, %v2298_v41  ;;  %v2283_v3 = vmul.f32 %v6532_v1, %v6532_v1  ;;  %v2382_v43 = vmul.f32 0.5, %v2366_v15 }
 0xb23   : > { %v5542_v24 = vpop.eup %5541  ;;  %v2301_v7 = vmul.f32 %v2285_v2, %v6528_v9  ;;  %v2383_v34 = vmul.f32 0.5, %v2367_v35  ;;  %v2370_v63 = vadd.f32 1.0, %v5538_v42  ;;  %v2372_v16 = vadd.f32 1.0, %v5536_v6 }
 0xb24   : > { %v2348_v10 = vmul.f32 0.7978846, %v2332_v58  ;;  %v2330_v17 = vadd.f32 %v2314_v12, %v6519_v62  ;;  %v2299_v18 = vmul.f32 %v2283_v3, %v6532_v1  ;;  %v2398_v0 = vmul.f32 %v2382_v43, %v6434_v37 }
 0xb25   : > { %v2317_v30 = vmul.f32 0.044715, %v2301_v7  ;;  %v2399_v25 = vmul.f32 %v2383_v34, %v6444_v47  ;;  %v2371_v41 = vadd.f32 1.0, %v5542_v24  ;;  %v2386_v56 = vmul.f32 0.5, %v2370_v63 }
 0xb26   : > { %5551 = vtanh.f32 %v2348_v10  ;;  %v2346_v15 = vmul.f32 0.7978846, %v2330_v17  ;;  %v2315_v39 = vmul.f32 0.044715, %v2299_v18  ;;  %v2373_v8 = vadd.f32 1.0, %v5540_v53 }
 0xb27   : > { %v2333_v2 = vadd.f32 %v2317_v30, %v6528_v9  ;;  %v2430_v42 = vpack.c.bf16 %v2399_v25, %v2398_v0  ;;  %v2387_v6 = vmul.f32 0.5, %v2371_v41  ;;  %v2388_v12 = vmul.f32 0.5, %v2372_v16 }
 0xb28   : > { %v5544_v35 = vpop.eup %5543  ;;  %5553 = vtanh.f32 %v2346_v15  ;;  %v2331_v58 = vadd.f32 %v2315_v39, %v6532_v1  ;;  %v2389_v3 = vmul.f32 0.5, %v2373_v8  ;;  %v2402_v47 = vmul.f32 %v2386_v56, %v6460_v20 }
 0xb29   : > { %v5546_v37 = vpop.eup %5545  ;;  %v2349_v43 = vmul.f32 0.7978846, %v2333_v2  ;;  %5105 = vmatprep.mubr.bf16.mxu0 %v2430_v42  ;;  %v2403_v24 = vmul.f32 %v2387_v6, %v6472_v44  ;;  %v2376_v7 = vadd.f32 1.0, %v5544_v35  ;;  %v2404_v63 = vmul.f32 %v2388_v12, %v6456_v14 }
 0xb2a   : > { %v5548_v34 = vpop.eup %5547  ;;  %v2347_v53 = vmul.f32 0.7978846, %v2331_v58  ;;  %5106 = vmatmul.mubr.bf16.vlgmr.msra.gmra.mrb[44].mxu0 %v2431_v46  ;;  %v2405_v10 = vmul.f32 %v2389_v3, %v6466_v28  ;;  %v2374_v17 = vadd.f32 1.0, %v5546_v37 }
 0xb2b   : > { %v5550_v18 = vpop.eup %5549  ;;  %5555 = vtanh.f32 %v2349_v43  ;;  %v2432_v39 = vpack.c.bf16 %v2403_v24, %v2402_v47  ;;  %v2377_v8 = vadd.f32 1.0, %v5548_v34  ;;  %v2392_v16 = vmul.f32 0.5, %v2376_v7 }
 0xb2c   : > { %5557 = vtanh.f32 %v2347_v53  ;;  %v2433_v0 = vpack.c.bf16 %v2405_v10, %v2404_v63  ;;  %v2375_v30 = vadd.f32 1.0, %v5550_v18  ;;  %v2390_v56 = vmul.f32 0.5, %v2374_v17  ;;  %v5457_v63 = vld [vmem:[%s7411_s14] sm:$0xff]   ;;  %v5458_v10 = vld [vmem:[%s7411_s14 + $0x8] sm:$0xff]   ;;  %v5463_v17 = vld [vmem:[%s7411_s14 + $0x30] sm:$0xff]  }
 0xb2d   : > { %5109 = vmatprep.mubr.bf16.mxu0 %v2432_v39  ;;  %v2393_v20 = vmul.f32 0.5, %v2377_v8  ;;  %v2408_v25 = vmul.f32 %v2392_v16, %v6484_v32  ;;  %5121 = vmatprep.subr.bf16.mxu0 %v5457_v63  ;;  %v5464_v18 = vld [vmem:[%s7411_s14 + $0x38] sm:$0xff]   ;;  %v4675_v8 = vld [vmem:[%s7410_s13] ss:$0 sm:$0xff] }
 0xb2e   : > { %v2391_v44 = vmul.f32 0.5, %v2375_v30  ;;  %v2406_v28 = vmul.f32 %v2390_v56, %v6488_v11  ;;  %5122 = vmatpush3.bf16.msra.mxu0 %v5457_v63 }
 0xb2f   : > { %v2409_v46 = vmul.f32 %v2393_v20, %v6494_v36  ;;  %5123 = vmatprep.subr.bf16.mxu0 %v5458_v10 }
 0xb30   : > { %v5552_v14 = vpop.eup %5551  ;;  %v2407_v41 = vmul.f32 %v2391_v44, %v6500_v13 }
 0xb31   : > { %v2435_v15 = vpack.c.bf16 %v2409_v46, %v2408_v25  ;;  %v2380_v6 = vadd.f32 1.0, %v5552_v14 }
 0xb32   : > { %v5554_v2 = vpop.eup %5553  ;;  %5110 = vmatmul.mubr.bf16.gmra.mrb[48].mxu0 %v2433_v0  ;;  %v2434_v42 = vpack.c.bf16 %v2407_v41, %v2406_v28 }
 0xb33   : > { %v2378_v35 = vadd.f32 1.0, %v5554_v2  ;;  %v2396_v37 = vmul.f32 0.5, %v2380_v6  ;;  %5124 = vmatpush3.bf16.msra.mxu0 %v5458_v10 }
 0xb34   : > { %5113 = vmatprep.mubr.bf16.mxu0 %v2434_v42 }
 0xb35   : > { %v5556_v58 = vpop.eup %5555  ;;  %v2394_v32 = vmul.f32 0.5, %v2378_v35  ;;  %v2412_v11 = vmul.f32 %v2396_v37, %v6512_v26  ;;  %v5460_v26 = vld [vmem:[%s7411_s14 + $0x18] sm:$0xff]  }
 0xb36   : > { %v5558_v12 = vpop.eup %5557  ;;  %v2381_v3 = vadd.f32 1.0, %v5556_v58 }
 0xb37   : > { %v2379_v43 = vadd.f32 1.0, %v5558_v12  ;;  %v2410_v24 = vmul.f32 %v2394_v32, %v6519_v62  ;;  %v5461_v62 = vld [vmem:[%s7411_s14 + $0x20] sm:$0xff]  }
 0xb38   : > { %v2397_v47 = vmul.f32 0.5, %v2381_v3 }
 0xb39   : > { %v2395_v36 = vmul.f32 0.5, %v2379_v43 }
 0xb3a   : > { %5114 = vmatmul.mubr.bf16.gmra.mrb[52].mxu0 %v2435_v15  ;;  %v2413_v13 = vmul.f32 %v2397_v47, %v6528_v9  ;;  %v5459_v9 = vld [vmem:[%s7411_s14 + $0x10] sm:$0xff]  }
 0xb3b   : > { %v2411_v7 = vmul.f32 %v2395_v36, %v6532_v1  ;;  %5125 = vmatprep.subr.bf16.mxu0 %v5459_v9  ;;  %v5462_v1 = vld [vmem:[%s7411_s14 + $0x28] sm:$0xff]  }
 0xb3c   : > { %v2437_v34 = vpack.c.bf16 %v2413_v13, %v2412_v11  ;;  %5126 = vmatpush3.bf16.msra.mxu0 %v5459_v9 }
 0xb3d   : > { %v2436_v53 = vpack.c.bf16 %v2411_v7, %v2410_v24  ;;  %5127 = vmatprep.subr.bf16.mxu0 %v5460_v26 }
 0xb3f   : > { %5117 = vmatprep.mubr.bf16.mxu0 %v2436_v53 }
 0xb40   : > { %5128 = vmatpush3.bf16.msra.mxu0 %v5460_v26 }
 0xb41   : > { %5129 = vmatprep.subr.bf16.mxu0 %v5461_v62 }
 0xb42   : > { %5118 = vmatmul.mubr.bf16.gmra.mrb[56].mxu0 %v2437_v34 }
 0xb44   : > { %5130 = vmatpush3.bf16.msra.mxu0 %v5461_v62 }
 0xb45   : > { %5131 = vmatprep.subr.bf16.mxu0 %v5462_v1 }
 0xb48   : > { %5132 = vmatpush3.bf16.msra.mxu0 %v5462_v1 }
 0xb49   : > { %5133 = vmatprep.subr.bf16.mxu0 %v5463_v17 }
 0xb4c   : > { %5134 = vmatpush3.bf16.msra.mxu0 %v5463_v17 }
 0xb4d   : > { %5135 = vmatprep.subr.bf16.mxu0 %v5464_v18 }
 0xb50   : > { %5136 = vmatpush3.bf16.msra.mxu0 %v5464_v18 }
 0xbfd   : > { %v5107_v39 = vpop.f32.mrb[44].mxu0 }
 0xbfe   : > { %v2527_v16 = vpop.f32.mrb[45].mxu0  ;;  %v2536_v30 = vadd.f32 %v5107_v39, %v4675_v8 }
 0xbff   : > { %v5108_v0 = vpop.f32.mrb[46].mxu0  ;;  %v2528_v44 = vadd.f32 %v4675_v8, %v2527_v16 }
 0xc00   : > { %v2539_v56 = vadd.f32 %v5108_v0, %v4675_v8  ;;  %v2530_v20 = vpop.f32.mrb[47].mxu0 }
 0xc01   : > { %v2531_v25 = vadd.f32 %v4675_v8, %v2530_v20 }
 0xc02   : > { %v5402_v46 = vpack.i.bf16 %v2539_v56, %v2536_v30 }
 0xc03   : > { %v5397_v14 = vpack.i.bf16 %v2531_v25, %v2528_v44 }
 0xc04   : > { %5403 = vrot.lane.b32.xlu1 %v5402_v46, %s7458_s2 }
 0xc05   : > { %5398 = vrot.lane.b32.xlu0 %v5397_v14, %s7458_s2  ;;  %v5111_v28 = vpop.f32.mrb[48].mxu0 }
 0xc06   : > { %v2543_v41 = vpop.f32.mrb[49].mxu0  ;;  %v2552_v2 = vadd.f32 %v5111_v28, %v4675_v8 }
 0xc07   : > { %v5112_v15 = vpop.f32.mrb[50].mxu0  ;;  %v2544_v35 = vadd.f32 %v4675_v8, %v2543_v41 }
 0xc08   : > { %v2555_v42 = vadd.f32 %v5112_v15, %v4675_v8  ;;  %v2546_v6 = vpop.f32.mrb[51].mxu0 }
 0xc09   : > { %v2547_v58 = vadd.f32 %v4675_v8, %v2546_v6 }
 0xc0a   : > { %v5412_v12 = vpack.i.bf16 %v2555_v42, %v2552_v2 }
 0xc0b   : > { %v5407_v3 = vpack.i.bf16 %v2547_v58, %v2544_v35 }
 0xc0c   : > { %5413 = vrot.lane.b32.xlu1 %v5412_v12, %s7458_s2 }
 0xc0d   : > { %5408 = vrot.lane.b32.xlu0 %v5407_v3, %s7458_s2  ;;  %v5115_v37 = vpop.f32.mrb[52].mxu0 }
 0xc0e   : > { %v2559_v43 = vpop.f32.mrb[53].mxu0  ;;  %v2568_v47 = vadd.f32 %v5115_v37, %v4675_v8 }
 0xc0f   : > { %v5116_v32 = vpop.f32.mrb[54].mxu0  ;;  %v2560_v13 = vadd.f32 %v4675_v8, %v2559_v43 }
 0xc10   : > { %v2571_v36 = vadd.f32 %v5116_v32, %v4675_v8  ;;  %v2562_v11 = vpop.f32.mrb[55].mxu0 }
 0xc11   : > { %v2563_v24 = vadd.f32 %v4675_v8, %v2562_v11 }
 0xc12   : > { %v5422_v7 = vpack.i.bf16 %v2571_v36, %v2568_v47 }
 0xc13   : > { %v5417_v34 = vpack.i.bf16 %v2563_v24, %v2560_v13 }
 0xc14   : > { %5423 = vrot.lane.b32.xlu1 %v5422_v7, %s7458_s2 }
 0xc15   : > { %5418 = vrot.lane.b32.xlu0 %v5417_v34, %s7458_s2  ;;  %v5119_v53 = vpop.f32.mrb[56].mxu0 }
 0xc16   : > { %v2575_v63 = vpop.f32.mrb[57].mxu0  ;;  %v2584_v9 = vadd.f32 %v5119_v53, %v4675_v8 }
 0xc17   : > { %v5120_v10 = vpop.f32.mrb[58].mxu0  ;;  %v2576_v1 = vadd.f32 %v4675_v8, %v2575_v63 }
 0xc18   : > { %v2587_v26 = vadd.f32 %v5120_v10, %v4675_v8  ;;  %v2578_v62 = vpop.f32.mrb[59].mxu0 }
 0xc19   : > { %v2579_v17 = vadd.f32 %v4675_v8, %v2578_v62 }
 0xc1a   : > { %v5432_v18 = vpack.i.bf16 %v2587_v26, %v2584_v9 }
 0xc1b   : > { %v5427_v39 = vpack.i.bf16 %v2579_v17, %v2576_v1 }
 0xc1c   : > { %5433 = vrot.lane.b32.xlu1 %v5432_v18, %s7458_s2 }
 0xc1d   : > { %5428 = vrot.lane.b32.xlu0 %v5427_v39, %s7458_s2 }
 0xc76   : > { %v5404_v16 = vpop.permute.xlu1 %5403 }
 0xc77   : > { %v5406_v0 = vunpack.i.h.bf16 %v5404_v16  ;;  %v5405_v30 = vunpack.i.l.bf16 %v5404_v16  ;;  %v5399_v56 = vpop.permute.xlu0 %5398 }
 0xc78   : > { %v5401_v20 = vunpack.i.h.bf16 %v5399_v56  ;;  %v5400_v44 = vunpack.i.l.bf16 %v5399_v56 }
 0xc79   : > { %v2657_v25 = vsel %vm1375_vm3, %v6276_v40, %v5406_v0  ;;  %v2656_v46 = vsel %vm1375_vm3, %v6271_v33, %v5405_v30 }
 0xc7a   : > { %v2674_v8 = vsel %vm2670_vm6, %v2657_v25, %v6276_v40  ;;  %v2673_v14 = vsel %vm2670_vm6, %v2656_v46, %v6271_v33  ;;  %v2655_v28 = vsel %vm1375_vm3, %v6268_v29, %v5401_v20  ;;  %v2654_v41 = vsel %vm1375_vm3, %v6265_v27, %v5400_v44 }
 0xc7b   : > { %v2671_v15 = vsel %vm2670_vm6, %v2654_v41, %v6265_v27  ;;  %v2672_v2 = vsel %vm2670_vm6, %v2655_v28, %v6268_v29  ;;  %v2704_v6 = vpack.c.bf16 %v2674_v8, %v2673_v14  ;;  %v5697_v8 = vld [vmem:[%s6262_s6 + $0x60] sm:$0xff]  ;;  %v5698_v28 = vld [vmem:[%s6262_s6 + $0x68] sm:$0xff] }
 0xc7c   : > { %v2703_v42 = vpack.c.bf16 %v2672_v2, %v2671_v15 }
 0xc7e   : > { %v5414_v35 = vpop.permute.xlu1 %5413  ;;  %5137 = vmatprep.mubr.bf16.mxu0 %v2703_v42  ;;  %v5469_v42 = vld [vmem:[%s7413_s16 + $0x20] sm:$0xff]  }
 0xc7f   : > { %v5416_v40 = vunpack.i.h.bf16 %v5414_v35  ;;  %v5415_v58 = vunpack.i.l.bf16 %v5414_v35  ;;  %v5409_v12 = vpop.permute.xlu0 %5408  ;;  %5138 = vmatmul.mubr.bf16.vlgmr.msra.gmra.mrb[60].mxu0 %v2704_v6  ;;  %v5470_v6 = vld [vmem:[%s7413_s16 + $0x28] sm:$0xff]   ;;  %v5471_v35 = vld [vmem:[%s7413_s16 + $0x30] sm:$0xff]  }
 0xc80   : > { %v5411_v33 = vunpack.i.h.bf16 %v5409_v12  ;;  %v5410_v3 = vunpack.i.l.bf16 %v5409_v12 }
 0xc81   : > { %v2661_v37 = vsel %vm1375_vm3, %v6308_v51, %v5416_v40  ;;  %v2660_v43 = vsel %vm1375_vm3, %v6305_v50, %v5415_v58  ;;  %v5472_v40 = vld [vmem:[%s7413_s16 + $0x38] sm:$0xff]   ;;  %v6684_v58 = vld [vmem:[%s7412_s15] ss:$0 sm:$0xff] }
 0xc82   : > { %v2659_v27 = vsel %vm1375_vm3, %v6282_v22, %v5411_v33  ;;  %v2658_v29 = vsel %vm1375_vm3, %v6279_v21, %v5410_v3  ;;  %v2677_v32 = vsel %vm2670_vm6, %v2660_v43, %v6305_v50  ;;  %v2678_v47 = vsel %vm2670_vm6, %v2661_v37, %v6308_v51 }
 0xc83   : > { %v2675_v36 = vsel %vm2670_vm6, %v2658_v29, %v6279_v21  ;;  %v2676_v11 = vsel %vm2670_vm6, %v2659_v27, %v6282_v22  ;;  %v2706_v24 = vpack.c.bf16 %v2678_v47, %v2677_v32 }
 0xc84   : > { %v2705_v13 = vpack.c.bf16 %v2676_v11, %v2675_v36 }
 0xc86   : > { %v5424_v7 = vpop.permute.xlu1 %5423  ;;  %5141 = vmatprep.mubr.bf16.mxu0 %v2705_v13 }
 0xc87   : > { %v5426_v34 = vunpack.i.h.bf16 %v5424_v7  ;;  %v5425_v53 = vunpack.i.l.bf16 %v5424_v7  ;;  %v5419_v63 = vpop.permute.xlu0 %5418  ;;  %5142 = vmatmul.mubr.bf16.gmra.mrb[64].mxu0 %v2706_v24 }
 0xc88   : > { %v5421_v10 = vunpack.i.h.bf16 %v5419_v63  ;;  %v5420_v9 = vunpack.i.l.bf16 %v5419_v63 }
 0xc89   : > { %v2665_v50 = vsel %vm1375_vm3, %v6323_v57, %v5426_v34  ;;  %v2664_v51 = vsel %vm1375_vm3, %v6320_v55, %v5425_v53 }
 0xc8a   : > { %v2663_v21 = vsel %vm1375_vm3, %v6291_v45, %v5421_v10  ;;  %v2662_v22 = vsel %vm1375_vm3, %v6287_v31, %v5420_v9  ;;  %v2681_v26 = vsel %vm2670_vm6, %v2664_v51, %v6320_v55  ;;  %v2682_v62 = vsel %vm2670_vm6, %v2665_v50, %v6323_v57 }
 0xc8b   : > { %v2679_v1 = vsel %vm2670_vm6, %v2662_v22, %v6287_v31  ;;  %v2680_v17 = vsel %vm2670_vm6, %v2663_v21, %v6291_v45  ;;  %v2708_v39 = vpack.c.bf16 %v2682_v62, %v2681_v26 }
 0xc8c   : > { %v2707_v18 = vpack.c.bf16 %v2680_v17, %v2679_v1 }
 0xc8e   : > { %v5434_v16 = vpop.permute.xlu1 %5433  ;;  %5145 = vmatprep.mubr.bf16.mxu0 %v2707_v18 }
 0xc8f   : > { %v5436_v0 = vunpack.i.h.bf16 %v5434_v16  ;;  %v5435_v30 = vunpack.i.l.bf16 %v5434_v16  ;;  %v5429_v56 = vpop.permute.xlu0 %5428  ;;  %5146 = vmatmul.mubr.bf16.gmra.mrb[68].mxu0 %v2708_v39 }
 0xc90   : > { %v5431_v55 = vunpack.i.h.bf16 %v5429_v56  ;;  %v5430_v20 = vunpack.i.l.bf16 %v5429_v56 }
 0xc91   : > { %v2669_v57 = vsel %vm1375_vm3, %v6333_v61, %v5436_v0  ;;  %v2668_v31 = vsel %vm1375_vm3, %v6330_v60, %v5435_v30 }
 0xc92   : > { %v2667_v45 = vsel %vm1375_vm3, %v6302_v49, %v5431_v55  ;;  %v2666_v44 = vsel %vm1375_vm3, %v6299_v48, %v5430_v20  ;;  %v2685_v25 = vsel %vm2670_vm6, %v2668_v31, %v6330_v60  ;;  %v2686_v46 = vsel %vm2670_vm6, %v2669_v57, %v6333_v61  ;;  %v5465_v48 = vld [vmem:[%s7413_s16] sm:$0xff]   ;;  %v5466_v49 = vld [vmem:[%s7413_s16 + $0x8] sm:$0xff]   ;;  %v5467_v60 = vld [vmem:[%s7413_s16 + $0x10] sm:$0xff]  }
 0xc93   : > { %v2683_v14 = vsel %vm2670_vm6, %v2666_v44, %v5697_v8  ;;  %v2684_v41 = vsel %vm2670_vm6, %v2667_v45, %v5698_v28  ;;  %v2710_v2 = vpack.c.bf16 %v2686_v46, %v2685_v25  ;;  %5153 = vmatprep.subr.bf16.mxu1 %v5465_v48  ;;  %v5468_v61 = vld [vmem:[%s7413_s16 + $0x18] sm:$0xff]  }
 0xc94   : > { %v2709_v15 = vpack.c.bf16 %v2684_v41, %v2683_v14  ;;  %5154 = vmatpush3.bf16.msra.mxu1 %v5465_v48 }
 0xc95   : > { %5155 = vmatprep.subr.bf16.mxu1 %v5466_v49 }
 0xc96   : > { %5149 = vmatprep.mubr.bf16.mxu0 %v2709_v15 }
 0xc97   : > { %5150 = vmatmul.mubr.bf16.gmra.mrb[72].mxu0 %v2710_v2 }
 0xc98   : > { %5156 = vmatpush3.bf16.msra.mxu1 %v5466_v49 }
 0xc99   : > { %5157 = vmatprep.subr.bf16.mxu1 %v5467_v60 }
 0xc9c   : > { %5158 = vmatpush3.bf16.msra.mxu1 %v5467_v60 }
 0xc9d   : > { %5159 = vmatprep.subr.bf16.mxu1 %v5468_v61 }
 0xca0   : > { %5160 = vmatpush3.bf16.msra.mxu1 %v5468_v61 }
 0xca1   : > { %5161 = vmatprep.subr.bf16.mxu1 %v5469_v42 }
 0xca4   : > { %5162 = vmatpush3.bf16.msra.mxu1 %v5469_v42 }
 0xca5   : > { %5163 = vmatprep.subr.bf16.mxu1 %v5470_v6 }
 0xca8   : > { %5164 = vmatpush3.bf16.msra.mxu1 %v5470_v6 }
 0xca9   : > { %5165 = vmatprep.subr.bf16.mxu1 %v5471_v35 }
 0xcac   : > { %5166 = vmatpush3.bf16.msra.mxu1 %v5471_v35 }
 0xcad   : > { %5167 = vmatprep.subr.bf16.mxu1 %v5472_v40 }
 0xcb0   : > { %5168 = vmatpush3.bf16.msra.mxu1 %v5472_v40 }
 0xd52   : > { %v5139_v12 = vpop.f32.mrb[60].mxu0 }
 0xd53   : > { %v6687_v33 = vadd.f32 %v5139_v12, %v6684_v58  ;;  %v2800_v3 = vpop.f32.mrb[61].mxu0 }
 0xd54   : > { %v6690_v37 = vadd.f32 %v6684_v58, %v2800_v3  ;;  %v5140_v43 = vpop.f32.mrb[62].mxu0 }
 0xd55   : > { %v2865_v27 = vmul.f32 %v6687_v33, %v6687_v33  ;;  %v6695_v29 = vadd.f32 %v5140_v43, %v6684_v58  ;;  %v2803_v32 = vpop.f32.mrb[63].mxu0 }
 0xd56   : > { %v2863_v47 = vmul.f32 %v6690_v37, %v6690_v37  ;;  %v6700_v36 = vadd.f32 %v6684_v58, %v2803_v32 }
 0xd57   : > { %v2881_v11 = vmul.f32 %v2865_v27, %v6687_v33  ;;  %v2866_v13 = vmul.f32 %v6695_v29, %v6695_v29 }
 0xd58   : > { %v2879_v24 = vmul.f32 %v2863_v47, %v6690_v37  ;;  %v2864_v7 = vmul.f32 %v6700_v36, %v6700_v36 }
 0xd59   : > { %v2897_v34 = vmul.f32 0.044715, %v2881_v11  ;;  %v2882_v53 = vmul.f32 %v2866_v13, %v6695_v29 }
 0xd5a   : > { %v2895_v63 = vmul.f32 0.044715, %v2879_v24  ;;  %v2880_v10 = vmul.f32 %v2864_v7, %v6700_v36  ;;  %v5143_v9 = vpop.f32.mrb[64].mxu0 }
 0xd5b   : > { %v2913_v50 = vadd.f32 %v2897_v34, %v6687_v33  ;;  %v2898_v51 = vmul.f32 0.044715, %v2882_v53  ;;  %v6712_v21 = vadd.f32 %v5143_v9, %v6684_v58  ;;  %v2816_v22 = vpop.f32.mrb[65].mxu0 }
 0xd5c   : > { %v2911_v26 = vadd.f32 %v2895_v63, %v6690_v37  ;;  %v2896_v62 = vmul.f32 0.044715, %v2880_v10  ;;  %v6716_v1 = vadd.f32 %v6684_v58, %v2816_v22  ;;  %v5144_v17 = vpop.f32.mrb[66].mxu0 }
 0xd5d   : > { %v2929_v18 = vmul.f32 0.7978846, %v2913_v50  ;;  %v2914_v39 = vadd.f32 %v2898_v51, %v6695_v29  ;;  %v2869_v16 = vmul.f32 %v6712_v21, %v6712_v21  ;;  %v6722_v0 = vadd.f32 %v5144_v17, %v6684_v58  ;;  %v2819_v30 = vpop.f32.mrb[67].mxu0 }
 0xd5e   : > { %v2927_v56 = vmul.f32 0.7978846, %v2911_v26  ;;  %v2912_v55 = vadd.f32 %v2896_v62, %v6700_v36  ;;  %v2867_v20 = vmul.f32 %v6716_v1, %v6716_v1  ;;  %v6728_v57 = vadd.f32 %v6684_v58, %v2819_v30 }
 0xd5f   : > { %5559 = vtanh.f32 %v2929_v18  ;;  %v2930_v31 = vmul.f32 0.7978846, %v2914_v39  ;;  %v2885_v45 = vmul.f32 %v2869_v16, %v6712_v21  ;;  %v2870_v44 = vmul.f32 %v6722_v0, %v6722_v0 }
 0xd60   : > { %5561 = vtanh.f32 %v2927_v56  ;;  %v2928_v25 = vmul.f32 0.7978846, %v2912_v55  ;;  %v2883_v46 = vmul.f32 %v2867_v20, %v6716_v1  ;;  %v2868_v8 = vmul.f32 %v6728_v57, %v6728_v57 }
 0xd61   : > { %5563 = vtanh.f32 %v2930_v31  ;;  %v2901_v14 = vmul.f32 0.044715, %v2885_v45  ;;  %v2886_v28 = vmul.f32 %v2870_v44, %v6722_v0 }
 0xd62   : > { %v2899_v41 = vmul.f32 0.044715, %v2883_v46  ;;  %v2884_v15 = vmul.f32 %v2868_v8, %v6728_v57  ;;  %v5147_v2 = vpop.f32.mrb[68].mxu0  ;;  %5565 = vtanh.f32 %v2928_v25 }
 0xd63   : > { %v2917_v48 = vadd.f32 %v2901_v14, %v6712_v21  ;;  %v2902_v49 = vmul.f32 0.044715, %v2886_v28  ;;  %v6740_v60 = vadd.f32 %v5147_v2, %v6684_v58  ;;  %v2832_v61 = vpop.f32.mrb[69].mxu0 }
 0xd64   : > { %v2915_v42 = vadd.f32 %v2899_v41, %v6716_v1  ;;  %v2900_v6 = vmul.f32 0.044715, %v2884_v15  ;;  %v6744_v35 = vadd.f32 %v6684_v58, %v2832_v61  ;;  %v5148_v40 = vpop.f32.mrb[70].mxu0 }
 0xd65   : > { %v2933_v12 = vmul.f32 0.7978846, %v2917_v48  ;;  %v2918_v3 = vadd.f32 %v2902_v49, %v6722_v0  ;;  %v2873_v43 = vmul.f32 %v6740_v60, %v6740_v60  ;;  %v6750_v27 = vadd.f32 %v5148_v40, %v6684_v58  ;;  %v2835_v32 = vpop.f32.mrb[71].mxu0 }
 0xd66   : > { %v2931_v47 = vmul.f32 0.7978846, %v2915_v42  ;;  %v2916_v11 = vadd.f32 %v2900_v6, %v6728_v57  ;;  %v2871_v13 = vmul.f32 %v6744_v35, %v6744_v35  ;;  %v6756_v24 = vadd.f32 %v6684_v58, %v2835_v32 }
 0xd67   : > { %5567 = vtanh.f32 %v2933_v12  ;;  %v2934_v7 = vmul.f32 0.7978846, %v2918_v3  ;;  %v2889_v34 = vmul.f32 %v2873_v43, %v6740_v60  ;;  %v2874_v53 = vmul.f32 %v6750_v27, %v6750_v27 }
 0xd68   : > { %5569 = vtanh.f32 %v2931_v47  ;;  %v2932_v63 = vmul.f32 0.7978846, %v2916_v11  ;;  %v2887_v10 = vmul.f32 %v2871_v13, %v6744_v35  ;;  %v2872_v9 = vmul.f32 %v6756_v24, %v6756_v24 }
 0xd69   : > { %v5560_v50 = vpop.eup %5559  ;;  %5571 = vtanh.f32 %v2934_v7  ;;  %v2905_v51 = vmul.f32 0.044715, %v2889_v34  ;;  %v2890_v22 = vmul.f32 %v2874_v53, %v6750_v27 }
 0xd6a   : > { %v5562_v26 = vpop.eup %5561  ;;  %v2961_v62 = vadd.f32 1.0, %v5560_v50  ;;  %5573 = vtanh.f32 %v2932_v63  ;;  %v2903_v17 = vmul.f32 0.044715, %v2887_v10  ;;  %v2888_v18 = vmul.f32 %v2872_v9, %v6756_v24  ;;  %v5151_v39 = vpop.f32.mrb[72].mxu0 }
 0xd6b   : > { %v5564_v16 = vpop.eup %5563  ;;  %v2921_v30 = vadd.f32 %v2905_v51, %v6740_v60  ;;  %v2906_v56 = vmul.f32 0.044715, %v2890_v22  ;;  %v6768_v55 = vadd.f32 %v5151_v39, %v6684_v58  ;;  %v2848_v20 = vpop.f32.mrb[73].mxu0  ;;  %v2959_v31 = vadd.f32 1.0, %v5562_v26 }
 0xd6c   : > { %v2977_v45 = vmul.f32 0.5, %v2961_v62  ;;  %v2962_v44 = vadd.f32 1.0, %v5564_v16  ;;  %v2919_v25 = vadd.f32 %v2903_v17, %v6744_v35  ;;  %v2904_v46 = vmul.f32 0.044715, %v2888_v18  ;;  %v5152_v8 = vpop.f32.mrb[74].mxu0  ;;  %v5566_v48 = vpop.eup %5565 }
 0xd6d   : > { %v2937_v14 = vmul.f32 0.7978846, %v2921_v30  ;;  %v2922_v28 = vadd.f32 %v2906_v56, %v6750_v27  ;;  %v2877_v41 = vmul.f32 %v6768_v55, %v6768_v55  ;;  %v6775_v15 = vadd.f32 %v6684_v58, %v2848_v20  ;;  %v2851_v2 = vpop.f32.mrb[75].mxu0 }
 0xd6e   : > { %v2993_v49 = vmul.f32 %v2977_v45, %v6687_v33  ;;  %v2978_v61 = vmul.f32 0.5, %v2962_v44  ;;  %v2935_v42 = vmul.f32 0.7978846, %v2919_v25  ;;  %v2920_v6 = vadd.f32 %v2904_v46, %v6756_v24 }
 0xd6f   : > { %5575 = vtanh.f32 %v2937_v14  ;;  %v2938_v40 = vmul.f32 0.7978846, %v2922_v28  ;;  %v2893_v12 = vmul.f32 %v2877_v41, %v6768_v55  ;;  %v2875_v3 = vmul.f32 %v6775_v15, %v6775_v15 }
 0xd70   : > { %v2994_v43 = vmul.f32 %v2978_v61, %v6695_v29  ;;  %5577 = vtanh.f32 %v2935_v42  ;;  %v2936_v32 = vmul.f32 0.7978846, %v2920_v6  ;;  %v6784_v47 = vadd.f32 %v5152_v8, %v6684_v58 }
 0xd71   : > { %v5568_v11 = vpop.eup %5567  ;;  %5579 = vtanh.f32 %v2938_v40  ;;  %v2909_v33 = vmul.f32 0.044715, %v2893_v12  ;;  %v2891_v13 = vmul.f32 %v2875_v3, %v6775_v15  ;;  %v6788_v7 = vadd.f32 %v6684_v58, %v2851_v2 }
 0xd72   : > { %v5570_v34 = vpop.eup %5569  ;;  %v3024_v53 = vpack.c.bf16 %v2994_v43, %v2993_v49  ;;  %5581 = vtanh.f32 %v2936_v32  ;;  %v2878_v63 = vmul.f32 %v6784_v47, %v6784_v47  ;;  %v2960_v29 = vadd.f32 1.0, %v5566_v48 }
 0xd73   : > { %v5572_v10 = vpop.eup %5571  ;;  %v2925_v9 = vadd.f32 %v2909_v33, %v6768_v55  ;;  %v2907_v50 = vmul.f32 0.044715, %v2891_v13  ;;  %v2876_v51 = vmul.f32 %v6788_v7, %v6788_v7  ;;  %v2975_v22 = vmul.f32 0.5, %v2959_v31 }
 0xd74   : > { %v5574_v26 = vpop.eup %5573  ;;  %v2894_v62 = vmul.f32 %v2878_v63, %v6784_v47  ;;  %v2976_v58 = vmul.f32 0.5, %v2960_v29  ;;  %v2963_v17 = vadd.f32 1.0, %v5570_v34  ;;  %v2965_v18 = vadd.f32 1.0, %v5568_v11 }
 0xd75   : > { %v2941_v39 = vmul.f32 0.7978846, %v2925_v9  ;;  %v2923_v16 = vadd.f32 %v2907_v50, %v6775_v15  ;;  %v2892_v30 = vmul.f32 %v2876_v51, %v6788_v7  ;;  %v2991_v56 = vmul.f32 %v2975_v22, %v6690_v37 }
 0xd76   : > { %v2910_v20 = vmul.f32 0.044715, %v2894_v62  ;;  %v2992_v45 = vmul.f32 %v2976_v58, %v6700_v36  ;;  %v2964_v44 = vadd.f32 1.0, %v5574_v26  ;;  %v2979_v25 = vmul.f32 0.5, %v2963_v17 }
 0xd77   : > { %5583 = vtanh.f32 %v2941_v39  ;;  %v2939_v31 = vmul.f32 0.7978846, %v2923_v16  ;;  %v2908_v46 = vmul.f32 0.044715, %v2892_v30  ;;  %v2966_v8 = vadd.f32 1.0, %v5572_v10 }
 0xd78   : > { %v2926_v14 = vadd.f32 %v2910_v20, %v6784_v47  ;;  %v3023_v28 = vpack.c.bf16 %v2992_v45, %v2991_v56  ;;  %v2980_v41 = vmul.f32 0.5, %v2964_v44  ;;  %v2981_v49 = vmul.f32 0.5, %v2965_v18 }
 0xd79   : > { %v5576_v2 = vpop.eup %5575  ;;  %5585 = vtanh.f32 %v2939_v31  ;;  %v2924_v48 = vadd.f32 %v2908_v46, %v6788_v7  ;;  %v2982_v61 = vmul.f32 0.5, %v2966_v8  ;;  %v2995_v36 = vmul.f32 %v2979_v25, %v6716_v1  ;;  %v4693_v46 = vld [vmem:[%s7414_s17] ss:$0 sm:$0xff] }
 0xd7a   : > { %v5578_v37 = vpop.eup %5577  ;;  %v2942_v42 = vmul.f32 0.7978846, %v2926_v14  ;;  %5169 = vmatprep.mubr.bf16.mxu1 %v3023_v28  ;;  %v2996_v6 = vmul.f32 %v2980_v41, %v6728_v57  ;;  %v2969_v40 = vadd.f32 1.0, %v5576_v2  ;;  %v2997_v43 = vmul.f32 %v2981_v49, %v6712_v21 }
 0xd7b   : > { %v5580_v12 = vpop.eup %5579  ;;  %v2940_v3 = vmul.f32 0.7978846, %v2924_v48  ;;  %5170 = vmatmul.mubr.bf16.vlgmr.msra.gmra.mrb[36].mxu1 %v3024_v53  ;;  %v2998_v32 = vmul.f32 %v2982_v61, %v6722_v0  ;;  %v2967_v11 = vadd.f32 1.0, %v5578_v37 }
 0xd7c   : > { %v5582_v33 = vpop.eup %5581  ;;  %5587 = vtanh.f32 %v2942_v42  ;;  %v3025_v13 = vpack.c.bf16 %v2996_v6, %v2995_v36  ;;  %v2970_v34 = vadd.f32 1.0, %v5580_v12  ;;  %v2985_v63 = vmul.f32 0.5, %v2969_v40 }
 0xd7d   : > { %5589 = vtanh.f32 %v2940_v3  ;;  %v3026_v29 = vpack.c.bf16 %v2998_v32, %v2997_v43  ;;  %v2968_v10 = vadd.f32 1.0, %v5582_v33  ;;  %v2983_v1 = vmul.f32 0.5, %v2967_v11 }
 0xd7e   : > { %5173 = vmatprep.mubr.bf16.mxu1 %v3025_v13  ;;  %v2986_v57 = vmul.f32 0.5, %v2970_v34  ;;  %v3001_v50 = vmul.f32 %v2985_v63, %v6740_v60 }
 0xd7f   : > { %v2984_v9 = vmul.f32 0.5, %v2968_v10  ;;  %v2999_v0 = vmul.f32 %v2983_v1, %v6744_v35 }
 0xd80   : > { %v3002_v53 = vmul.f32 %v2986_v57, %v6750_v27 }
 0xd81   : > { %v5584_v21 = vpop.eup %5583  ;;  %v3000_v51 = vmul.f32 %v2984_v9, %v6756_v24 }
 0xd82   : > { %v3028_v22 = vpack.c.bf16 %v3002_v53, %v3001_v50  ;;  %v2973_v58 = vadd.f32 1.0, %v5584_v21 }
 0xd83   : > { %v5586_v26 = vpop.eup %5585  ;;  %5174 = vmatmul.mubr.bf16.gmra.mrb[40].mxu1 %v3026_v29  ;;  %v3027_v62 = vpack.c.bf16 %v3000_v51, %v2999_v0 }
 0xd84   : > { %v2971_v17 = vadd.f32 1.0, %v5586_v26  ;;  %v2989_v30 = vmul.f32 0.5, %v2973_v58 }
 0xd85   : > { %5177 = vmatprep.mubr.bf16.mxu1 %v3027_v62 }
 0xd86   : > { %v5588_v18 = vpop.eup %5587  ;;  %v2987_v60 = vmul.f32 0.5, %v2971_v17  ;;  %v3005_v35 = vmul.f32 %v2989_v30, %v6768_v55 }
 0xd87   : > { %v5590_v39 = vpop.eup %5589  ;;  %v2974_v16 = vadd.f32 1.0, %v5588_v18 }
 0xd88   : > { %v2972_v56 = vadd.f32 1.0, %v5590_v39  ;;  %v3003_v45 = vmul.f32 %v2987_v60, %v6775_v15 }
 0xd89   : > { %v2990_v20 = vmul.f32 0.5, %v2974_v16 }
 0xd8a   : > { %v2988_v27 = vmul.f32 0.5, %v2972_v56 }
 0xd8b   : > { %5178 = vmatmul.mubr.bf16.gmra.mrb[44].mxu1 %v3028_v22  ;;  %v3006_v24 = vmul.f32 %v2990_v20, %v6784_v47 }
 0xd8c   : > { %v3004_v44 = vmul.f32 %v2988_v27, %v6788_v7  ;;  %v5473_v27 = vld [vmem:[%s7417_s20] sm:$0xff]  }
 0xd8d   : > { %v3030_v25 = vpack.c.bf16 %v3006_v24, %v3005_v35  ;;  %5185 = vmatprep.subr.bf16.mxu0 %v5473_v27 }
 0xd8e   : > { %v3029_v31 = vpack.c.bf16 %v3004_v44, %v3003_v45  ;;  %5186 = vmatpush3.bf16.msra.mxu0 %v5473_v27 }
 0xd90   : > { %5181 = vmatprep.mubr.bf16.mxu1 %v3029_v31 }
 0xd93   : > { %5182 = vmatmul.mubr.bf16.gmra.mrb[48].mxu1 %v3030_v25 }
 0xe4e   : > { %v5171_v8 = vpop.f32.mrb[36].mxu1 }
 0xe4f   : > { %v3120_v14 = vpop.f32.mrb[37].mxu1  ;;  %v6819_v2 = vadd.f32 %v5171_v8, %v4693_v46 }
 0xe50   : > { %v6817_v28 = vadd.f32 %v4693_v46, %v3120_v14  ;;  %v5172_v41 = vpop.f32.mrb[38].mxu1 }
 0xe51   : > { %v3123_v55 = vpop.f32.mrb[39].mxu1  ;;  %v6827_v48 = vadd.f32 %v5172_v41, %v4693_v46  ;;  %v3191_v61 = vsel %vm825_vm0, %v6819_v2, 0.0 }
 0xe52   : > { %v6821_v47 = vadd.f32 %v4693_v46, %v3123_v55  ;;  %v3185_v15 = vsel %vm825_vm0, %v6817_v28, 0.0 }
 0xe53   : > { %3186 = vadd.xlane.f32.xlu0 %v3185_v15  ;;  %v3194_v12 = vsel %vm825_vm0, %v6827_v48, 0.0 }
 0xe54   : > { %v3188_v7 = vsel %vm825_vm0, %v6821_v47, 0.0 }
 0xe55   : > { %3189 = vadd.xlane.f32.xlu1 %v3188_v7 }
 0xe56   : > { %v5175_v49 = vpop.f32.mrb[40].mxu1 }
 0xe57   : > { %v3136_v37 = vpop.f32.mrb[41].mxu1  ;;  %3192 = vadd.xlane.f32.xlu0 %v3191_v61  ;;  %v6841_v32 = vadd.f32 %v5175_v49, %v4693_v46 }
 0xe58   : > { %v5176_v42 = vpop.f32.mrb[42].mxu1  ;;  %v6831_v6 = vadd.f32 %v4693_v46, %v3136_v37 }
 0xe59   : > { %v3139_v36 = vpop.f32.mrb[43].mxu1  ;;  %v6837_v3 = vadd.f32 %v5176_v42, %v4693_v46  ;;  %v3203_v57 = vsel %vm825_vm0, %v6841_v32, 0.0 }
 0xe5a   : > { %v6833_v40 = vadd.f32 %v4693_v46, %v3139_v36  ;;  %v3197_v33 = vsel %vm825_vm0, %v6831_v6, 0.0 }
 0xe5b   : > { %3195 = vadd.xlane.f32.xlu0 %v3194_v12  ;;  %v3206_v63 = vsel %vm825_vm0, %v6837_v3, 0.0 }
 0xe5c   : > { %v3200_v43 = vsel %vm825_vm0, %v6833_v40, 0.0 }
 0xe5d   : > { %3201 = vadd.xlane.f32.xlu1 %v3200_v43 }
 0xe5e   : > { %v5179_v11 = vpop.f32.mrb[44].mxu1 }
 0xe5f   : > { %v3152_v13 = vpop.f32.mrb[45].mxu1  ;;  %3198 = vadd.xlane.f32.xlu0 %v3197_v33  ;;  %v6857_v53 = vadd.f32 %v5179_v11, %v4693_v46 }
 0xe60   : > { %v5180_v34 = vpop.f32.mrb[46].mxu1  ;;  %v6847_v10 = vadd.f32 %v4693_v46, %v3152_v13 }
 0xe61   : > { %v3155_v29 = vpop.f32.mrb[47].mxu1  ;;  %3207 = vadd.xlane.f32.xlu1 %v3206_v63  ;;  %v6853_v9 = vadd.f32 %v5180_v34, %v4693_v46  ;;  %v3215_v18 = vsel %vm825_vm0, %v6857_v53, 0.0 }
 0xe62   : > { %v6849_v1 = vadd.f32 %v4693_v46, %v3155_v29  ;;  %v3209_v0 = vsel %vm825_vm0, %v6847_v10, 0.0 }
 0xe63   : > { %3204 = vadd.xlane.f32.xlu0 %v3203_v57  ;;  %v3218_v26 = vsel %vm825_vm0, %v6853_v9, 0.0 }
 0xe64   : > { %v3212_v50 = vsel %vm825_vm0, %v6849_v1, 0.0 }
 0xe65   : > { %3213 = vadd.xlane.f32.xlu1 %v3212_v50 }
 0xe66   : > { %v5183_v21 = vpop.f32.mrb[48].mxu1 }
 0xe67   : > { %v3168_v51 = vpop.f32.mrb[49].mxu1  ;;  %3210 = vadd.xlane.f32.xlu0 %v3209_v0  ;;  %v6873_v30 = vadd.f32 %v5183_v21, %v4693_v46 }
 0xe68   : > { %v5184_v22 = vpop.f32.mrb[50].mxu1  ;;  %v6863_v58 = vadd.f32 %v4693_v46, %v3168_v51 }
 0xe69   : > { %v3171_v62 = vpop.f32.mrb[51].mxu1  ;;  %3219 = vadd.xlane.f32.xlu1 %v3218_v26  ;;  %v6869_v39 = vadd.f32 %v5184_v22, %v4693_v46  ;;  %v3227_v20 = vsel %vm825_vm0, %v6873_v30, 0.0 }
 0xe6a   : > { %v6865_v17 = vadd.f32 %v4693_v46, %v3171_v62  ;;  %v3221_v56 = vsel %vm825_vm0, %v6863_v58, 0.0 }
 0xe6b   : > { %3216 = vadd.xlane.f32.xlu0 %v3215_v18  ;;  %v3230_v60 = vsel %vm825_vm0, %v6869_v39, 0.0 }
 0xe6c   : > { %v3224_v16 = vsel %vm825_vm0, %v6865_v17, 0.0 }
 0xe6d   : > { %3225 = vadd.xlane.f32.xlu1 %v3224_v16 }
 0xe6f   : > { %3222 = vadd.xlane.f32.xlu0 %v3221_v56 }
 0xe71   : > { %3231 = vadd.xlane.f32.xlu1 %v3230_v60 }
 0xe73   : > { %3228 = vadd.xlane.f32.xlu0 %v3227_v20 }
 0xee0   : > { %v3187_v35 = vpop.xlane.xlu0 %3186 }
 0xee1   : > { %v3233_v24 = vmul.f32 0.03125, %v3187_v35 }
 0xee2   : > { %v3190_v45 = vpop.xlane.xlu1 %3189 }
 0xee3   : > { %v6885_v44 = vsub.f32 %v6817_v28, %v3233_v24  ;;  %v3234_v25 = vmul.f32 0.03125, %v3190_v45 }
 0xee4   : > { %v3193_v31 = vpop.xlane.xlu0 %3192 }
 0xee5   : > { %v6888_v46 = vsub.f32 %v6821_v47, %v3234_v25  ;;  %v3235_v8 = vmul.f32 0.03125, %v3193_v31  ;;  %v3265_v14 = vmul.f32 %v6885_v44, %v6885_v44 }
 0xee7   : > { %v6893_v41 = vsub.f32 %v6819_v2, %v3235_v8  ;;  %v3281_v55 = vsel %vm825_vm0, %v3265_v14, 0.0  ;;  %v3266_v15 = vmul.f32 %v6888_v46, %v6888_v46 }
 0xee8   : > { %3282 = vadd.xlane.f32.xlu0 %v3281_v55  ;;  %v3196_v28 = vpop.xlane.xlu0 %3195 }
 0xee9   : > { %v3236_v7 = vmul.f32 0.03125, %v3196_v28  ;;  %v3284_v49 = vsel %vm825_vm0, %v3266_v15, 0.0  ;;  %v3267_v47 = vmul.f32 %v6893_v41, %v6893_v41 }
 0xeea   : > { %3285 = vadd.xlane.f32.xlu1 %v3284_v49  ;;  %v3202_v61 = vpop.xlane.xlu1 %3201 }
 0xeeb   : > { %v6902_v37 = vsub.f32 %v6827_v48, %v3236_v7  ;;  %v3238_v2 = vmul.f32 0.03125, %v3202_v61  ;;  %v3287_v42 = vsel %vm825_vm0, %v3267_v47, 0.0 }
 0xeec   : > { %3288 = vadd.xlane.f32.xlu0 %v3287_v42  ;;  %v3199_v36 = vpop.xlane.xlu0 %3198 }
 0xeed   : > { %v6906_v12 = vsub.f32 %v6833_v40, %v3238_v2  ;;  %v3237_v43 = vmul.f32 0.03125, %v3199_v36  ;;  %v3268_v11 = vmul.f32 %v6902_v37, %v6902_v37 }
 0xeee   : > { %v3208_v33 = vpop.xlane.xlu1 %3207 }
 0xeef   : > { %v6911_v13 = vsub.f32 %v6831_v6, %v3237_v43  ;;  %v3240_v34 = vmul.f32 0.03125, %v3208_v33  ;;  %v3290_v48 = vsel %vm825_vm0, %v3268_v11, 0.0  ;;  %v3270_v63 = vmul.f32 %v6906_v12, %v6906_v12 }
 0xef0   : > { %3291 = vadd.xlane.f32.xlu1 %v3290_v48  ;;  %v3205_v29 = vpop.xlane.xlu0 %3204 }
 0xef1   : > { %v6917_v57 = vsub.f32 %v6837_v3, %v3240_v34  ;;  %v3239_v40 = vmul.f32 0.03125, %v3205_v29  ;;  %v3269_v50 = vmul.f32 %v6911_v13, %v6911_v13  ;;  %v3296_v0 = vsel %vm825_vm0, %v3270_v63, 0.0 }
 0xef2   : > { %v3214_v21 = vpop.xlane.xlu1 %3213 }
 0xef3   : > { %v6923_v6 = vsub.f32 %v6841_v32, %v3239_v40  ;;  %v3242_v51 = vmul.f32 0.03125, %v3214_v21  ;;  %v3293_v22 = vsel %vm825_vm0, %v3269_v50, 0.0  ;;  %v3272_v26 = vmul.f32 %v6917_v57, %v6917_v57 }
 0xef4   : > { %3297 = vadd.xlane.f32.xlu1 %v3296_v0  ;;  %3294 = vadd.xlane.f32.xlu0 %v3293_v22  ;;  %v3211_v3 = vpop.xlane.xlu0 %3210 }
 0xef5   : > { %v6929_v62 = vsub.f32 %v6849_v1, %v3242_v51  ;;  %v3241_v18 = vmul.f32 0.03125, %v3211_v3  ;;  %v3271_v16 = vmul.f32 %v6923_v6, %v6923_v6  ;;  %v3302_v32 = vsel %vm825_vm0, %v3272_v26, 0.0 }
 0xef6   : > { %v3220_v56 = vpop.xlane.xlu1 %3219 }
 0xef7   : > { %v6935_v60 = vsub.f32 %v6847_v10, %v3241_v18  ;;  %v3244_v20 = vmul.f32 0.03125, %v3220_v56  ;;  %v3299_v27 = vsel %vm825_vm0, %v3271_v16, 0.0  ;;  %v3274_v35 = vmul.f32 %v6929_v62, %v6929_v62 }
 0xef8   : > { %3303 = vadd.xlane.f32.xlu1 %v3302_v32  ;;  %3300 = vadd.xlane.f32.xlu0 %v3299_v27  ;;  %v3217_v1 = vpop.xlane.xlu0 %3216 }
 0xef9   : > { %v6941_v24 = vsub.f32 %v6853_v9, %v3244_v20  ;;  %v3243_v45 = vmul.f32 0.03125, %v3217_v1  ;;  %v3273_v25 = vmul.f32 %v6935_v60, %v6935_v60  ;;  %v3308_v10 = vsel %vm825_vm0, %v3274_v35, 0.0 }
 0xefa   : > { %v3226_v31 = vpop.xlane.xlu1 %3225 }
 0xefb   : > { %v6947_v8 = vsub.f32 %v6857_v53, %v3243_v45  ;;  %v3246_v14 = vmul.f32 0.03125, %v3226_v31  ;;  %v3305_v55 = vsel %vm825_vm0, %v3273_v25, 0.0  ;;  %v3276_v15 = vmul.f32 %v6941_v24, %v6941_v24  ;;  %v6986_v31 = vld [vmem:[%s7415_s18] ss:$0 sm:$0xff] }
 0xefc   : > { %3309 = vadd.xlane.f32.xlu1 %v3308_v10  ;;  %3306 = vadd.xlane.f32.xlu0 %v3305_v55  ;;  %v3223_v9 = vpop.xlane.xlu0 %3222 }
 0xefd   : > { %v6953_v28 = vsub.f32 %v6865_v17, %v3246_v14  ;;  %v3245_v7 = vmul.f32 0.03125, %v3223_v9  ;;  %v3275_v49 = vmul.f32 %v6947_v8, %v6947_v8  ;;  %v3314_v53 = vsel %vm825_vm0, %v3276_v15, 0.0 }
 0xefe   : > { %v3232_v47 = vpop.xlane.xlu1 %3231 }
 0xeff   : > { %v6959_v61 = vsub.f32 %v6863_v58, %v3245_v7  ;;  %v3248_v2 = vmul.f32 0.03125, %v3232_v47  ;;  %v3311_v42 = vsel %vm825_vm0, %v3275_v49, 0.0  ;;  %v3278_v36 = vmul.f32 %v6953_v28, %v6953_v28 }
 0xf00   : > { %3315 = vadd.xlane.f32.xlu1 %v3314_v53  ;;  %3312 = vadd.xlane.f32.xlu0 %v3311_v42  ;;  %v3229_v17 = vpop.xlane.xlu0 %3228 }
 0xf01   : > { %v6965_v43 = vsub.f32 %v6869_v39, %v3248_v2  ;;  %v3247_v11 = vmul.f32 0.03125, %v3229_v17  ;;  %v3277_v33 = vmul.f32 %v6959_v61, %v6959_v61  ;;  %v3320_v58 = vsel %vm825_vm0, %v3278_v36, 0.0  ;;  %v6994_v36 = vld [vmem:[%s7416_s19] ss:$0 sm:$0xff] }
 0xf03   : > { %v6970_v34 = vsub.f32 %v6873_v30, %v3247_v11  ;;  %v3317_v48 = vsel %vm825_vm0, %v3277_v33, 0.0  ;;  %v3280_v63 = vmul.f32 %v6965_v43, %v6965_v43  ;;  %v5474_v30 = vld [vmem:[%s7417_s20 + $0x8] sm:$0xff]  }
 0xf04   : > { %3321 = vadd.xlane.f32.xlu1 %v3320_v58  ;;  %3318 = vadd.xlane.f32.xlu0 %v3317_v48 }
 0xf05   : > { %v3279_v39 = vmul.f32 %v6970_v34, %v6970_v34  ;;  %v3326_v29 = vsel %vm825_vm0, %v3280_v63, 0.0  ;;  %5187 = vmatprep.subr.bf16.mxu0 %v5474_v30 }
 0xf06   : > { %5188 = vmatpush3.bf16.msra.mxu0 %v5474_v30 }
 0xf07   : > { %v3323_v40 = vsel %vm825_vm0, %v3279_v39, 0.0 }
 0xf08   : > { %3327 = vadd.xlane.f32.xlu1 %v3326_v29  ;;  %3324 = vadd.xlane.f32.xlu0 %v3323_v40 }
 0xf75   : > { %v3283_v50 = vpop.xlane.xlu0 %3282 }
 0xf76   : > { %v3329_v21 = vmul.f32 0.03125, %v3283_v50 }
 0xf77   : > { %v3286_v0 = vpop.xlane.xlu1 %3285 }
 0xf78   : > { %v3345_v51 = vadd.f32 1e-05, %v3329_v21  ;;  %v3330_v22 = vmul.f32 0.03125, %v3286_v0 }
 0xf79   : > { %v3289_v26 = vpop.xlane.xlu0 %3288 }
 0xf7a   : > { %5591 = vrsqrt.f32 %v3345_v51  ;;  %v3346_v3 = vadd.f32 1e-05, %v3330_v22  ;;  %v3331_v18 = vmul.f32 0.03125, %v3289_v26 }
 0xf7c   : > { %5593 = vrsqrt.f32 %v3346_v3  ;;  %v3347_v16 = vadd.f32 1e-05, %v3331_v18 }
 0xf7d   : > { %v3292_v56 = vpop.xlane.xlu1 %3291 }
 0xf7e   : > { %5595 = vrsqrt.f32 %v3347_v16  ;;  %v3332_v32 = vmul.f32 0.03125, %v3292_v56 }
 0xf80   : > { %v3348_v20 = vadd.f32 1e-05, %v3332_v32 }
 0xf81   : > { %v3298_v27 = vpop.xlane.xlu1 %3297  ;;  %v3295_v35 = vpop.xlane.xlu0 %3294 }
 0xf82   : > { %5597 = vrsqrt.f32 %v3348_v20  ;;  %v3334_v1 = vmul.f32 0.03125, %v3298_v27  ;;  %v3333_v45 = vmul.f32 0.03125, %v3295_v35 }
 0xf84   : > { %v5592_v25 = vpop.eup %5591  ;;  %v3350_v10 = vadd.f32 1e-05, %v3334_v1  ;;  %v3349_v14 = vadd.f32 1e-05, %v3333_v45 }
 0xf85   : > { %v3377_v55 = vmul.f32 %v5592_v25, %v6885_v44  ;;  %v3304_v15 = vpop.xlane.xlu1 %3303  ;;  %v3301_v9 = vpop.xlane.xlu0 %3300 }
 0xf86   : > { %v5594_v7 = vpop.eup %5593  ;;  %5599 = vrsqrt.f32 %v3350_v10  ;;  %v3336_v49 = vmul.f32 0.03125, %v3304_v15  ;;  %v3335_v47 = vmul.f32 0.03125, %v3301_v9 }
 0xf87   : > { %v3378_v53 = vmul.f32 %v5594_v7, %v6888_v46  ;;  %5601 = vrsqrt.f32 %v3349_v14  ;;  %v3399_v2 = vmul.f32 %v6986_v31, %v3377_v55 }
 0xf88   : > { %v5596_v42 = vpop.eup %5595  ;;  %v3352_v17 = vadd.f32 1e-05, %v3336_v49  ;;  %v3351_v11 = vadd.f32 1e-05, %v3335_v47 }
 0xf89   : > { %v3379_v44 = vmul.f32 %v5596_v42, %v6893_v41  ;;  %v3310_v33 = vpop.xlane.xlu1 %3309  ;;  %v3307_v58 = vpop.xlane.xlu0 %3306  ;;  %v3400_v48 = vmul.f32 %v6986_v31, %v3378_v53  ;;  %v6999_v39 = vadd.f32 %v6994_v36, %v3399_v2 }
 0xf8a   : > { %5603 = vrsqrt.f32 %v3352_v17  ;;  %v3338_v63 = vmul.f32 0.03125, %v3310_v33  ;;  %v3337_v46 = vmul.f32 0.03125, %v3307_v58 }
 0xf8b   : > { %5605 = vrsqrt.f32 %v3351_v11  ;;  %v7002_v29 = vadd.f32 %v6994_v36, %v3400_v48  ;;  %v3401_v21 = vmul.f32 %v6986_v31, %v3379_v44 }
 0xf8c   : > { %v5598_v40 = vpop.eup %5597  ;;  %v3354_v30 = vadd.f32 1e-05, %v3338_v63  ;;  %v3353_v50 = vadd.f32 1e-05, %v3337_v46 }
 0xf8d   : > { %v3380_v41 = vmul.f32 %v5598_v40, %v6902_v37  ;;  %v3316_v0 = vpop.xlane.xlu1 %3315  ;;  %v3313_v51 = vpop.xlane.xlu0 %3312  ;;  %v3441_v22 = vpack.c.bf16 %v7002_v29, %v6999_v39  ;;  %v7011_v27 = vadd.f32 %v6994_v36, %v3401_v21 }
 0xf8e   : > { %5607 = vrsqrt.f32 %v3354_v30  ;;  %v3340_v26 = vmul.f32 0.03125, %v3316_v0  ;;  %v3339_v3 = vmul.f32 0.03125, %v3313_v51 }
 0xf8f   : > { %v3402_v18 = vmul.f32 %v6986_v31, %v3380_v41  ;;  %5609 = vrsqrt.f32 %v3353_v50  ;;  %5189 = vmatprep.mubr.msk.bf16.mxu0 %vm825_vm0, %v3441_v22 }
 0xf90   : > { %v5600_v16 = vpop.eup %5599  ;;  %v3356_v56 = vadd.f32 1e-05, %v3340_v26  ;;  %v3355_v32 = vadd.f32 1e-05, %v3339_v3 }
 0xf91   : > { %v5602_v20 = vpop.eup %5601  ;;  %v7014_v37 = vadd.f32 %v6994_v36, %v3402_v18  ;;  %v3382_v35 = vmul.f32 %v5600_v16, %v6906_v12  ;;  %v3322_v1 = vpop.xlane.xlu1 %3321 }
 0xf92   : > { %v3319_v45 = vpop.xlane.xlu0 %3318  ;;  %v3381_v25 = vmul.f32 %v5602_v20, %v6911_v13  ;;  %5611 = vrsqrt.f32 %v3356_v56  ;;  %v3342_v10 = vmul.f32 0.03125, %v3322_v1 }
 0xf93   : > { %v3341_v14 = vmul.f32 0.03125, %v3319_v45  ;;  %5613 = vrsqrt.f32 %v3355_v32  ;;  %v3442_v55 = vpack.c.bf16 %v7014_v37, %v7011_v27  ;;  %v3404_v15 = vmul.f32 %v6986_v31, %v3382_v35 }
 0xf94   : > { %v5604_v9 = vpop.eup %5603  ;;  %v3358_v7 = vadd.f32 1e-05, %v3342_v10  ;;  %v3403_v47 = vmul.f32 %v6986_v31, %v3381_v25 }
 0xf95   : > { %v3357_v49 = vadd.f32 1e-05, %v3341_v14  ;;  %v5606_v53 = vpop.eup %5605  ;;  %v3384_v12 = vmul.f32 %v5604_v9, %v6917_v57  ;;  %v3328_v2 = vpop.xlane.xlu1 %3327  ;;  %5190 = vmatmul.mubr.msk.bf16.vlgmr.msra.gmra.mrb[76].mxu0 %vm825_vm0, %v3442_v55  ;;  %v3426_v42 = vadd.f32 %v6994_v36, %v3404_v15 }
 0xf96   : > { %v3325_v13 = vpop.xlane.xlu0 %3324  ;;  %v3383_v17 = vmul.f32 %v5606_v53, %v6923_v6  ;;  %5615 = vrsqrt.f32 %v3358_v7  ;;  %v3344_v11 = vmul.f32 0.03125, %v3328_v2  ;;  %v3425_v33 = vadd.f32 %v6994_v36, %v3403_v47 }
 0xf97   : > { %v3343_v44 = vmul.f32 0.03125, %v3325_v13  ;;  %5617 = vrsqrt.f32 %v3357_v49  ;;  %v3406_v58 = vmul.f32 %v6986_v31, %v3384_v12 }
 0xf98   : > { %v5608_v48 = vpop.eup %5607  ;;  %v3360_v63 = vadd.f32 1e-05, %v3344_v11  ;;  %v3405_v57 = vmul.f32 %v6986_v31, %v3383_v17  ;;  %v3443_v50 = vpack.c.bf16 %v3426_v42, %v3425_v33 }
 0xf99   : > { %v3359_v46 = vadd.f32 1e-05, %v3343_v44  ;;  %v5610_v40 = vpop.eup %5609  ;;  %v3386_v30 = vmul.f32 %v5608_v48, %v6929_v62  ;;  %v3428_v21 = vadd.f32 %v6994_v36, %v3406_v58 }
 0xf9a   : > { %v3385_v6 = vmul.f32 %v5610_v40, %v6935_v60  ;;  %5619 = vrsqrt.f32 %v3360_v63  ;;  %v3427_v41 = vadd.f32 %v6994_v36, %v3405_v57  ;;  %5193 = vmatprep.mubr.msk.bf16.mxu0 %vm825_vm0, %v3443_v50 }
 0xf9b   : > { %5621 = vrsqrt.f32 %v3359_v46  ;;  %v3408_v0 = vmul.f32 %v6986_v31, %v3386_v30 }
 0xf9c   : > { %v5612_v51 = vpop.eup %5611  ;;  %v3444_v22 = vpack.c.bf16 %v3428_v21, %v3427_v41  ;;  %v3407_v26 = vmul.f32 %v6986_v31, %v3385_v6 }
 0xf9d   : > { %v5614_v3 = vpop.eup %5613  ;;  %v3388_v62 = vmul.f32 %v5612_v51, %v6941_v24  ;;  %v3430_v18 = vadd.f32 %v6994_v36, %v3408_v0 }
 0xf9e   : > { %v3387_v16 = vmul.f32 %v5614_v3, %v6947_v8  ;;  %5194 = vmatmul.mubr.msk.bf16.gmra.mrb[80].mxu0 %vm825_vm0, %v3444_v22  ;;  %v3429_v60 = vadd.f32 %v6994_v36, %v3407_v26 }
 0xf9f   : > { %v3410_v56 = vmul.f32 %v6986_v31, %v3388_v62  ;;  %v7043_v32 = vadd.f32 %v3430_v18, %v7002_v29 }
 0xfa0   : > { %v5616_v20 = vpop.eup %5615  ;;  %v3445_v35 = vpack.c.bf16 %v3430_v18, %v3429_v60  ;;  %v3409_v1 = vmul.f32 %v6986_v31, %v3387_v16  ;;  %v7047_v45 = vadd.f32 %v3429_v60, %v6999_v39 }
 0xfa1   : > { %v5618_v24 = vpop.eup %5617  ;;  %v3390_v25 = vmul.f32 %v5616_v20, %v6953_v28  ;;  %v3432_v8 = vadd.f32 %v6994_v36, %v3410_v56 }
 0xfa2   : > { %v3389_v10 = vmul.f32 %v5618_v24, %v6959_v61  ;;  %5197 = vmatprep.mubr.msk.bf16.mxu0 %vm825_vm0, %v3445_v35  ;;  %v3431_v14 = vadd.f32 %v6994_v36, %v3409_v1 }
 0xfa3   : > { %v3412_v29 = vmul.f32 %v6986_v31, %v3390_v25  ;;  %v7056_v55 = vadd.f32 %v3432_v8, %v7014_v37 }
 0xfa4   : > { %v5620_v15 = vpop.eup %5619  ;;  %v3446_v9 = vpack.c.bf16 %v3432_v8, %v3431_v14  ;;  %v3411_v39 = vmul.f32 %v6986_v31, %v3389_v10  ;;  %v7060_v7 = vadd.f32 %v3431_v14, %v7011_v27 }
 0xfa5   : > { %v5622_v28 = vpop.eup %5621  ;;  %v3392_v49 = vmul.f32 %v5620_v15, %v6965_v43  ;;  %v3434_v61 = vadd.f32 %v6994_v36, %v3412_v29 }
 0xfa6   : > { %v3391_v47 = vmul.f32 %v5622_v28, %v6970_v34  ;;  %5198 = vmatmul.mubr.msk.bf16.gmra.mrb[84].mxu0 %vm825_vm0, %v3446_v9  ;;  %v3433_v53 = vadd.f32 %v6994_v36, %v3411_v39 }
 0xfa7   : > { %v3414_v37 = vmul.f32 %v6986_v31, %v3392_v49  ;;  %v7068_v12 = vadd.f32 %v3434_v61, %v3426_v42 }
 0xfa8   : > { %v3447_v2 = vpack.c.bf16 %v3434_v61, %v3433_v53  ;;  %v3413_v13 = vmul.f32 %v6986_v31, %v3391_v47  ;;  %v7071_v27 = vadd.f32 %v3433_v53, %v3425_v33 }
 0xfa9   : > { %v3436_v17 = vadd.f32 %v6994_v36, %v3414_v37 }
 0xfaa   : > { %5201 = vmatprep.mubr.msk.bf16.mxu0 %vm825_vm0, %v3447_v2  ;;  %v3435_v43 = vadd.f32 %v6994_v36, %v3413_v13 }
 0xfab   : > { %v7076_v34 = vadd.f32 %v3436_v17, %v3428_v21 }
 0xfac   : > { %v3448_v11 = vpack.c.bf16 %v3436_v17, %v3435_v43  ;;  %v7078_v44 = vadd.f32 %v3435_v43, %v3427_v41 }
 0xfae   : > { %5202 = vmatmul.mubr.msk.bf16.gmra.mrb[88].mxu0 %vm825_vm0, %v3448_v11 }
0x1068   : > { %v5191_v42 = vpop.f32.mrb[76].mxu0 }
0x1069   : > { %v3519_v58 = vpop.f32.mrb[77].mxu0 }
0x106a   : > { %v5192_v48 = vpop.f32.mrb[78].mxu0 }
0x106b   : > { %v7081_v63 = vpack.c.bf16 %v5192_v48, %v5191_v42  ;;  %v3522_v31 = vpop.f32.mrb[79].mxu0 }
0x106c   : > { %v7083_v33 = vpack.c.bf16 %v3522_v31, %v3519_v58 }
0x106e   : > { %5213 = vmatprep.mubr.msk.bf16.mxu1 %vm825_vm0, %v7083_v33 }
0x1071   : > { %v5195_v46 = vpop.f32.mrb[80].mxu0 }
0x1072   : > { %v3535_v36 = vpop.f32.mrb[81].mxu0 }
0x1073   : > { %v5196_v57 = vpop.f32.mrb[82].mxu0 }
0x1074   : > { %v7087_v40 = vpack.c.bf16 %v5196_v57, %v5195_v46  ;;  %v3538_v30 = vpop.f32.mrb[83].mxu0 }
0x1075   : > { %v7089_v50 = vpack.c.bf16 %v3538_v30, %v3535_v36 }
0x1079   : > { %v5199_v21 = vpop.f32.mrb[84].mxu0 }
0x107a   : > { %v3551_v6 = vpop.f32.mrb[85].mxu0 }
0x107b   : > { %v5200_v41 = vpop.f32.mrb[86].mxu0 }
0x107c   : > { %v7091_v0 = vpack.c.bf16 %v5200_v41, %v5199_v21  ;;  %v3554_v51 = vpop.f32.mrb[87].mxu0 }
0x107d   : > { %v7093_v22 = vpack.c.bf16 %v3554_v51, %v3551_v6 }
0x107e   : > { %3596 = vrot.lane.b32.xlu1 %v7091_v0, %s7459_s28 }
0x107f   : > { %3594 = vrot.lane.b32.xlu0 %v7093_v22, %s7459_s28  ;;  %5245 = vmatprep.mubr.msk.bf16.mxu0 %vm825_vm0, %v7093_v22 }
0x1081   : > { %v5203_v26 = vpop.f32.mrb[88].mxu0 }
0x1082   : > { %v3567_v3 = vpop.f32.mrb[89].mxu0 }
0x1083   : > { %v5204_v62 = vpop.f32.mrb[90].mxu0 }
0x1084   : > { %v7101_v18 = vpack.c.bf16 %v5204_v62, %v5203_v26  ;;  %v3570_v16 = vpop.f32.mrb[91].mxu0 }
0x1085   : > { %v7103_v60 = vpack.c.bf16 %v3570_v16, %v3567_v3 }
0x1086   : > { %3600 = vrot.lane.b32.xlu0 %v7101_v18, %s7459_s28 }
0x1087   : > { %3598 = vrot.lane.b32.xlu1 %v7103_v60, %s7459_s28 }
0x108a   : > { %3888 = vrot.lane.b32.xlu0 %v7089_v50, %s7459_s28 }
0x108b   : > { %3884 = vrot.lane.b32.xlu1 %v7083_v33, %s7459_s28 }
0x108f   : > { %3886 = vrot.lane.b32.xlu1 %v7081_v63, %s7459_s28 }
0x1093   : > { %3890 = vrot.lane.b32.xlu1 %v7087_v40, %s7459_s28  ;;  %s816_s28 = scalar_lea.vmem %s7422_s25, %s4619_s0 }
0x10f0   : > { %v3597_v35 = vpop.permute.xlu1 %3596 }
0x10f1   : > { %v3595_v56 = vpop.permute.xlu0 %3594  ;;  %v3618_v24 = vsel %vm825_vm0, %v3597_v35, 0 }
0x10f2   : > { %v3615_v20 = vsel %vm825_vm0, %v3595_v56, 0  ;;  %5375 = vmatprep.subr.msk.bf16.mxu1 %vm825_vm0, %v3595_v56 }
0x10f3   : > { %5206 = vmatpush3.bf16.xpose.msra.mxu1 %v3615_v20 }
0x10f4   : > { %5376 = vmatprep.subr.msk.bf16.mxu1 %vm825_vm0, %v3597_v35 }
0x10f8   : > { %v3601_v10 = vpop.permute.xlu0 %3600 }
0x10f9   : > { %v3599_v1 = vpop.permute.xlu1 %3598  ;;  %v3624_v39 = vsel %vm825_vm0, %v3601_v10, 0 }
0x10fa   : > { %v3621_v29 = vsel %vm825_vm0, %v3599_v1, 0 }
0x10fb   : > { %5208 = vmatpush3.bf16.xpose.msra.mxu1 %v3618_v24 }
0x10fc   : > { %5377 = vmatprep.subr.msk.bf16.mxu1 %vm825_vm0, %v3599_v1  ;;  %v3889_v9 = vpop.permute.xlu0 %3888 }
0x10fd   : > { %v3885_v25 = vpop.permute.xlu1 %3884  ;;  %v3911_v28 = vsel %vm825_vm0, %v3889_v9, 0 }
0x10fe   : > { %v3905_v8 = vsel %vm825_vm0, %v3885_v25, 0  ;;  %5379 = vmatprep.subr.msk.bf16.mxu0 %vm825_vm0, %v3885_v25 }
0x10ff   : > { %5238 = vmatpush3.bf16.xpose.msra.mxu0 %v3905_v8 }
0x1101   : > { %v3887_v14 = vpop.permute.xlu1 %3886 }
0x1102   : > { %5380 = vmatprep.subr.msk.bf16.mxu0 %vm825_vm0, %v3887_v14  ;;  %v3908_v15 = vsel %vm825_vm0, %v3887_v14, 0 }
0x1103   : > { %5210 = vmatpush3.bf16.xpose.msra.mxu1 %v3621_v29 }
0x1104   : > { %5378 = vmatprep.subr.msk.bf16.mxu1 %vm825_vm0, %v3601_v10 }
0x1105   : > { %v3891_v49 = vpop.permute.xlu1 %3890 }
0x1106   : > { %v3914_v61 = vsel %vm825_vm0, %v3891_v49, 0 }
0x1107   : > { %5240 = vmatpush3.bf16.xpose.msra.mxu0 %v3908_v15 }
0x1108   : > { %5381 = vmatprep.subr.msk.bf16.mxu0 %vm825_vm0, %v3889_v9 }
0x110b   : > { %5212 = vmatpush3.bf16.xpose.msra.mxu1 %v3624_v39 }
0x110f   : > { %5242 = vmatpush3.bf16.xpose.msra.mxu0 %v3911_v28 }
0x1110   : > { %5382 = vmatprep.subr.msk.bf16.mxu0 %vm825_vm0, %v3891_v49 }
0x1112   : > { %5214 = vmatmul.mubr.msk.bf16.vlgmr.msra.gmra.mrb[52].mxu1 %vm825_vm0, %v7081_v63 }
0x1113   : > { %5217 = vmatprep.mubr.msk.bf16.mxu1 %vm825_vm0, %v7089_v50 }
0x1117   : > { %5244 = vmatpush3.bf16.xpose.msra.mxu0 %v3914_v61 }
0x111a   : > { %5218 = vmatmul.mubr.msk.bf16.gmra.mrb[56].mxu1 %vm825_vm0, %v7087_v40 }
0x111e   : > { %5246 = vmatmul.mubr.msk.bf16.vlgmr.msra.gmra.mrb[92].mxu0 %vm825_vm0, %v7091_v0 }
0x111f   : > { %5249 = vmatprep.mubr.msk.bf16.mxu0 %vm825_vm0, %v7103_v60 }
0x1126   : > { %5250 = vmatmul.mubr.msk.bf16.gmra.mrb[96].mxu0 %vm825_vm0, %v7101_v18 }
0x11e5   : > { %v5215_v47 = vpop.f32.mrb[52].mxu1 }
0x11e6   : > { %v3660_v53 = vpop.f32.mrb[53].mxu1  ;;  %v7173_v8 = vmul.f32 0.17677669, %v5215_v47 }
0x11e7   : > { %v5216_v37 = vpop.f32.mrb[54].mxu1  ;;  %v7181_v15 = vmul.f32 0.17677669, %v3660_v53 }
0x11e8   : > { %v3663_v2 = vpop.f32.mrb[55].mxu1  ;;  %v3705_v9 = vsel %vm1375_vm3, %v7173_v8, -inf  ;;  %v7189_v49 = vmul.f32 0.17677669, %v5216_v37 }
0x11e9   : > { %v7177_v14 = vmul.f32 0.17677669, %v3663_v2  ;;  %v3699_v61 = vsel %vm1375_vm3, %v7181_v15, -inf }
0x11eb   : > { %v3702_v28 = vsel %vm1375_vm3, %v7177_v14, -inf }
0x11ed   : > { %v5219_v13 = vpop.f32.mrb[56].mxu1 }
0x11ee   : > { %v3676_v17 = vpop.f32.mrb[57].mxu1  ;;  %v7197_v2 = vmul.f32 0.17677669, %v5219_v13 }
0x11ef   : > { %v5220_v43 = vpop.f32.mrb[58].mxu1 }
0x11f0   : > { %v3679_v11 = vpop.f32.mrb[59].mxu1  ;;  %v7185_v39 = vmul.f32 0.17677669, %v5220_v43  ;;  %v3708_v43 = vsel %vm1375_vm3, %v7189_v49, -inf }
0x11f1   : > { %v5247_v42 = vpop.f32.mrb[92].mxu0  ;;  %v7193_v47 = vmul.f32 0.17677669, %v3679_v11  ;;  %v3717_v11 = vsel %vm1375_vm3, %v7197_v2, -inf }
0x11f2   : > { %v7145_v58 = vmul.f32 0.17677669, %v5247_v42  ;;  %v3950_v48 = vpop.f32.mrb[93].mxu0  ;;  %v3720_v53 = vsel %vm1375_vm3, %v7185_v39, -inf  ;;  %v7203_v42 = vmul.f32 0.17677669, %v3676_v17 }
0x11f3   : > { %v5248_v31 = vpop.f32.mrb[94].mxu0  ;;  %v7147_v46 = vmul.f32 0.17677669, %v3950_v48  ;;  %v3714_v37 = vsel %vm1375_vm3, %v7193_v47, -inf }
0x11f4   : > { %v7149_v36 = vmul.f32 0.17677669, %v5248_v31  ;;  %v3953_v57 = vpop.f32.mrb[95].mxu0  ;;  %v3995_v30 = vsel %vm1375_vm3, %v7145_v58, -inf  ;;  %v3711_v48 = vsel %vm1375_vm3, %v7203_v42, -inf }
0x11f5   : > { %3996 = vmax.xlane.f32.xlu0 %v3995_v30  ;;  %v7153_v21 = vmul.f32 0.17677669, %v3953_v57  ;;  %v3989_v41 = vsel %vm1375_vm3, %v7147_v46, -inf }
0x11f6   : > { %v3998_v6 = vsel %vm1375_vm3, %v7149_v36, -inf }
0x11f7   : > { %3999 = vmax.xlane.f32.xlu1 %v3998_v6  ;;  %v3992_v62 = vsel %vm1375_vm3, %v7153_v21, -inf }
0x11f9   : > { %3990 = vmax.xlane.f32.xlu0 %v3989_v41  ;;  %v5251_v51 = vpop.f32.mrb[96].mxu0 }
0x11fa   : > { %v7159_v26 = vmul.f32 0.17677669, %v5251_v51  ;;  %v3966_v3 = vpop.f32.mrb[97].mxu0 }
0x11fb   : > { %3993 = vmax.xlane.f32.xlu1 %v3992_v62  ;;  %v5252_v16 = vpop.f32.mrb[98].mxu0  ;;  %v7163_v56 = vmul.f32 0.17677669, %v3966_v3 }
0x11fc   : > { %v7165_v20 = vmul.f32 0.17677669, %v5252_v16  ;;  %v3969_v35 = vpop.f32.mrb[99].mxu0  ;;  %v4007_v1 = vsel %vm1375_vm3, %v7159_v26, -inf }
0x11fd   : > { %4008 = vmax.xlane.f32.xlu0 %v4007_v1  ;;  %v7169_v24 = vmul.f32 0.17677669, %v3969_v35  ;;  %v4001_v10 = vsel %vm1375_vm3, %v7163_v56, -inf }
0x11fe   : > { %v4010_v25 = vsel %vm1375_vm3, %v7165_v20, -inf }
0x11ff   : > { %4011 = vmax.xlane.f32.xlu1 %v4010_v25  ;;  %v4004_v29 = vsel %vm1375_vm3, %v7169_v24, -inf }
0x1201   : > { %4002 = vmax.xlane.f32.xlu0 %v4001_v10 }
0x1203   : > { %4005 = vmax.xlane.f32.xlu1 %v4004_v29 }
0x1205   : > { %3706 = vmax.xlane.f32.xlu0 %v3705_v9 }
0x1207   : > { %3703 = vmax.xlane.f32.xlu1 %v3702_v28 }
0x1209   : > { %3700 = vmax.xlane.f32.xlu0 %v3699_v61 }
0x120b   : > { %3721 = vmax.xlane.f32.xlu1 %v3720_v53 }
0x120d   : > { %3709 = vmax.xlane.f32.xlu0 %v3708_v43 }
0x120f   : > { %3715 = vmax.xlane.f32.xlu1 %v3714_v37 }
0x1211   : > { %3718 = vmax.xlane.f32.xlu0 %v3717_v11 }
0x1215   : > { %3712 = vmax.xlane.f32.xlu0 %v3711_v48 }
0x1220   : > { %3793 = vrot.lane.b32.xlu1 %v7091_v0, %s7458_s2 }
0x1224   : > { %4083 = vrot.lane.b32.xlu1 %v7081_v63, %s7458_s2 }
0x122b   : > { %3791 = vrot.lane.b32.xlu0 %v7093_v22, %s7458_s2 }
0x122f   : > { %3795 = vrot.lane.b32.xlu0 %v7103_v60, %s7458_s2 }
0x1233   : > { %3797 = vrot.lane.b32.xlu0 %v7101_v18, %s7458_s2 }
0x1237   : > { %4081 = vrot.lane.b32.xlu0 %v7083_v33, %s7458_s2 }
0x1282   : > { %v3997_v13 = vpop.xlane.xlu0 %3996 }
0x1283   : > { %v4015_v17 = vsub.f32 %v7145_v58, %v3997_v13 }
0x1284   : > { %v4000_v31 = vpop.xlane.xlu1 %3999 }
0x1285   : > { %v4025_v0 = vmul.f32 1.442695, %v4015_v17  ;;  %v4016_v57 = vsub.f32 %v7149_v36, %v4000_v31 }
0x1286   : > { %v3991_v63 = vpop.xlane.xlu0 %3990 }
0x1287   : > { %5623 = vpow2.f32 %v4025_v0  ;;  %v4013_v22 = vsub.f32 %v7147_v46, %v3991_v63  ;;  %v4027_v6 = vmul.f32 1.442695, %v4016_v57 }
0x1288   : > { %v3994_v30 = vpop.xlane.xlu1 %3993 }
0x1289   : > { %v4021_v60 = vmul.f32 1.442695, %v4013_v22  ;;  %v4014_v41 = vsub.f32 %v7153_v21, %v3994_v30 }
0x128a   : > { %v4009_v18 = vpop.xlane.xlu0 %4008 }
0x128b   : > { %5625 = vpow2.f32 %v4021_v60  ;;  %v4019_v33 = vsub.f32 %v7159_v26, %v4009_v18  ;;  %v4023_v51 = vmul.f32 1.442695, %v4014_v41 }
0x128c   : > { %v4012_v3 = vpop.xlane.xlu1 %4011  ;;  %5627 = vpow2.f32 %v4027_v6 }
0x128d   : > { %v4033_v58 = vmul.f32 1.442695, %v4019_v33  ;;  %v4020_v62 = vsub.f32 %v7165_v20, %v4012_v3 }
0x128e   : > { %v4003_v36 = vpop.xlane.xlu0 %4002 }
0x128f   : > { %5629 = vpow2.f32 %v4033_v58  ;;  %v4035_v16 = vmul.f32 1.442695, %v4020_v62  ;;  %v4017_v46 = vsub.f32 %v7163_v56, %v4003_v36 }
0x1290   : > { %5631 = vpow2.f32 %v4023_v51  ;;  %v4006_v35 = vpop.xlane.xlu1 %4005 }
0x1291   : > { %v7228_v1 = vpop.eup %5623  ;;  %5633 = vpow2.f32 %v4035_v16  ;;  %v4029_v21 = vmul.f32 1.442695, %v4017_v46  ;;  %v4018_v25 = vsub.f32 %v7169_v24, %v4006_v35 }
0x1292   : > { %v3707_v26 = vpop.xlane.xlu0 %3706  ;;  %v4043_v10 = vsel %vm1375_vm3, %v7228_v1, 0.0 }
0x1293   : > { %v4031_v29 = vmul.f32 1.442695, %v4018_v25  ;;  %v3725_v20 = vsub.f32 %v7173_v8, %v3707_v26  ;;  %4044 = vadd.xlane.f32.xlu1 %v4043_v10  ;;  %5635 = vpow2.f32 %v4029_v21 }
0x1294   : > { %v3704_v9 = vpop.xlane.xlu1 %3703 }
0x1295   : > { %v7234_v28 = vpop.eup %5625  ;;  %5637 = vpow2.f32 %v4031_v29  ;;  %v3735_v56 = vmul.f32 1.442695, %v3725_v20  ;;  %v3724_v8 = vsub.f32 %v7177_v14, %v3704_v9 }
0x1296   : > { %v3701_v61 = vpop.xlane.xlu0 %3700  ;;  %v4037_v53 = vsel %vm1375_vm3, %v7234_v28, 0.0  ;;  %v7238_v43 = vpop.eup %5627 }
0x1297   : > { %v3723_v24 = vsub.f32 %v7181_v15, %v3701_v61  ;;  %4038 = vadd.xlane.f32.xlu1 %v4037_v53  ;;  %5639 = vpow2.f32 %v3735_v56  ;;  %v4046_v0 = vsel %vm1375_vm3, %v7238_v43, 0.0  ;;  %v3733_v63 = vmul.f32 1.442695, %v3724_v8 }
0x1298   : > { %v3722_v37 = vpop.xlane.xlu1 %3721 }
0x1299   : > { %v7241_v11 = vpop.eup %5629  ;;  %v3731_v48 = vmul.f32 1.442695, %v3723_v24  ;;  %v3730_v14 = vsub.f32 %v7185_v39, %v3722_v37 }
0x129a   : > { %v7244_v13 = vpop.eup %5631  ;;  %v3710_v17 = vpop.xlane.xlu0 %3709  ;;  %v4055_v31 = vsel %vm1375_vm3, %v7241_v11, 0.0 }
0x129b   : > { %v7250_v57 = vpop.eup %5633  ;;  %v3726_v15 = vsub.f32 %v7189_v49, %v3710_v17  ;;  %4056 = vadd.xlane.f32.xlu0 %v4055_v31  ;;  %4047 = vadd.xlane.f32.xlu1 %v4046_v0  ;;  %5641 = vpow2.f32 %v3731_v48  ;;  %v4040_v18 = vsel %vm1375_vm3, %v7244_v13, 0.0  ;;  %v3745_v39 = vmul.f32 1.442695, %v3730_v14  ;;  %v5476_v14 = vld [vmem:[%s7418_s21 + $0x8] sm:$0xff]  }
0x129c   : > { %v3716_v6 = vpop.xlane.xlu1 %3715  ;;  %v4058_v41 = vsel %vm1375_vm3, %v7250_v57, 0.0 }
0x129d   : > { %v3737_v22 = vmul.f32 1.442695, %v3726_v15  ;;  %v7254_v30 = vpop.eup %5635  ;;  %v3728_v51 = vsub.f32 %v7193_v47, %v3716_v6 }
0x129e   : > { %v3719_v60 = vpop.xlane.xlu0 %3718  ;;  %v4049_v62 = vsel %vm1375_vm3, %v7254_v30, 0.0 }
0x129f   : > { %v7260_v33 = vpop.eup %5637  ;;  %5643 = vpow2.f32 %v3737_v22  ;;  %v3729_v49 = vsub.f32 %v7197_v2, %v3719_v60  ;;  %4059 = vadd.xlane.f32.xlu0 %v4058_v41  ;;  %4041 = vadd.xlane.f32.xlu1 %v4040_v18  ;;  %v3741_v2 = vmul.f32 1.442695, %v3728_v51 }
0x12a0   : > { %5645 = vpow2.f32 %v3733_v63  ;;  %v4052_v36 = vsel %vm1375_vm3, %v7260_v33, 0.0  ;;  %v3794_v26 = vpop.permute.xlu1 %3793  ;;  %v5475_v63 = vld [vmem:[%s7418_s21] sm:$0xff]  }
0x12a1   : > { %v3743_v3 = vmul.f32 1.442695, %v3729_v49  ;;  %v7268_v16 = vpop.eup %5639  ;;  %5269 = vmatprep.subr.bf16.mxu0 %v5475_v63 }
0x12a2   : > { %v3713_v58 = vpop.xlane.xlu0 %3712  ;;  %v3753_v47 = vsel %vm1375_vm3, %v7268_v16, 0.0  ;;  %5270 = vmatpush3.bf16.msra.mxu0 %v5475_v63 }
0x12a3   : > { %5647 = vpow2.f32 %v3743_v3  ;;  %v3727_v46 = vsub.f32 %v7203_v42, %v3713_v58  ;;  %4050 = vadd.xlane.f32.xlu1 %v4049_v62  ;;  %4053 = vadd.xlane.f32.xlu0 %v4052_v36 }
0x12a4   : > { %5649 = vpow2.f32 %v3745_v39  ;;  %5271 = vmatprep.subr.bf16.mxu0 %v5476_v14  ;;  %v4084_v22 = vpop.permute.xlu1 %4083 }
0x12a5   : > { %v3739_v35 = vmul.f32 1.442695, %v3727_v46  ;;  %v7273_v25 = vpop.eup %5641 }
0x12a6   : > { %v3792_v21 = vpop.permute.xlu0 %3791  ;;  %v3747_v20 = vsel %vm1375_vm3, %v7273_v25, 0.0  ;;  %5272 = vmatpush3.bf16.msra.mxu0 %v5476_v14 }
0x12a7   : > { %5651 = vpow2.f32 %v3739_v35  ;;  %5221 = vmatprep.subr.bf16.mxu1 %v3792_v21  ;;  %3754 = vadd.xlane.f32.xlu0 %v3753_v47 }
0x12a8   : > { %5222 = vmatpush3.bf16.msra.mxu1 %v3792_v21  ;;  %5653 = vpow2.f32 %v3741_v2 }
0x12a9   : > { %v7275_v10 = vpop.eup %5643  ;;  %5223 = vmatprep.subr.bf16.mxu1 %v3794_v26 }
0x12aa   : > { %v3796_v42 = vpop.permute.xlu0 %3795  ;;  %v3756_v29 = vsel %vm1375_vm3, %v7275_v10, 0.0  ;;  %v7281_v9 = vpop.eup %5645 }
0x12ab   : > { %3757 = vadd.xlane.f32.xlu1 %v3756_v29  ;;  %3748 = vadd.xlane.f32.xlu0 %v3747_v20  ;;  %v3750_v24 = vsel %vm1375_vm3, %v7281_v9, 0.0 }
0x12ac   : > { %5224 = vmatpush3.bf16.msra.mxu1 %v3794_v26 }
0x12ad   : > { %v7283_v56 = vpop.eup %5647  ;;  %5225 = vmatprep.subr.bf16.mxu1 %v3796_v42 }
0x12ae   : > { %v3798_v61 = vpop.permute.xlu0 %3797  ;;  %v3765_v53 = vsel %vm1375_vm3, %v7283_v56, 0.0  ;;  %v7289_v37 = vpop.eup %5649 }
0x12af   : > { %3766 = vadd.xlane.f32.xlu0 %v3765_v53  ;;  %3751 = vadd.xlane.f32.xlu1 %v3750_v24  ;;  %v3768_v17 = vsel %vm1375_vm3, %v7289_v37, 0.0 }
0x12b0   : > { %5226 = vmatpush3.bf16.msra.mxu1 %v3796_v42 }
0x12b1   : > { %v7291_v8 = vpop.eup %5651  ;;  %5227 = vmatprep.subr.bf16.mxu1 %v3798_v61 }
0x12b2   : > { %v3759_v48 = vsel %vm1375_vm3, %v7291_v8, 0.0  ;;  %v7297_v31 = vpop.eup %5653  ;;  %v4082_v0 = vpop.permute.xlu0 %4081 }
0x12b3   : > { %3760 = vadd.xlane.f32.xlu0 %v3759_v48  ;;  %3769 = vadd.xlane.f32.xlu1 %v3768_v17  ;;  %v3762_v15 = vsel %vm1375_vm3, %v7297_v31, 0.0 }
0x12b4   : > { %5228 = vmatpush3.bf16.msra.mxu1 %v3798_v61 }
0x12b5   : > { %5253 = vmatprep.subr.bf16.mxu1 %v4082_v0 }
0x12b7   : > { %3763 = vadd.xlane.f32.xlu1 %v3762_v15 }
0x12c8   : > { %4087 = vrot.lane.b32.xlu1 %v7087_v40, %s7458_s2 }
0x12c9   : > { %4085 = vrot.lane.b32.xlu0 %v7089_v50, %s7458_s2  ;;  %s820_s2 = scalar_lea.vmem %s7423_s26, %s4620_s9 }
0x1320   : > { %v4045_v6 = vpop.xlane.xlu1 %4044 }
0x1324   : > { %v4039_v60 = vpop.xlane.xlu1 %4038 }
0x1328   : > { %v4057_v41 = vpop.xlane.xlu0 %4056  ;;  %v4048_v40 = vpop.xlane.xlu1 %4047 }
0x132c   : > { %v4060_v18 = vpop.xlane.xlu0 %4059  ;;  %v4042_v49 = vpop.xlane.xlu1 %4041 }
0x1330   : > { %v4054_v50 = vpop.xlane.xlu0 %4053  ;;  %v4051_v39 = vpop.xlane.xlu1 %4050 }
0x1334   : > { %v3755_v51 = vpop.xlane.xlu0 %3754 }
0x1338   : > { %v3749_v3 = vpop.xlane.xlu0 %3748  ;;  %v3758_v58 = vpop.xlane.xlu1 %3757 }
0x1339   : > { %5655 = vrcp.f32 %v3758_v58  ;;  %v7460_v58 = vmov 0.0  }
0x133a   : > { %5657 = vrcp.f32 %v3749_v3 }
0x133b   : > { %5659 = vrcp.f32 %v3755_v51 }
0x133c   : > { %v3767_v62 = vpop.xlane.xlu0 %3766  ;;  %v3752_v36 = vpop.xlane.xlu1 %3751 }
0x133d   : > { %5661 = vrcp.f32 %v3752_v36 }
0x133e   : > { %5663 = vrcp.f32 %v4042_v49 }
0x1340   : > { %v3761_v46 = vpop.xlane.xlu0 %3760  ;;  %v3770_v2 = vpop.xlane.xlu1 %3769 }
0x1341   : > { %5665 = vrcp.f32 %v3761_v46 }
0x1342   : > { %5667 = vrcp.f32 %v3770_v2 }
0x1343   : > { %5669 = vrcp.f32 %v3767_v62  ;;  %v5656_v21 = vpop.eup %5655 }
0x1344   : > { %v3764_v35 = vpop.xlane.xlu1 %3763  ;;  %v5658_v47 = vpop.eup %5657  ;;  %v3778_v29 = vmul.f32 %v5656_v21, %v7275_v10 }
0x1345   : > { %5671 = vrcp.f32 %v3764_v35  ;;  %v5660_v26 = vpop.eup %5659  ;;  %v3772_v20 = vmul.f32 %v5658_v47, %v7273_v25 }
0x1346   : > { %5673 = vrcp.f32 %v4039_v60  ;;  %v3776_v53 = vmul.f32 %v5660_v26, %v7268_v16 }
0x1347   : > { %v5662_v42 = vpop.eup %5661  ;;  %5675 = vrcp.f32 %v4048_v40 }
0x1348   : > { %v3774_v61 = vmul.f32 %v5662_v42, %v7281_v9  ;;  %v5664_v24 = vpop.eup %5663  ;;  %5677 = vrcp.f32 %v4054_v50  ;;  %v3788_v15 = vpack.c.bf16 %v3778_v29, %v3776_v53  ;;  %v4086_v50 = vpop.permute.xlu0 %4085 }
0x1349   : > { %5679 = vrcp.f32 %v4051_v39  ;;  %v4064_v40 = vmul.f32 %v5664_v24, %v7244_v13 }
0x134a   : > { %v3787_v48 = vpack.c.bf16 %v3774_v61, %v3772_v20  ;;  %5681 = vrcp.f32 %v4045_v6 }
0x134b   : > { %v5666_v17 = vpop.eup %5665  ;;  %5683 = vrcp.f32 %v4060_v18 }
0x134c   : > { %v5668_v63 = vpop.eup %5667  ;;  %5229 = vmatprep.mubr.msk.bf16.mxu1 %vm1375_vm3, %v3787_v48  ;;  %v3780_v9 = vmul.f32 %v5666_v17, %v7291_v8  ;;  %5685 = vrcp.f32 %v4057_v41  ;;  %v7462_v48 = vpack.c.bf16 %v6364_v59, %v6362_v38  ;;  %v7464_v38 = vpack.c.bf16 %v6382_v4, %v6380_v54  ;;  %v4423_v54 = vld [vmem:[%s7421_s24] sm:$0xff] }
0x134d   : > { %v5670_v14 = vpop.eup %5669  ;;  %5230 = vmatmul.mubr.msk.bf16.vlgmr.msra.gmra.mrb[60].mxu1 %vm1375_vm3, %v3788_v15  ;;  %v3786_v60 = vmul.f32 %v5668_v63, %v7289_v37  ;;  %v4088_v37 = vpop.permute.xlu1 %4087  ;;  %v4344_v4 = vld [vmem:[%s7420_s23] sm:$0xf] }
0x134e   : > { %5254 = vmatpush3.bf16.msra.mxu1 %v4082_v0  ;;  %v3784_v6 = vmul.f32 %v5670_v14, %v7283_v56 }
0x134f   : > { %v5672_v10 = vpop.eup %5671  ;;  %5255 = vmatprep.subr.bf16.mxu1 %v4084_v22 }
0x1350   : > { %v5674_v25 = vpop.eup %5673  ;;  %v3782_v16 = vmul.f32 %v5672_v10, %v7297_v31  ;;  %v3790_v0 = vpack.c.bf16 %v3786_v60, %v3784_v6  ;;  %v5712_v60 = vmov 0  }
0x1351   : > { %v4062_v39 = vmul.f32 %v5674_v25, %v7234_v28  ;;  %v5676_v51 = vpop.eup %5675  ;;  %5437 = vset.pattern.permute.xlu1 %v5712_v60  ;;  %5438 = vset.pattern.permute.xlu0 %v5712_v60 }
0x1352   : > { %v3789_v49 = vpack.c.bf16 %v3782_v16, %v3780_v9  ;;  %5256 = vmatpush3.bf16.msra.mxu1 %v4084_v22  ;;  %v5678_v8 = vpop.eup %5677  ;;  %v4068_v56 = vmul.f32 %v5676_v51, %v7238_v43  ;;  %4347 = vperm.xlu1 %5437, %v4344_v4  }
0x1353   : > { %5257 = vmatprep.subr.bf16.mxu1 %v4086_v50  ;;  %v4077_v31 = vpack.c.bf16 %v4064_v40, %v4062_v39  ;;  %v5680_v3 = vpop.eup %5679  ;;  %v4072_v22 = vmul.f32 %v5678_v8, %v7260_v33 }
0x1354   : > { %5233 = vmatprep.mubr.msk.bf16.mxu1 %vm1375_vm3, %v3789_v49  ;;  %v5682_v13 = vpop.eup %5681  ;;  %v4070_v28 = vmul.f32 %v5680_v3, %v7254_v30 }
0x1355   : > { %5234 = vmatmul.mubr.msk.bf16.gmra.mrb[64].mxu1 %vm1375_vm3, %v3790_v0  ;;  %v4066_v18 = vmul.f32 %v5682_v13, %v7228_v1  ;;  %v5684_v62 = vpop.eup %5683  ;;  %v5711_v1 = vmov 0.0|0.0  }
0x1356   : > { %5258 = vmatpush3.bf16.msra.mxu1 %v4086_v50  ;;  %5261 = vmatprep.mubr.msk.bf16.mxu1 %vm1375_vm3, %v4077_v31  ;;  %v4079_v36 = vpack.c.bf16 %v4072_v22, %v4070_v28  ;;  %v5686_v46 = vpop.eup %5685  ;;  %v4076_v43 = vmul.f32 %v5684_v62, %v7250_v57 }
0x1357   : > { %5259 = vmatprep.subr.bf16.mxu1 %v4088_v37  ;;  %v4078_v41 = vpack.c.bf16 %v4068_v56, %v4066_v18  ;;  %v4074_v2 = vmul.f32 %v5686_v46, %v7241_v11  ;;  %5320 = vmatprep.subr.bf16.mxu0 %v5711_v1  ;;  %v7461_v11 = vpack.c.bf16 %v6369_v23, %v6367_v19 }
0x1358   : > { %v7463_v19 = vpack.c.bf16 %v6387_v5, %v6385_v52 }
0x1359   : > { %v4080_v30 = vpack.c.bf16 %v4076_v43, %v4074_v2 }
0x135a   : > { %5260 = vmatpush3.bf16.msra.mxu1 %v4088_v37 }
0x135b   : > { %5289 = vmatprep.subr.bf16.mxu1 %v7460_v58 }
0x135d   : > { %5262 = vmatmul.mubr.msk.bf16.vlgmr.msra.gmra.mrb[68].mxu1 %vm1375_vm3, %v4078_v41 }
0x135e   : > { %5265 = vmatprep.mubr.msk.bf16.mxu1 %vm1375_vm3, %v4079_v36 }
0x1365   : > { %5266 = vmatmul.mubr.msk.bf16.gmra.mrb[72].mxu1 %vm1375_vm3, %v4080_v30 }
0x1366   : > { %5297 = vmatprep.mubr.msk.bf16.mxu1 %vm5708_vm1, %v7460_v58 }
0x1420   : > { %v5231_v33 = vpop.f32.mrb[60].mxu1 }
0x1421   : > { %v3849_v35 = vpop.f32.mrb[61].mxu1 }
0x1422   : > { %v5232_v21 = vpop.f32.mrb[62].mxu1 }
0x1423   : > { %v4175_v47 = vpack.c.bf16 %v5232_v21, %v5231_v33  ;;  %v3852_v26 = vpop.f32.mrb[63].mxu1 }
0x1424   : > { %v4174_v42 = vpack.c.bf16 %v3852_v26, %v3849_v35 }
0x1426   : > { %5273 = vmatprep.mubr.msk.bf16.mxu0 %vm825_vm0, %v4174_v42 }
0x1427   : > { %5274 = vmatmul.mubr.msk.bf16.vlgmr.msra.gmra.mrb[100].mxu0 %vm825_vm0, %v4175_v47 }
0x1428   : > { %5322 = vmatpush3.bf16.msra.mxu0 %v7461_v11  ;;  %v5235_v57 = vpop.f32.mrb[64].mxu1 }
0x1429   : > { %v3865_v29 = vpop.f32.mrb[65].mxu1  ;;  %5323 = vmatprep.subr.bf16.mxu0 %v5711_v1 }
0x142a   : > { %v5236_v20 = vpop.f32.mrb[66].mxu1 }
0x142b   : > { %v4177_v61 = vpack.c.bf16 %v5236_v20, %v5235_v57  ;;  %v3868_v53 = vpop.f32.mrb[67].mxu1 }
0x142c   : > { %v4176_v24 = vpack.c.bf16 %v3868_v53, %v3865_v29  ;;  %5325 = vmatpush3.bf16.msra.mxu0 %v7462_v48 }
0x142d   : > { %5326 = vmatprep.subr.bf16.mxu0 %v5711_v1 }
0x142e   : > { %5277 = vmatprep.mubr.msk.bf16.mxu0 %vm825_vm0, %v4176_v24 }
0x142f   : > { %5278 = vmatmul.mubr.msk.bf16.gmra.mrb[104].mxu0 %vm825_vm0, %v4177_v61 }
0x1430   : > { %5328 = vmatpush3.bf16.msra.mxu0 %v7463_v19  ;;  %v5263_v23 = vpop.f32.mrb[68].mxu1 }
0x1431   : > { %v4139_v17 = vpop.f32.mrb[69].mxu1  ;;  %5329 = vmatprep.subr.bf16.mxu0 %v5711_v1  ;;  %v4348_v1 = vpop.permute.xlu1 %4347 }
0x1432   : > { %v5264_v15 = vpop.f32.mrb[70].mxu1 }
0x1433   : > { %v4179_v63 = vpack.c.bf16 %v5264_v15, %v5263_v23  ;;  %v4142_v14 = vpop.f32.mrb[71].mxu1 }
0x1434   : > { %v4178_v10 = vpack.c.bf16 %v4142_v14, %v4139_v17  ;;  %5331 = vmatpush3.bf16.msra.mxu0 %v7464_v38 }
0x1436   : > { %5281 = vmatprep.mubr.msk.bf16.mxu0 %vm825_vm0, %v4178_v10 }
0x1437   : > { %5282 = vmatmul.mubr.msk.bf16.gmra.mrb[100].mxu0 %vm825_vm0, %v4179_v63 }
0x1438   : > { %v5267_v59 = vpop.f32.mrb[72].mxu1 }
0x1439   : > { %v4155_v25 = vpop.f32.mrb[73].mxu1 }
0x143a   : > { %v5268_v9 = vpop.f32.mrb[74].mxu1 }
0x143b   : > { %v4181_v52 = vpack.c.bf16 %v5268_v9, %v5267_v59  ;;  %v4158_v5 = vpop.f32.mrb[75].mxu1 }
0x143c   : > { %v4180_v16 = vpack.c.bf16 %v4158_v5, %v4155_v25 }
0x143e   : > { %5285 = vmatprep.mubr.msk.bf16.mxu0 %vm825_vm0, %v4180_v16 }
0x143f   : > { %5286 = vmatmul.mubr.msk.bf16.gmra.mrb[104].mxu0 %vm825_vm0, %v4181_v52 }
0x1440   : > { %5317 = vmatprep.mubr.msk.f32.mxu0 %vm5708_vm1, %v7460_v58 }
0x1447   : > { %5318 = vmatmul.mubr.msk.f32.vlgmr.msra.gmra.mrb[108].mxu0 %vm1375_vm3, %v4423_v54 }
0x150a   : > { %v5283_v40 = vpop.f32.mrb[100].mxu0 }
0x150b   : > { %v5333_v49 = vadd.f32 %v7060_v7, %v5283_v40  ;;  %v4284_v6 = vpop.f32.mrb[101].mxu0 }
0x150c   : > { %v5335_v50 = vadd.f32 %v7047_v45, %v4284_v6  ;;  %v5284_v39 = vpop.f32.mrb[102].mxu0 }
0x150d   : > { %v5337_v51 = vadd.f32 %v7056_v55, %v5284_v39  ;;  %v4287_v0 = vpop.f32.mrb[103].mxu0 }
0x150e   : > { %v5339_v8 = vadd.f32 %v7043_v32, %v4287_v0 }
0x150f   : > { %v4341_v31 = vpack.c.bf16 %v5337_v51, %v5333_v49 }
0x1510   : > { %v4340_v3 = vpack.c.bf16 %v5339_v8, %v5335_v50 }
0x1511   : > { %v4357_v62 = vsel %vm825_vm0, %v4341_v31, 0 }
0x1512   : > { %v5287_v13 = vpop.f32.mrb[104].mxu0  ;;  %v4354_v37 = vsel %vm825_vm0, %v4340_v3, 0 }
0x1513   : > { %v5341_v56 = vadd.f32 %v7078_v44, %v5287_v13  ;;  %v4300_v28 = vpop.f32.mrb[105].mxu0  ;;  %5290 = vmatpush3.bf16.xpose.msra.mxu1 %v4354_v37 }
0x1514   : > { %v5343_v7 = vadd.f32 %v7071_v27, %v4300_v28  ;;  %v5288_v22 = vpop.f32.mrb[106].mxu0  ;;  %5291 = vmatprep.subr.bf16.mxu1 %v7460_v58 }
0x1515   : > { %v5345_v45 = vadd.f32 %v7076_v34, %v5288_v22  ;;  %v4303_v55 = vpop.f32.mrb[107].mxu0 }
0x1516   : > { %v5347_v18 = vadd.f32 %v7068_v12, %v4303_v55  ;;  %v4339_v12 = vld [vmem:[%s7419_s22] sm:$0x3] }
0x1517   : > { %v4343_v32 = vpack.c.bf16 %v5345_v45, %v5341_v56 }
0x1518   : > { %v4342_v41 = vpack.c.bf16 %v5347_v18, %v5343_v7 }
0x1519   : > { %v4363_v27 = vsel %vm825_vm0, %v4343_v32, 0 }
0x151a   : > { %v4360_v44 = vsel %vm825_vm0, %v4342_v41, 0  ;;  %v4501_v34 = vpop.f32.mrb[108].mxu0 }
0x151b   : > { %5292 = vmatpush3.bf16.xpose.msra.mxu1 %v4357_v62  ;;  %5687 = vrsqrt.f32 %v4501_v34  ;;  %v5319_v36 = vpop.f32.mrb[109].mxu0  ;;  %vm4507_vm7 = vcmp.eq.f32.partialorder %v4501_v34, inf  ;;  %v4510_v43 = vand.u32 2147483648, %v4501_v34  ;;  %vm4509_vm8 = vcmp.eq.f32.partialorder %v4501_v34, 0.0 }
0x151c   : > { %5293 = vmatprep.subr.bf16.mxu1 %v7460_v58 }
0x1523   : > { %5294 = vmatpush3.bf16.xpose.msra.mxu1 %v4360_v44 }
0x1524   : > { %5295 = vmatprep.subr.bf16.mxu1 %v7460_v58 }
0x1525   : > { %v5688_v46 = vpop.eup %5687 }
0x1526   : > { %v4506_v2 = vmul.f32 %v5688_v46, %v4501_v34 }
0x1528   : > { %v4508_v58 = vsel %vm4507_vm7, %v4501_v34, %v4506_v2 }
0x1529   : > { %v4511_v30 = vsel %vm4509_vm8, %v4510_v43, %v4508_v58 }
0x152a   : > { %4513 = vst.msk [vmem:[%s820_s2] sm:$0xff] %vm4512_vm9, %v4511_v30 }
0x152b   : > { %5296 = vmatpush3.bf16.xpose.msra.mxu1 %v4363_v27 }
0x1532   : > { %5298 = vmatmul.mubr.msk.bf16.vlgmr.msra.gmra.mrb[76].mxu1 %vm825_vm0, %v4339_v12 }
0x1605   : > { %v4399_v33 = vpop.f32.mrb[76].mxu1 }
0x1606   : > { %v5299_v35 = vpop.f32.mrb[77].mxu1  ;;  %v4400_v21 = vadd.f32 %v4399_v33, %v4348_v1 }
0x1607   : > { %v4402_v47 = vpop.f32.mrb[78].mxu1 }
0x1608   : > { %4406 = vst.msk [vmem:[%s816_s28] sm:$0xf] %vm4405_vm10, %v4400_v21  ;;  %v5300_v26 = vpop.f32.mrb[79].mxu1 }
0x1609 PF: > { %s37_s27 = sadd.s32 1, %s5705_s27  }
0x160a   : > { %p34_p4 = scmp.ge.s32.totalorder %s37_s27, 4  }
0x160c   :  { %36 = sbr.rel (!%p34_p4) target bundleno = 12 (0xc), region = 165 }

</bundles_post_ra>
